<compile_context>
chip_gen: v7x
topology: tpu7x:2x2x1
jax: 0.10.0
libtpu: 0.0.40
codegen_flags: <defaults>
</compile_context>

<pallas_src>
import functools
import numpy as np
import jax
import jax.numpy as jnp
from jax import lax
from jax.experimental import pallas as pl
from jax.experimental.pallas import tpu as pltpu

GN_EPS = 1e-5  # nn.GroupNorm default

_VMEM_LIMIT = 48 * 1024 * 1024  # stays under v7x's 64 MiB physical VMEM per TC


def _compiler_params(*dim_semantics):
    return pltpu.CompilerParams(dimension_semantics=tuple(dim_semantics),
                                vmem_limit_bytes=_VMEM_LIMIT)


# ----------------------------------------------------------------------------
# Kernel 1: MaxPool3d((2,2,1)) fused with the zero halo padding that conv1 needs.
#   input  x          : (N, D,    H,    W,   C)   NDHWC
#   output xpad_pooled: (N, Dp+2, Hp+2, W+2, C)   (Dp=D//2, Hp=H//2), halo = 0
# grid = (N, Dp+2); border depth steps write zeros.
# ----------------------------------------------------------------------------
def maxpool_pad_kernel(x0_ref, x1_ref, o_ref):
    # x0_ref/x1_ref: (H, W, C) = unpooled depth slices 2q and 2q+1
    # o_ref:         (Hp+2, W+2, C)
    dd = pl.program_id(1)
    Hp = o_ref.shape[0] - 2
    Wc = o_ref.shape[1] - 2

    o_ref[...] = jnp.zeros_like(o_ref)      # halo (and border depth slices) = 0

    @pl.when((dd >= 1) & (dd < pl.num_programs(1) - 1))
    def _interior():
        a0 = x0_ref[pl.ds(0, Hp, stride=2), :, :]
        a1 = x0_ref[pl.ds(1, Hp, stride=2), :, :]
        b0 = x1_ref[pl.ds(0, Hp, stride=2), :, :]
        b1 = x1_ref[pl.ds(1, Hp, stride=2), :, :]
        m = jnp.maximum(jnp.maximum(a0, a1), jnp.maximum(b0, b1))   # (Hp, W, C)
        o_ref[pl.ds(1, Hp), pl.ds(1, Wc), :] = m.astype(o_ref.dtype)


def maxpool_pad(x):
    N, D, H, Wc, C = x.shape
    Dp, Hp = D // 2, H // 2

    def tap(j):
        def imap(n, dd, j=j):
            u = 2 * (dd - 1) + j                       # unpooled depth index
            u = jnp.minimum(jnp.maximum(u, 0), D - 1)  # clamp (border steps ignore data)
            return (n, u, 0, 0, 0)
        return pl.BlockSpec((None, None, H, Wc, C), imap)

    return pl.pallas_call(
        maxpool_pad_kernel,
        out_shape=jax.ShapeDtypeStruct((N, Dp + 2, Hp + 2, Wc + 2, C), x.dtype),
        grid=(N, Dp + 2),
        in_specs=[tap(0), tap(1)],
        out_specs=pl.BlockSpec((None, None, Hp + 2, Wc + 2, C),
                               lambda n, dd: (n, dd, 0, 0, 0)),
        compiler_params=_compiler_params("parallel", "parallel"),
    )(x, x)


# ----------------------------------------------------------------------------
# Kernel 2: Conv3d(k=3, p=1) + bias, one output depth slice per grid step,
# computed as 27 shifted matmuls (no im2col), plus per-channel sum / sumsq
# accumulation for the (two-pass) GroupNorm.
#   input xpad : (N, Dp+2, Hp+2, W+2, Cin)  zero-padded activations
#   outputs    : y (N, Dp, Hp, W, Cout) raw conv+bias,
#                ssum/ssq (N, 1, Cout) f32 running per-channel sums.
# grid = (N, Dp);  depth axis is "arbitrary" because of the stats accumulator.
# ----------------------------------------------------------------------------
def conv3x3x3_stats_kernel(x0_ref, x1_ref, x2_ref, w_ref, b_ref,
                           y_ref, ssum_ref, ssq_ref):
    # x{0,1,2}_ref: (Hp+2, W+2, Cin)   padded depth taps kd = 0, 1, 2
    # w_ref: (27, Cin, Cout)           b_ref: (1, Cout) f32
    # y_ref: (Hp, W, Cout)             ssum_ref / ssq_ref: (1, Cout) f32
    d = pl.program_id(1)

    @pl.when(d == 0)
    def _init():
        ssum_ref[...] = jnp.zeros_like(ssum_ref)
        ssq_ref[...] = jnp.zeros_like(ssq_ref)

    Hp, Wc, Cout = y_ref.shape
    taps = (x0_ref, x1_ref, x2_ref)

    def row_body(h, carry):
        s, ss = carry
        acc = jnp.zeros((Wc, Cout), jnp.float32)
        for kd in range(3):
            xk = taps[kd]
            for kh in range(3):
                row = xk[h + kh]                           # (W+2, Cin)
                for kw in range(3):
                    acc = acc + jnp.dot(
                        row[kw:kw + Wc, :],                # (W, Cin)
                        w_ref[kd * 9 + kh * 3 + kw],       # (Cin, Cout)
                        preferred_element_type=jnp.float32)
        yrow = acc + b_ref[...]                            # (W, Cout) f32
        y_ref[h] = yrow.astype(y_ref.dtype)
        s = s + jnp.sum(yrow, axis=0, keepdims=True)
        ss = ss + jnp.sum(yrow * yrow, axis=0, keepdims=True)
        return s, ss

    z = jnp.zeros((1, Cout), jnp.float32)
    s, ss = lax.fori_loop(0, Hp, row_body, (z, z))
    ssum_ref[...] += s
    ssq_ref[...] += ss


def conv3x3x3_stats(xpad, w, b):
    # xpad: (N, Dp+2, Hp+2, W+2, Cin); w: (Cout, Cin, 3, 3, 3) PyTorch OIDHW
    N, Dpp, Hpp, Wpp, Cin = xpad.shape
    Dp, Hp, Wc = Dpp - 2, Hpp - 2, Wpp - 2
    Cout = w.shape[0]

    # (O, I, kd, kh, kw) -> (kd, kh, kw, I, O) -> (27, Cin, Cout)
    w_taps = jnp.transpose(w, (2, 3, 4, 1, 0)).reshape(27, Cin, Cout).astype(xpad.dtype)
    b2 = b.reshape(1, Cout).astype(jnp.float32)

    def tap(kd):
        return pl.BlockSpec((None, None, Hpp, Wpp, Cin),
                            lambda n, d, kd=kd: (n, d + kd, 0, 0, 0))

    y, ssum, ssq = pl.pallas_call(
        conv3x3x3_stats_kernel,
        out_shape=(jax.ShapeDtypeStruct((N, Dp, Hp, Wc, Cout), xpad.dtype),
                   jax.ShapeDtypeStruct((N, 1, Cout), jnp.float32),
                   jax.ShapeDtypeStruct((N, 1, Cout), jnp.float32)),
        grid=(N, Dp),
        in_specs=[tap(0), tap(1), tap(2),
                  pl.BlockSpec((27, Cin, Cout), lambda n, d: (0, 0, 0)),
                  pl.BlockSpec((1, Cout), lambda n, d: (0, 0))],
        out_specs=(pl.BlockSpec((None, None, Hp, Wc, Cout),
                                lambda n, d: (n, d, 0, 0, 0)),
                   pl.BlockSpec((None, 1, Cout), lambda n, d: (n, 0, 0)),
                   pl.BlockSpec((None, 1, Cout), lambda n, d: (n, 0, 0))),
        compiler_params=_compiler_params("parallel", "arbitrary"),
    )(xpad, xpad, xpad, w_taps, b2)
    return y, ssum, ssq


# ----------------------------------------------------------------------------
# Tiny O(N*C) GroupNorm statistics -> per-channel (scale, offset), in plain JAX.
# ----------------------------------------------------------------------------
def gn_scale_offset(ssum, ssq, gamma, beta, num_groups, spatial_count):
    N = ssum.shape[0]
    C = ssum.shape[-1]
    G = num_groups
    cpg = C // G
    cnt = jnp.float32(spatial_count * cpg)
    s = ssum.reshape(N, G, cpg).sum(axis=-1)
    q = ssq.reshape(N, G, cpg).sum(axis=-1)
    mean = s / cnt
    var = jnp.maximum(q / cnt - mean * mean, 0.0)    # clamp: E[x^2]-E[x]^2 can cancel < 0
    inv = lax.rsqrt(var + GN_EPS)                    # (N, G)
    inv_c = jnp.repeat(inv, cpg, axis=1)             # (N, C)
    mean_c = jnp.repeat(mean, cpg, axis=1)           # (N, C)
    scale = gamma.astype(jnp.float32)[None, :] * inv_c
    offset = beta.astype(jnp.float32)[None, :] - mean_c * scale
    return scale.reshape(N, 1, C), offset.reshape(N, 1, C)


# ----------------------------------------------------------------------------
# Kernel 3: GroupNorm(normalize)+ReLU fused with the zero halo padding needed by
# the next conv:  out = pad(relu(y*scale + offset)).   grid = (N, Dp+2).
# ----------------------------------------------------------------------------
def norm_relu_pad_kernel(y_ref, sc_ref, of_ref, o_ref):
    # y_ref: (Hp, W, C); sc_ref/of_ref: (1, C) f32; o_ref: (Hp+2, W+2, C)
    dd = pl.program_id(1)
    Hp = o_ref.shape[0] - 2
    Wc = o_ref.shape[1] - 2

    o_ref[...] = jnp.zeros_like(o_ref)

    @pl.when((dd >= 1) & (dd < pl.num_programs(1) - 1))
    def _interior():
        y = y_ref[...].astype(jnp.float32)
        a = jnp.maximum(y * sc_ref[...] + of_ref[...], 0.0)
        o_ref[pl.ds(1, Hp), pl.ds(1, Wc), :] = a.astype(o_ref.dtype)


def norm_relu_pad(y, scale, offset):
    N, Dp, Hp, Wc, C = y.shape
    return pl.pallas_call(
        norm_relu_pad_kernel,
        out_shape=jax.ShapeDtypeStruct((N, Dp + 2, Hp + 2, Wc + 2, C), y.dtype),
        grid=(N, Dp + 2),
        in_specs=[
            pl.BlockSpec((None, None, Hp, Wc, C),
                         lambda n, dd: (n, jnp.minimum(jnp.maximum(dd - 1, 0), Dp - 1),
                                        0, 0, 0)),
            pl.BlockSpec((None, 1, C), lambda n, dd: (n, 0, 0)),
            pl.BlockSpec((None, 1, C), lambda n, dd: (n, 0, 0)),
        ],
        out_specs=pl.BlockSpec((None, None, Hp + 2, Wc + 2, C),
                               lambda n, dd: (n, dd, 0, 0, 0)),
        compiler_params=_compiler_params("parallel", "parallel"),
    )(y, scale, offset)


# ----------------------------------------------------------------------------
# Kernel 4: final GroupNorm(normalize)+ReLU (no padding).   grid = (N, Dp).
# ----------------------------------------------------------------------------
def norm_relu_kernel(y_ref, sc_ref, of_ref, o_ref):
    y = y_ref[...].astype(jnp.float32)
    o_ref[...] = jnp.maximum(y * sc_ref[...] + of_ref[...], 0.0).astype(o_ref.dtype)


def norm_relu(y, scale, offset):
    N, Dp, Hp, Wc, C = y.shape
    return pl.pallas_call(
        norm_relu_kernel,
        out_shape=jax.ShapeDtypeStruct((N, Dp, Hp, Wc, C), y.dtype),
        grid=(N, Dp),
        in_specs=[
            pl.BlockSpec((None, None, Hp, Wc, C), lambda n, d: (n, d, 0, 0, 0)),
            pl.BlockSpec((None, 1, C), lambda n, d: (n, 0, 0)),
            pl.BlockSpec((None, 1, C), lambda n, d: (n, 0, 0)),
        ],
        out_specs=pl.BlockSpec((None, None, Hp, Wc, C), lambda n, d: (n, d, 0, 0, 0)),
        compiler_params=_compiler_params("parallel", "parallel"),
    )(y, scale, offset)


# ----------------------------------------------------------------------------
# Down.forward
# ----------------------------------------------------------------------------
@functools.partial(jax.jit, static_argnames=("num_groups",))
def down_forward(x_ncdhw, params, num_groups=8):
    # TODO(synk): if the surrounding model can stay channels-last, these two
    # transposes (extra HBM passes) can be dropped entirely.
    x = jnp.transpose(x_ncdhw, (0, 2, 3, 4, 1))          # NCDHW -> NDHWC
    N, D, H, W, Cin = x.shape
    Dp, Hp = D // 2, H // 2
    spatial = Dp * Hp * W                                # positions per channel

    xp = maxpool_pad(x)                                  # pooled + halo-padded
    y1, s1, q1 = conv3x3x3_stats(xp, params["w1"], params["b1"])
    sc1, of1 = gn_scale_offset(s1, q1, params["gamma1"], params["beta1"],
                               num_groups, spatial)
    a1 = norm_relu_pad(y1, sc1, of1)                     # GN+ReLU, halo-padded
    y2, s2, q2 = conv3x3x3_stats(a1, params["w2"], params["b2"])
    sc2, of2 = gn_scale_offset(s2, q2, params["gamma2"], params["beta2"],
                               num_groups, spatial)
    out = norm_relu(y2, sc2, of2)                        # GN+ReLU
    return jnp.transpose(out, (0, 4, 1, 2, 3))           # NDHWC -> NCDHW


# ----------------------------------------------------------------------------
# Pure-JAX reference (NCDHW, mirrors the PyTorch ops)
# ----------------------------------------------------------------------------
def _groupnorm_ref(x, gamma, beta, G, eps=GN_EPS):
    N, C, D, H, W = x.shape
    xg = x.reshape(N, G, C // G, D, H, W)
    mean = xg.mean(axis=(2, 3, 4, 5), keepdims=True)
    var = xg.var(axis=(2, 3, 4, 5), keepdims=True)
    xn = ((xg - mean) / jnp.sqrt(var + eps)).reshape(N, C, D, H, W)
    return xn * gamma.reshape(1, C, 1, 1, 1) + beta.reshape(1, C, 1, 1, 1)


def _conv3d_ref(x, w, b):
    out = lax.conv_general_dilated(
        x, w, window_strides=(1, 1, 1),
        padding=((1, 1), (1, 1), (1, 1)),
        dimension_numbers=("NCDHW", "OIDHW", "NCDHW"))
    return out + b.reshape(1, -1, 1, 1, 1)


def down_ref(x, params, num_groups=8):
    x = lax.reduce_window(x, -jnp.inf, lax.max,
                          window_dimensions=(1, 1, 2, 2, 1),
                          window_strides=(1, 1, 2, 2, 1), padding="VALID")
    x = jnp.maximum(_groupnorm_ref(_conv3d_ref(x, params["w1"], params["b1"]),
                                   params["gamma1"], params["beta1"], num_groups), 0.0)
    x = jnp.maximum(_groupnorm_ref(_conv3d_ref(x, params["w2"], params["b2"]),
                                   params["gamma2"], params["beta2"], num_groups), 0.0)
    return x


# ----------------------------------------------------------------------------
if __name__ == "__main__":
    key = jax.random.PRNGKey(0)
    N, Cin, Cout = 2, 4, 8          # Cout must be divisible by num_groups=8
    D, H, W = 8, 8, 4
    num_groups = 8

    ks = jax.random.split(key, 8)
    x = jax.random.normal(ks[0], (N, Cin, D, H, W), jnp.float32)
    params = {
        "w1": 0.1 * jax.random.normal(ks[1], (Cout, Cin, 3, 3, 3), jnp.float32),
        "b1": 0.1 * jax.random.normal(ks[2], (Cout,), jnp.float32),
        "gamma1": 1.0 + 0.1 * jax.random.normal(ks[3], (Cout,), jnp.float32),
        "beta1": 0.1 * jax.random.normal(ks[4], (Cout,), jnp.float32),
        "w2": 0.1 * jax.random.normal(ks[5], (Cout, Cout, 3, 3, 3), jnp.float32),
        "b2": 0.1 * jax.random.normal(ks[6], (Cout,), jnp.float32),
        "gamma2": 1.0 + 0.05 * jax.random.normal(ks[7], (Cout,), jnp.float32),
        "beta2": jnp.zeros((Cout,), jnp.float32),
    }

    out = down_forward(x, params, num_groups=num_groups)
    out = jax.block_until_ready(out)
    assert out.shape == (N, Cout, D // 2, H // 2, W), out.shape

    ref = jax.block_until_ready(down_ref(x, params, num_groups=num_groups))
    np.testing.assert_allclose(np.asarray(out), np.asarray(ref),
                               rtol=2e-3, atol=2e-3)
    print("KERNEL_OK")
</pallas_src>

<mosaic_0001>
module attributes {stable_mosaic.version = 11 : i64} {
  func.func @maxpool_pad_kernel(%arg0: i32, %arg1: i32, %arg2: memref<1x1x8x4x4xf32, #tpu.memory_space<vmem>>, %arg3: memref<1x1x8x4x4xf32, #tpu.memory_space<vmem>>, %arg4: memref<1x1x6x6x4xf32, #tpu.memory_space<vmem>>) attributes {dimension_semantics = [#tpu.dimension_semantics<parallel>, #tpu.dimension_semantics<parallel>], iteration_bounds = array<i64: 2, 6>, scalar_prefetch = 0 : i64, scratch_operands = 0 : i64, tpu.core_type = #tpu.core_type<tc>, window_params = [{transform_indices = @transform_0, window_bounds = array<i64: 1, 1, 8, 4, 4>}, {transform_indices = @transform_1, window_bounds = array<i64: 1, 1, 8, 4, 4>}, {transform_indices = @transform_2, window_bounds = array<i64: 1, 1, 6, 6, 4>}]} {
    %cst = arith.constant 0.000000e+00 : f32
    %0 = vector.broadcast %cst : f32 to vector<6x6x4xf32>
    %c0 = arith.constant 0 : index
    %c0_0 = arith.constant 0 : index
    %c0_1 = arith.constant 0 : index
    %c0_2 = arith.constant 0 : index
    %c0_3 = arith.constant 0 : index
    %1 = vector.load %arg4[%c0, %c0_0, %c0_1, %c0_2, %c0_3] : memref<1x1x6x6x4xf32, #tpu.memory_space<vmem>>, vector<1x1x6x6x4xf32>
    %2 = vector.shape_cast %1 : vector<1x1x6x6x4xf32> to vector<6x6x4xf32>
    %3 = vector.shape_cast %0 : vector<6x6x4xf32> to vector<1x1x6x6x4xf32>
    tpu.vector_store %arg4[%c0, %c0_0, %c0_1, %c0_2, %c0_3], %3 {strides = array<i32>} : memref<1x1x6x6x4xf32, #tpu.memory_space<vmem>>, vector<1x1x6x6x4xf32>,
    %c1_i32 = arith.constant 1 : i32
    %4 = arith.cmpi sge, %arg1, %c1_i32 : i32
    %c5_i32 = arith.constant 5 : i32
    %5 = arith.cmpi slt, %arg1, %c5_i32 : i32
    %6 = arith.andi %4, %5 : i1
    %7 = arith.extui %6 : i1 to i32
    %c0_i32 = arith.constant 0 : i32
    %8 = arith.cmpi ne, %7, %c0_i32 : i32
    scf.if %8 {
      %c0_4 = arith.constant 0 : index
      %c0_5 = arith.constant 0 : index
      %c0_6 = arith.constant 0 : index
      %c0_7 = arith.constant 0 : index
      %c0_8 = arith.constant 0 : index
      %9 = tpu.strided_load %arg2[%c0_4, %c0_5, %c0_6, %c0_7, %c0_8] {strides = array<i32: 1, 1, 2, 1, 1>} : memref<1x1x8x4x4xf32, #tpu.memory_space<vmem>>, vector<1x1x4x4x4xf32>
      %10 = vector.shape_cast %9 : vector<1x1x4x4x4xf32> to vector<4x4x4xf32>
      %c0_9 = arith.constant 0 : index
      %c0_10 = arith.constant 0 : index
      %c1 = arith.constant 1 : index
      %c0_11 = arith.constant 0 : index
      %c0_12 = arith.constant 0 : index
      %11 = tpu.strided_load %arg2[%c0_9, %c0_10, %c1, %c0_11, %c0_12] {strides = array<i32: 1, 1, 2, 1, 1>} : memref<1x1x8x4x4xf32, #tpu.memory_space<vmem>>, vector<1x1x4x4x4xf32>
      %12 = vector.shape_cast %11 : vector<1x1x4x4x4xf32> to vector<4x4x4xf32>
      %c0_13 = arith.constant 0 : index
      %c0_14 = arith.constant 0 : index
      %c0_15 = arith.constant 0 : index
      %c0_16 = arith.constant 0 : index
      %c0_17 = arith.constant 0 : index
      %13 = tpu.strided_load %arg3[%c0_13, %c0_14, %c0_15, %c0_16, %c0_17] {strides = array<i32: 1, 1, 2, 1, 1>} : memref<1x1x8x4x4xf32, #tpu.memory_space<vmem>>, vector<1x1x4x4x4xf32>
      %14 = vector.shape_cast %13 : vector<1x1x4x4x4xf32> to vector<4x4x4xf32>
      %c0_18 = arith.constant 0 : index
      %c0_19 = arith.constant 0 : index
      %c1_20 = arith.constant 1 : index
      %c0_21 = arith.constant 0 : index
      %c0_22 = arith.constant 0 : index
      %15 = tpu.strided_load %arg3[%c0_18, %c0_19, %c1_20, %c0_21, %c0_22] {strides = array<i32: 1, 1, 2, 1, 1>} : memref<1x1x8x4x4xf32, #tpu.memory_space<vmem>>, vector<1x1x4x4x4xf32>
      %16 = vector.shape_cast %15 : vector<1x1x4x4x4xf32> to vector<4x4x4xf32>
      %17 = arith.maximumf %10, %12 : vector<4x4x4xf32>
      %18 = arith.maximumf %14, %16 : vector<4x4x4xf32>
      %19 = arith.maximumf %17, %18 : vector<4x4x4xf32>
      %c0_23 = arith.constant 0 : index
      %c0_24 = arith.constant 0 : index
      %c1_25 = arith.constant 1 : index
      %c1_26 = arith.constant 1 : index
      %c0_27 = arith.constant 0 : index
      %20 = vector.load %arg4[%c0_23, %c0_24, %c1_25, %c1_26, %c0_27] : memref<1x1x6x6x4xf32, #tpu.memory_space<vmem>>, vector<1x1x4x4x4xf32>
      %21 = vector.shape_cast %20 : vector<1x1x4x4x4xf32> to vector<4x4x4xf32>
      %22 = vector.shape_cast %19 : vector<4x4x4xf32> to vector<1x1x4x4x4xf32>
      tpu.vector_store %arg4[%c0_23, %c0_24, %c1_25, %c1_26, %c0_27], %22 {strides = array<i32>} : memref<1x1x6x6x4xf32, #tpu.memory_space<vmem>>, vector<1x1x4x4x4xf32>,
    } else {
    }
    return
  }
  func.func @transform_0(%arg0: i32, %arg1: i32) -> (i32, i32, i32, i32, i32) {
    %c1_i32 = arith.constant 1 : i32
    %0 = arith.subi %arg1, %c1_i32 : i32
    %c2_i32 = arith.constant 2 : i32
    %1 = arith.muli %c2_i32, %0 : i32
    %c0_i32 = arith.constant 0 : i32
    %2 = arith.addi %1, %c0_i32 : i32
    %c0_i32_0 = arith.constant 0 : i32
    %3 = arith.maxsi %2, %c0_i32_0 : i32
    %c7_i32 = arith.constant 7 : i32
    %4 = arith.minsi %3, %c7_i32 : i32
    %c0_i32_1 = arith.constant 0 : i32
    %c0_i32_2 = arith.constant 0 : i32
    %c0_i32_3 = arith.constant 0 : i32
    %c0_i32_4 = arith.constant 0 : i32
    return %arg0, %4, %c0_i32_1, %c0_i32_2, %c0_i32_3 : i32, i32, i32, i32, i32
  }
  func.func @transform_1(%arg0: i32, %arg1: i32) -> (i32, i32, i32, i32, i32) {
    %c1_i32 = arith.constant 1 : i32
    %0 = arith.subi %arg1, %c1_i32 : i32
    %c2_i32 = arith.constant 2 : i32
    %1 = arith.muli %c2_i32, %0 : i32
    %c1_i32_0 = arith.constant 1 : i32
    %2 = arith.addi %1, %c1_i32_0 : i32
    %c0_i32 = arith.constant 0 : i32
    %3 = arith.maxsi %2, %c0_i32 : i32
    %c7_i32 = arith.constant 7 : i32
    %4 = arith.minsi %3, %c7_i32 : i32
    %c0_i32_1 = arith.constant 0 : i32
    %c0_i32_2 = arith.constant 0 : i32
    %c0_i32_3 = arith.constant 0 : i32
    %c0_i32_4 = arith.constant 0 : i32
    return %arg0, %4, %c0_i32_1, %c0_i32_2, %c0_i32_3 : i32, i32, i32, i32, i32
  }
  func.func @transform_2(%arg0: i32, %arg1: i32) -> (i32, i32, i32, i32, i32) {
    %c0_i32 = arith.constant 0 : i32
    %c0_i32_0 = arith.constant 0 : i32
    %c0_i32_1 = arith.constant 0 : i32
    %c0_i32_2 = arith.constant 0 : i32
    return %arg0, %arg1, %c0_i32, %c0_i32_0, %c0_i32_1 : i32, i32, i32, i32, i32
  }
}

module attributes {stable_mosaic.version = 11 : i64} {
  func.func @conv3x3x3_stats_kernel(%arg0: i32, %arg1: i32, %arg2: memref<1x1x6x6x4xf32, #tpu.memory_space<vmem>>, %arg3: memref<1x1x6x6x4xf32, #tpu.memory_space<vmem>>, %arg4: memref<1x1x6x6x4xf32, #tpu.memory_space<vmem>>, %arg5: memref<27x4x8xf32, #tpu.memory_space<vmem>>, %arg6: memref<1x8xf32, #tpu.memory_space<vmem>>, %arg7: memref<1x1x4x4x8xf32, #tpu.memory_space<vmem>>, %arg8: memref<1x1x8xf32, #tpu.memory_space<vmem>>, %arg9: memref<1x1x8xf32, #tpu.memory_space<vmem>>) attributes {dimension_semantics = [#tpu.dimension_semantics<parallel>, #tpu.dimension_semantics<arbitrary>], iteration_bounds = array<i64: 2, 4>, scalar_prefetch = 0 : i64, scratch_operands = 0 : i64, tpu.core_type = #tpu.core_type<tc>, window_params = [{transform_indices = @transform_0, window_bounds = array<i64: 1, 1, 6, 6, 4>}, {transform_indices = @transform_1, window_bounds = array<i64: 1, 1, 6, 6, 4>}, {transform_indices = @transform_2, window_bounds = array<i64: 1, 1, 6, 6, 4>}, {pipeline_mode = #tpu.pipeline_mode<synchronous>, transform_indices = @transform_3, window_bounds = array<i64: 27, 4, 8>}, {pipeline_mode = #tpu.pipeline_mode<synchronous>, transform_indices = @transform_4, window_bounds = array<i64: 1, 8>}, {transform_indices = @transform_5, window_bounds = array<i64: 1, 1, 4, 4, 8>}, {transform_indices = @transform_6, window_bounds = array<i64: 1, 1, 8>}, {transform_indices = @transform_7, window_bounds = array<i64: 1, 1, 8>}]} {
    %c0_i32 = arith.constant 0 : i32
    %0 = arith.cmpi eq, %arg1, %c0_i32 : i32
    %1 = arith.extui %0 : i1 to i32
    %c0_i32_0 = arith.constant 0 : i32
    %2 = arith.cmpi ne, %1, %c0_i32_0 : i32
    scf.if %2 {
      %cst_14 = arith.constant 0.000000e+00 : f32
      %18 = vector.broadcast %cst_14 : f32 to vector<1x8xf32>
      %c0_15 = arith.constant 0 : index
      %c0_16 = arith.constant 0 : index
      %c0_17 = arith.constant 0 : index
      %19 = vector.load %arg8[%c0_15, %c0_16, %c0_17] : memref<1x1x8xf32, #tpu.memory_space<vmem>>, vector<1x1x8xf32>
      %20 = vector.shape_cast %19 : vector<1x1x8xf32> to vector<1x8xf32>
      %21 = vector.shape_cast %18 : vector<1x8xf32> to vector<1x1x8xf32>
      tpu.vector_store %arg8[%c0_15, %c0_16, %c0_17], %21 {strides = array<i32>} : memref<1x1x8xf32, #tpu.memory_space<vmem>>, vector<1x1x8xf32>,
      %cst_18 = arith.constant 0.000000e+00 : f32
      %22 = vector.broadcast %cst_18 : f32 to vector<1x8xf32>
      %c0_19 = arith.constant 0 : index
      %c0_20 = arith.constant 0 : index
      %c0_21 = arith.constant 0 : index
      %23 = vector.load %arg9[%c0_19, %c0_20, %c0_21] : memref<1x1x8xf32, #tpu.memory_space<vmem>>, vector<1x1x8xf32>
      %24 = vector.shape_cast %23 : vector<1x1x8xf32> to vector<1x8xf32>
      %25 = vector.shape_cast %22 : vector<1x8xf32> to vector<1x1x8xf32>
      tpu.vector_store %arg9[%c0_19, %c0_20, %c0_21], %25 {strides = array<i32>} : memref<1x1x8xf32, #tpu.memory_space<vmem>>, vector<1x1x8xf32>,
    } else {
    }
    %cst = arith.constant 0.000000e+00 : f32
    %3 = vector.broadcast %cst : f32 to vector<1x8xf32>
    %c0_i32_1 = arith.constant 0 : i32
    %c4_i32 = arith.constant 4 : i32
    %4 = arith.addi %c0_i32_1, %c4_i32 : i32
    %c1_i32 = arith.constant 1 : i32
    %5:2 = scf.for %arg10 = %c0_i32_1 to %4 step %c1_i32 iter_args(%arg11 = %3, %arg12 = %3) -> (vector<1x8xf32>, vector<1x8xf32>)  : i32 {
      %cst_14 = arith.constant 0.000000e+00 : f32
      %18 = vector.broadcast %cst_14 : f32 to vector<4x8xf32>
      %c0_i32_15 = arith.constant 0 : i32
      %19 = arith.addi %arg10, %c0_i32_15 : i32
      %c0_16 = arith.constant 0 : index
      %c0_17 = arith.constant 0 : index
      %20 = arith.index_cast %19 : i32 to index
      %c0_18 = arith.constant 0 : index
      %c0_19 = arith.constant 0 : index
      %21 = vector.load %arg2[%c0_16, %c0_17, %20, %c0_18, %c0_19] : memref<1x1x6x6x4xf32, #tpu.memory_space<vmem>>, vector<1x1x1x6x4xf32>
      %22 = vector.shape_cast %21 : vector<1x1x1x6x4xf32> to vector<6x4xf32>
      %23 = vector.extract_strided_slice %22 {offsets = [0, 0], sizes = [4, 4], strides = [1, 1]} : vector<6x4xf32> to vector<4x4xf32>
      %c0_20 = arith.constant 0 : index
      %c0_21 = arith.constant 0 : index
      %c0_22 = arith.constant 0 : index
      %24 = vector.load %arg5[%c0_20, %c0_21, %c0_22] : memref<27x4x8xf32, #tpu.memory_space<vmem>>, vector<1x4x8xf32>
      %25 = vector.shape_cast %24 : vector<1x4x8xf32> to vector<4x8xf32>
      %cst_23 = arith.constant dense<0.000000e+00> : vector<4x8xf32>
      %26 = tpu.matmul %23, %25, %cst_23 {dimension_numbers = #tpu.dot_dimension_numbers<[1], [0], [0], [1], [0, 0, 1, 1], [], []>} : vector<4x4xf32>, vector<4x8xf32>, vector<4x8xf32> -> vector<4x8xf32>
      %27 = arith.addf %18, %26 : vector<4x8xf32>
      %28 = vector.extract_strided_slice %22 {offsets = [1, 0], sizes = [4, 4], strides = [1, 1]} : vector<6x4xf32> to vector<4x4xf32>
      %c1 = arith.constant 1 : index
      %c0_24 = arith.constant 0 : index
      %c0_25 = arith.constant 0 : index
      %29 = vector.load %arg5[%c1, %c0_24, %c0_25] : memref<27x4x8xf32, #tpu.memory_space<vmem>>, vector<1x4x8xf32>
      %30 = vector.shape_cast %29 : vector<1x4x8xf32> to vector<4x8xf32>
      %cst_26 = arith.constant dense<0.000000e+00> : vector<4x8xf32>
      %31 = tpu.matmul %28, %30, %cst_26 {dimension_numbers = #tpu.dot_dimension_numbers<[1], [0], [0], [1], [0, 0, 1, 1], [], []>} : vector<4x4xf32>, vector<4x8xf32>, vector<4x8xf32> -> vector<4x8xf32>
      %32 = arith.addf %27, %31 : vector<4x8xf32>
      %33 = vector.extract_strided_slice %22 {offsets = [2, 0], sizes = [4, 4], strides = [1, 1]} : vector<6x4xf32> to vector<4x4xf32>
      %c2 = arith.constant 2 : index
      %c0_27 = arith.constant 0 : index
      %c0_28 = arith.constant 0 : index
      %34 = vector.load %arg5[%c2, %c0_27, %c0_28] : memref<27x4x8xf32, #tpu.memory_space<vmem>>, vector<1x4x8xf32>
      %35 = vector.shape_cast %34 : vector<1x4x8xf32> to vector<4x8xf32>
      %cst_29 = arith.constant dense<0.000000e+00> : vector<4x8xf32>
      %36 = tpu.matmul %33, %35, %cst_29 {dimension_numbers = #tpu.dot_dimension_numbers<[1], [0], [0], [1], [0, 0, 1, 1], [], []>} : vector<4x4xf32>, vector<4x8xf32>, vector<4x8xf32> -> vector<4x8xf32>
      %37 = arith.addf %32, %36 : vector<4x8xf32>
      %c1_i32_30 = arith.constant 1 : i32
      %38 = arith.addi %arg10, %c1_i32_30 : i32
      %c0_31 = arith.constant 0 : index
      %c0_32 = arith.constant 0 : index
      %39 = arith.index_cast %38 : i32 to index
      %c0_33 = arith.constant 0 : index
      %c0_34 = arith.constant 0 : index
      %40 = vector.load %arg2[%c0_31, %c0_32, %39, %c0_33, %c0_34] : memref<1x1x6x6x4xf32, #tpu.memory_space<vmem>>, vector<1x1x1x6x4xf32>
      %41 = vector.shape_cast %40 : vector<1x1x1x6x4xf32> to vector<6x4xf32>
      %42 = vector.extract_strided_slice %41 {offsets = [0, 0], sizes = [4, 4], strides = [1, 1]} : vector<6x4xf32> to vector<4x4xf32>
      %c3 = arith.constant 3 : index
      %c0_35 = arith.constant 0 : index
      %c0_36 = arith.constant 0 : index
      %43 = vector.load %arg5[%c3, %c0_35, %c0_36] : memref<27x4x8xf32, #tpu.memory_space<vmem>>, vector<1x4x8xf32>
      %44 = vector.shape_cast %43 : vector<1x4x8xf32> to vector<4x8xf32>
      %cst_37 = arith.constant dense<0.000000e+00> : vector<4x8xf32>
      %45 = tpu.matmul %42, %44, %cst_37 {dimension_numbers = #tpu.dot_dimension_numbers<[1], [0], [0], [1], [0, 0, 1, 1], [], []>} : vector<4x4xf32>, vector<4x8xf32>, vector<4x8xf32> -> vector<4x8xf32>
      %46 = arith.addf %37, %45 : vector<4x8xf32>
      %47 = vector.extract_strided_slice %41 {offsets = [1, 0], sizes = [4, 4], strides = [1, 1]} : vector<6x4xf32> to vector<4x4xf32>
      %c4 = arith.constant 4 : index
      %c0_38 = arith.constant 0 : index
      %c0_39 = arith.constant 0 : index
      %48 = vector.load %arg5[%c4, %c0_38, %c0_39] : memref<27x4x8xf32, #tpu.memory_space<vmem>>, vector<1x4x8xf32>
      %49 = vector.shape_cast %48 : vector<1x4x8xf32> to vector<4x8xf32>
      %cst_40 = arith.constant dense<0.000000e+00> : vector<4x8xf32>
      %50 = tpu.matmul %47, %49, %cst_40 {dimension_numbers = #tpu.dot_dimension_numbers<[1], [0], [0], [1], [0, 0, 1, 1], [], []>} : vector<4x4xf32>, vector<4x8xf32>, vector<4x8xf32> -> vector<4x8xf32>
      %51 = arith.addf %46, %50 : vector<4x8xf32>
      %52 = vector.extract_strided_slice %41 {offsets = [2, 0], sizes = [4, 4], strides = [1, 1]} : vector<6x4xf32> to vector<4x4xf32>
      %c5 = arith.constant 5 : index
      %c0_41 = arith.constant 0 : index
      %c0_42 = arith.constant 0 : index
      %53 = vector.load %arg5[%c5, %c0_41, %c0_42] : memref<27x4x8xf32, #tpu.memory_space<vmem>>, vector<1x4x8xf32>
      %54 = vector.shape_cast %53 : vector<1x4x8xf32> to vector<4x8xf32>
      %cst_43 = arith.constant dense<0.000000e+00> : vector<4x8xf32>
      %55 = tpu.matmul %52, %54, %cst_43 {dimension_numbers = #tpu.dot_dimension_numbers<[1], [0], [0], [1], [0, 0, 1, 1], [], []>} : vector<4x4xf32>, vector<4x8xf32>, vector<4x8xf32> -> vector<4x8xf32>
      %56 = arith.addf %51, %55 : vector<4x8xf32>
      %c2_i32 = arith.constant 2 : i32
      %57 = arith.addi %arg10, %c2_i32 : i32
      %c0_44 = arith.constant 0 : index
      %c0_45 = arith.constant 0 : index
      %58 = arith.index_cast %57 : i32 to index
      %c0_46 = arith.constant 0 : index
      %c0_47 = arith.constant 0 : index
      %59 = vector.load %arg2[%c0_44, %c0_45, %58, %c0_46, %c0_47] : memref<1x1x6x6x4xf32, #tpu.memory_space<vmem>>, vector<1x1x1x6x4xf32>
      %60 = vector.shape_cast %59 : vector<1x1x1x6x4xf32> to vector<6x4xf32>
      %61 = vector.extract_strided_slice %60 {offsets = [0, 0], sizes = [4, 4], strides = [1, 1]} : vector<6x4xf32> to vector<4x4xf32>
      %c6 = arith.constant 6 : index
      %c0_48 = arith.constant 0 : index
      %c0_49 = arith.constant 0 : index
      %62 = vector.load %arg5[%c6, %c0_48, %c0_49] : memref<27x4x8xf32, #tpu.memory_space<vmem>>, vector<1x4x8xf32>
      %63 = vector.shape_cast %62 : vector<1x4x8xf32> to vector<4x8xf32>
      %cst_50 = arith.constant dense<0.000000e+00> : vector<4x8xf32>
      %64 = tpu.matmul %61, %63, %cst_50 {dimension_numbers = #tpu.dot_dimension_numbers<[1], [0], [0], [1], [0, 0, 1, 1], [], []>} : vector<4x4xf32>, vector<4x8xf32>, vector<4x8xf32> -> vector<4x8xf32>
      %65 = arith.addf %56, %64 : vector<4x8xf32>
      %66 = vector.extract_strided_slice %60 {offsets = [1, 0], sizes = [4, 4], strides = [1, 1]} : vector<6x4xf32> to vector<4x4xf32>
      %c7 = arith.constant 7 : index
      %c0_51 = arith.constant 0 : index
      %c0_52 = arith.constant 0 : index
      %67 = vector.load %arg5[%c7, %c0_51, %c0_52] : memref<27x4x8xf32, #tpu.memory_space<vmem>>, vector<1x4x8xf32>
      %68 = vector.shape_cast %67 : vector<1x4x8xf32> to vector<4x8xf32>
      %cst_53 = arith.constant dense<0.000000e+00> : vector<4x8xf32>
      %69 = tpu.matmul %66, %68, %cst_53 {dimension_numbers = #tpu.dot_dimension_numbers<[1], [0], [0], [1], [0, 0, 1, 1], [], []>} : vector<4x4xf32>, vector<4x8xf32>, vector<4x8xf32> -> vector<4x8xf32>
      %70 = arith.addf %65, %69 : vector<4x8xf32>
      %71 = vector.extract_strided_slice %60 {offsets = [2, 0], sizes = [4, 4], strides = [1, 1]} : vector<6x4xf32> to vector<4x4xf32>
      %c8 = arith.constant 8 : index
      %c0_54 = arith.constant 0 : index
      %c0_55 = arith.constant 0 : index
      %72 = vector.load %arg5[%c8, %c0_54, %c0_55] : memref<27x4x8xf32, #tpu.memory_space<vmem>>, vector<1x4x8xf32>
      %73 = vector.shape_cast %72 : vector<1x4x8xf32> to vector<4x8xf32>
      %cst_56 = arith.constant dense<0.000000e+00> : vector<4x8xf32>
      %74 = tpu.matmul %71, %73, %cst_56 {dimension_numbers = #tpu.dot_dimension_numbers<[1], [0], [0], [1], [0, 0, 1, 1], [], []>} : vector<4x4xf32>, vector<4x8xf32>, vector<4x8xf32> -> vector<4x8xf32>
      %75 = arith.addf %70, %74 : vector<4x8xf32>
      %c0_i32_57 = arith.constant 0 : i32
      %76 = arith.addi %arg10, %c0_i32_57 : i32
      %c0_58 = arith.constant 0 : index
      %c0_59 = arith.constant 0 : index
      %77 = arith.index_cast %76 : i32 to index
      %c0_60 = arith.constant 0 : index
      %c0_61 = arith.constant 0 : index
      %78 = vector.load %arg3[%c0_58, %c0_59, %77, %c0_60, %c0_61] : memref<1x1x6x6x4xf32, #tpu.memory_space<vmem>>, vector<1x1x1x6x4xf32>
      %79 = vector.shape_cast %78 : vector<1x1x1x6x4xf32> to vector<6x4xf32>
      %80 = vector.extract_strided_slice %79 {offsets = [0, 0], sizes = [4, 4], strides = [1, 1]} : vector<6x4xf32> to vector<4x4xf32>
      %c9 = arith.constant 9 : index
      %c0_62 = arith.constant 0 : index
      %c0_63 = arith.constant 0 : index
      %81 = vector.load %arg5[%c9, %c0_62, %c0_63] : memref<27x4x8xf32, #tpu.memory_space<vmem>>, vector<1x4x8xf32>
      %82 = vector.shape_cast %81 : vector<1x4x8xf32> to vector<4x8xf32>
      %cst_64 = arith.constant dense<0.000000e+00> : vector<4x8xf32>
      %83 = tpu.matmul %80, %82, %cst_64 {dimension_numbers = #tpu.dot_dimension_numbers<[1], [0], [0], [1], [0, 0, 1, 1], [], []>} : vector<4x4xf32>, vector<4x8xf32>, vector<4x8xf32> -> vector<4x8xf32>
      %84 = arith.addf %75, %83 : vector<4x8xf32>
      %85 = vector.extract_strided_slice %79 {offsets = [1, 0], sizes = [4, 4], strides = [1, 1]} : vector<6x4xf32> to vector<4x4xf32>
      %c10 = arith.constant 10 : index
      %c0_65 = arith.constant 0 : index
      %c0_66 = arith.constant 0 : index
      %86 = vector.load %arg5[%c10, %c0_65, %c0_66] : memref<27x4x8xf32, #tpu.memory_space<vmem>>, vector<1x4x8xf32>
      %87 = vector.shape_cast %86 : vector<1x4x8xf32> to vector<4x8xf32>
      %cst_67 = arith.constant dense<0.000000e+00> : vector<4x8xf32>
      %88 = tpu.matmul %85, %87, %cst_67 {dimension_numbers = #tpu.dot_dimension_numbers<[1], [0], [0], [1], [0, 0, 1, 1], [], []>} : vector<4x4xf32>, vector<4x8xf32>, vector<4x8xf32> -> vector<4x8xf32>
      %89 = arith.addf %84, %88 : vector<4x8xf32>
      %90 = vector.extract_strided_slice %79 {offsets = [2, 0], sizes = [4, 4], strides = [1, 1]} : vector<6x4xf32> to vector<4x4xf32>
      %c11 = arith.constant 11 : index
      %c0_68 = arith.constant 0 : index
      %c0_69 = arith.constant 0 : index
      %91 = vector.load %arg5[%c11, %c0_68, %c0_69] : memref<27x4x8xf32, #tpu.memory_space<vmem>>, vector<1x4x8xf32>
      %92 = vector.shape_cast %91 : vector<1x4x8xf32> to vector<4x8xf32>
      %cst_70 = arith.constant dense<0.000000e+00> : vector<4x8xf32>
      %93 = tpu.matmul %90, %92, %cst_70 {dimension_numbers = #tpu.dot_dimension_numbers<[1], [0], [0], [1], [0, 0, 1, 1], [], []>} : vector<4x4xf32>, vector<4x8xf32>, vector<4x8xf32> -> vector<4x8xf32>
      %94 = arith.addf %89, %93 : vector<4x8xf32>
      %c1_i32_71 = arith.constant 1 : i32
      %95 = arith.addi %arg10, %c1_i32_71 : i32
      %c0_72 = arith.constant 0 : index
      %c0_73 = arith.constant 0 : index
      %96 = arith.index_cast %95 : i32 to index
      %c0_74 = arith.constant 0 : index
      %c0_75 = arith.constant 0 : index
      %97 = vector.load %arg3[%c0_72, %c0_73, %96, %c0_74, %c0_75] : memref<1x1x6x6x4xf32, #tpu.memory_space<vmem>>, vector<1x1x1x6x4xf32>
      %98 = vector.shape_cast %97 : vector<1x1x1x6x4xf32> to vector<6x4xf32>
      %99 = vector.extract_strided_slice %98 {offsets = [0, 0], sizes = [4, 4], strides = [1, 1]} : vector<6x4xf32> to vector<4x4xf32>
      %c12 = arith.constant 12 : index
      %c0_76 = arith.constant 0 : index
      %c0_77 = arith.constant 0 : index
      %100 = vector.load %arg5[%c12, %c0_76, %c0_77] : memref<27x4x8xf32, #tpu.memory_space<vmem>>, vector<1x4x8xf32>
      %101 = vector.shape_cast %100 : vector<1x4x8xf32> to vector<4x8xf32>
      %cst_78 = arith.constant dense<0.000000e+00> : vector<4x8xf32>
      %102 = tpu.matmul %99, %101, %cst_78 {dimension_numbers = #tpu.dot_dimension_numbers<[1], [0], [0], [1], [0, 0, 1, 1], [], []>} : vector<4x4xf32>, vector<4x8xf32>, vector<4x8xf32> -> vector<4x8xf32>
      %103 = arith.addf %94, %102 : vector<4x8xf32>
      %104 = vector.extract_strided_slice %98 {offsets = [1, 0], sizes = [4, 4], strides = [1, 1]} : vector<6x4xf32> to vector<4x4xf32>
      %c13 = arith.constant 13 : index
      %c0_79 = arith.constant 0 : index
      %c0_80 = arith.constant 0 : index
      %105 = vector.load %arg5[%c13, %c0_79, %c0_80] : memref<27x4x8xf32, #tpu.memory_space<vmem>>, vector<1x4x8xf32>
      %106 = vector.shape_cast %105 : vector<1x4x8xf32> to vector<4x8xf32>
      %cst_81 = arith.constant dense<0.000000e+00> : vector<4x8xf32>
      %107 = tpu.matmul %104, %106, %cst_81 {dimension_numbers = #tpu.dot_dimension_numbers<[1], [0], [0], [1], [0, 0, 1, 1], [], []>} : vector<4x4xf32>, vector<4x8xf32>, vector<4x8xf32> -> vector<4x8xf32>
      %108 = arith.addf %103, %107 : vector<4x8xf32>
      %109 = vector.extract_strided_slice %98 {offsets = [2, 0], sizes = [4, 4], strides = [1, 1]} : vector<6x4xf32> to vector<4x4xf32>
      %c14 = arith.constant 14 : index
      %c0_82 = arith.constant 0 : index
      %c0_83 = arith.constant 0 : index
      %110 = vector.load %arg5[%c14, %c0_82, %c0_83] : memref<27x4x8xf32, #tpu.memory_space<vmem>>, vector<1x4x8xf32>
      %111 = vector.shape_cast %110 : vector<1x4x8xf32> to vector<4x8xf32>
      %cst_84 = arith.constant dense<0.000000e+00> : vector<4x8xf32>
      %112 = tpu.matmul %109, %111, %cst_84 {dimension_numbers = #tpu.dot_dimension_numbers<[1], [0], [0], [1], [0, 0, 1, 1], [], []>} : vector<4x4xf32>, vector<4x8xf32>, vector<4x8xf32> -> vector<4x8xf32>
      %113 = arith.addf %108, %112 : vector<4x8xf32>
      %c2_i32_85 = arith.constant 2 : i32
      %114 = arith.addi %arg10, %c2_i32_85 : i32
      %c0_86 = arith.constant 0 : index
      %c0_87 = arith.constant 0 : index
      %115 = arith.index_cast %114 : i32 to index
      %c0_88 = arith.constant 0 : index
      %c0_89 = arith.constant 0 : index
      %116 = vector.load %arg3[%c0_86, %c0_87, %115, %c0_88, %c0_89] : memref<1x1x6x6x4xf32, #tpu.memory_space<vmem>>, vector<1x1x1x6x4xf32>
      %117 = vector.shape_cast %116 : vector<1x1x1x6x4xf32> to vector<6x4xf32>
      %118 = vector.extract_strided_slice %117 {offsets = [0, 0], sizes = [4, 4], strides = [1, 1]} : vector<6x4xf32> to vector<4x4xf32>
      %c15 = arith.constant 15 : index
      %c0_90 = arith.constant 0 : index
      %c0_91 = arith.constant 0 : index
      %119 = vector.load %arg5[%c15, %c0_90, %c0_91] : memref<27x4x8xf32, #tpu.memory_space<vmem>>, vector<1x4x8xf32>
      %120 = vector.shape_cast %119 : vector<1x4x8xf32> to vector<4x8xf32>
      %cst_92 = arith.constant dense<0.000000e+00> : vector<4x8xf32>
      %121 = tpu.matmul %118, %120, %cst_92 {dimension_numbers = #tpu.dot_dimension_numbers<[1], [0], [0], [1], [0, 0, 1, 1], [], []>} : vector<4x4xf32>, vector<4x8xf32>, vector<4x8xf32> -> vector<4x8xf32>
      %122 = arith.addf %113, %121 : vector<4x8xf32>
      %123 = vector.extract_strided_slice %117 {offsets = [1, 0], sizes = [4, 4], strides = [1, 1]} : vector<6x4xf32> to vector<4x4xf32>
      %c16 = arith.constant 16 : index
      %c0_93 = arith.constant 0 : index
      %c0_94 = arith.constant 0 : index
      %124 = vector.load %arg5[%c16, %c0_93, %c0_94] : memref<27x4x8xf32, #tpu.memory_space<vmem>>, vector<1x4x8xf32>
      %125 = vector.shape_cast %124 : vector<1x4x8xf32> to vector<4x8xf32>
      %cst_95 = arith.constant dense<0.000000e+00> : vector<4x8xf32>
      %126 = tpu.matmul %123, %125, %cst_95 {dimension_numbers = #tpu.dot_dimension_numbers<[1], [0], [0], [1], [0, 0, 1, 1], [], []>} : vector<4x4xf32>, vector<4x8xf32>, vector<4x8xf32> -> vector<4x8xf32>
      %127 = arith.addf %122, %126 : vector<4x8xf32>
      %128 = vector.extract_strided_slice %117 {offsets = [2, 0], sizes = [4, 4], strides = [1, 1]} : vector<6x4xf32> to vector<4x4xf32>
      %c17 = arith.constant 17 : index
      %c0_96 = arith.constant 0 : index
      %c0_97 = arith.constant 0 : index
      %129 = vector.load %arg5[%c17, %c0_96, %c0_97] : memref<27x4x8xf32, #tpu.memory_space<vmem>>, vector<1x4x8xf32>
      %130 = vector.shape_cast %129 : vector<1x4x8xf32> to vector<4x8xf32>
      %cst_98 = arith.constant dense<0.000000e+00> : vector<4x8xf32>
      %131 = tpu.matmul %128, %130, %cst_98 {dimension_numbers = #tpu.dot_dimension_numbers<[1], [0], [0], [1], [0, 0, 1, 1], [], []>} : vector<4x4xf32>, vector<4x8xf32>, vector<4x8xf32> -> vector<4x8xf32>
      %132 = arith.addf %127, %131 : vector<4x8xf32>
      %c0_i32_99 = arith.constant 0 : i32
      %133 = arith.addi %arg10, %c0_i32_99 : i32
      %c0_100 = arith.constant 0 : index
      %c0_101 = arith.constant 0 : index
      %134 = arith.index_cast %133 : i32 to index
      %c0_102 = arith.constant 0 : index
      %c0_103 = arith.constant 0 : index
      %135 = vector.load %arg4[%c0_100, %c0_101, %134, %c0_102, %c0_103] : memref<1x1x6x6x4xf32, #tpu.memory_space<vmem>>, vector<1x1x1x6x4xf32>
      %136 = vector.shape_cast %135 : vector<1x1x1x6x4xf32> to vector<6x4xf32>
      %137 = vector.extract_strided_slice %136 {offsets = [0, 0], sizes = [4, 4], strides = [1, 1]} : vector<6x4xf32> to vector<4x4xf32>
      %c18 = arith.constant 18 : index
      %c0_104 = arith.constant 0 : index
      %c0_105 = arith.constant 0 : index
      %138 = vector.load %arg5[%c18, %c0_104, %c0_105] : memref<27x4x8xf32, #tpu.memory_space<vmem>>, vector<1x4x8xf32>
      %139 = vector.shape_cast %138 : vector<1x4x8xf32> to vector<4x8xf32>
      %cst_106 = arith.constant dense<0.000000e+00> : vector<4x8xf32>
      %140 = tpu.matmul %137, %139, %cst_106 {dimension_numbers = #tpu.dot_dimension_numbers<[1], [0], [0], [1], [0, 0, 1, 1], [], []>} : vector<4x4xf32>, vector<4x8xf32>, vector<4x8xf32> -> vector<4x8xf32>
      %141 = arith.addf %132, %140 : vector<4x8xf32>
      %142 = vector.extract_strided_slice %136 {offsets = [1, 0], sizes = [4, 4], strides = [1, 1]} : vector<6x4xf32> to vector<4x4xf32>
      %c19 = arith.constant 19 : index
      %c0_107 = arith.constant 0 : index
      %c0_108 = arith.constant 0 : index
      %143 = vector.load %arg5[%c19, %c0_107, %c0_108] : memref<27x4x8xf32, #tpu.memory_space<vmem>>, vector<1x4x8xf32>
      %144 = vector.shape_cast %143 : vector<1x4x8xf32> to vector<4x8xf32>
      %cst_109 = arith.constant dense<0.000000e+00> : vector<4x8xf32>
      %145 = tpu.matmul %142, %144, %cst_109 {dimension_numbers = #tpu.dot_dimension_numbers<[1], [0], [0], [1], [0, 0, 1, 1], [], []>} : vector<4x4xf32>, vector<4x8xf32>, vector<4x8xf32> -> vector<4x8xf32>
      %146 = arith.addf %141, %145 : vector<4x8xf32>
      %147 = vector.extract_strided_slice %136 {offsets = [2, 0], sizes = [4, 4], strides = [1, 1]} : vector<6x4xf32> to vector<4x4xf32>
      %c20 = arith.constant 20 : index
      %c0_110 = arith.constant 0 : index
      %c0_111 = arith.constant 0 : index
      %148 = vector.load %arg5[%c20, %c0_110, %c0_111] : memref<27x4x8xf32, #tpu.memory_space<vmem>>, vector<1x4x8xf32>
      %149 = vector.shape_cast %148 : vector<1x4x8xf32> to vector<4x8xf32>
      %cst_112 = arith.constant dense<0.000000e+00> : vector<4x8xf32>
      %150 = tpu.matmul %147, %149, %cst_112 {dimension_numbers = #tpu.dot_dimension_numbers<[1], [0], [0], [1], [0, 0, 1, 1], [], []>} : vector<4x4xf32>, vector<4x8xf32>, vector<4x8xf32> -> vector<4x8xf32>
      %151 = arith.addf %146, %150 : vector<4x8xf32>
      %c1_i32_113 = arith.constant 1 : i32
      %152 = arith.addi %arg10, %c1_i32_113 : i32
      %c0_114 = arith.constant 0 : index
      %c0_115 = arith.constant 0 : index
      %153 = arith.index_cast %152 : i32 to index
      %c0_116 = arith.constant 0 : index
      %c0_117 = arith.constant 0 : index
      %154 = vector.load %arg4[%c0_114, %c0_115, %153, %c0_116, %c0_117] : memref<1x1x6x6x4xf32, #tpu.memory_space<vmem>>, vector<1x1x1x6x4xf32>
      %155 = vector.shape_cast %154 : vector<1x1x1x6x4xf32> to vector<6x4xf32>
      %156 = vector.extract_strided_slice %155 {offsets = [0, 0], sizes = [4, 4], strides = [1, 1]} : vector<6x4xf32> to vector<4x4xf32>
      %c21 = arith.constant 21 : index
      %c0_118 = arith.constant 0 : index
      %c0_119 = arith.constant 0 : index
      %157 = vector.load %arg5[%c21, %c0_118, %c0_119] : memref<27x4x8xf32, #tpu.memory_space<vmem>>, vector<1x4x8xf32>
      %158 = vector.shape_cast %157 : vector<1x4x8xf32> to vector<4x8xf32>
      %cst_120 = arith.constant dense<0.000000e+00> : vector<4x8xf32>
      %159 = tpu.matmul %156, %158, %cst_120 {dimension_numbers = #tpu.dot_dimension_numbers<[1], [0], [0], [1], [0, 0, 1, 1], [], []>} : vector<4x4xf32>, vector<4x8xf32>, vector<4x8xf32> -> vector<4x8xf32>
      %160 = arith.addf %151, %159 : vector<4x8xf32>
      %161 = vector.extract_strided_slice %155 {offsets = [1, 0], sizes = [4, 4], strides = [1, 1]} : vector<6x4xf32> to vector<4x4xf32>
      %c22 = arith.constant 22 : index
      %c0_121 = arith.constant 0 : index
      %c0_122 = arith.constant 0 : index
      %162 = vector.load %arg5[%c22, %c0_121, %c0_122] : memref<27x4x8xf32, #tpu.memory_space<vmem>>, vector<1x4x8xf32>
      %163 = vector.shape_cast %162 : vector<1x4x8xf32> to vector<4x8xf32>
      %cst_123 = arith.constant dense<0.000000e+00> : vector<4x8xf32>
      %164 = tpu.matmul %161, %163, %cst_123 {dimension_numbers = #tpu.dot_dimension_numbers<[1], [0], [0], [1], [0, 0, 1, 1], [], []>} : vector<4x4xf32>, vector<4x8xf32>, vector<4x8xf32> -> vector<4x8xf32>
      %165 = arith.addf %160, %164 : vector<4x8xf32>
      %166 = vector.extract_strided_slice %155 {offsets = [2, 0], sizes = [4, 4], strides = [1, 1]} : vector<6x4xf32> to vector<4x4xf32>
      %c23 = arith.constant 23 : index
      %c0_124 = arith.constant 0 : index
      %c0_125 = arith.constant 0 : index
      %167 = vector.load %arg5[%c23, %c0_124, %c0_125] : memref<27x4x8xf32, #tpu.memory_space<vmem>>, vector<1x4x8xf32>
      %168 = vector.shape_cast %167 : vector<1x4x8xf32> to vector<4x8xf32>
      %cst_126 = arith.constant dense<0.000000e+00> : vector<4x8xf32>
      %169 = tpu.matmul %166, %168, %cst_126 {dimension_numbers = #tpu.dot_dimension_numbers<[1], [0], [0], [1], [0, 0, 1, 1], [], []>} : vector<4x4xf32>, vector<4x8xf32>, vector<4x8xf32> -> vector<4x8xf32>
      %170 = arith.addf %165, %169 : vector<4x8xf32>
      %c2_i32_127 = arith.constant 2 : i32
      %171 = arith.addi %arg10, %c2_i32_127 : i32
      %c0_128 = arith.constant 0 : index
      %c0_129 = arith.constant 0 : index
      %172 = arith.index_cast %171 : i32 to index
      %c0_130 = arith.constant 0 : index
      %c0_131 = arith.constant 0 : index
      %173 = vector.load %arg4[%c0_128, %c0_129, %172, %c0_130, %c0_131] : memref<1x1x6x6x4xf32, #tpu.memory_space<vmem>>, vector<1x1x1x6x4xf32>
      %174 = vector.shape_cast %173 : vector<1x1x1x6x4xf32> to vector<6x4xf32>
      %175 = vector.extract_strided_slice %174 {offsets = [0, 0], sizes = [4, 4], strides = [1, 1]} : vector<6x4xf32> to vector<4x4xf32>
      %c24 = arith.constant 24 : index
      %c0_132 = arith.constant 0 : index
      %c0_133 = arith.constant 0 : index
      %176 = vector.load %arg5[%c24, %c0_132, %c0_133] : memref<27x4x8xf32, #tpu.memory_space<vmem>>, vector<1x4x8xf32>
      %177 = vector.shape_cast %176 : vector<1x4x8xf32> to vector<4x8xf32>
      %cst_134 = arith.constant dense<0.000000e+00> : vector<4x8xf32>
      %178 = tpu.matmul %175, %177, %cst_134 {dimension_numbers = #tpu.dot_dimension_numbers<[1], [0], [0], [1], [0, 0, 1, 1], [], []>} : vector<4x4xf32>, vector<4x8xf32>, vector<4x8xf32> -> vector<4x8xf32>
      %179 = arith.addf %170, %178 : vector<4x8xf32>
      %180 = vector.extract_strided_slice %174 {offsets = [1, 0], sizes = [4, 4], strides = [1, 1]} : vector<6x4xf32> to vector<4x4xf32>
      %c25 = arith.constant 25 : index
      %c0_135 = arith.constant 0 : index
      %c0_136 = arith.constant 0 : index
      %181 = vector.load %arg5[%c25, %c0_135, %c0_136] : memref<27x4x8xf32, #tpu.memory_space<vmem>>, vector<1x4x8xf32>
      %182 = vector.shape_cast %181 : vector<1x4x8xf32> to vector<4x8xf32>
      %cst_137 = arith.constant dense<0.000000e+00> : vector<4x8xf32>
      %183 = tpu.matmul %180, %182, %cst_137 {dimension_numbers = #tpu.dot_dimension_numbers<[1], [0], [0], [1], [0, 0, 1, 1], [], []>} : vector<4x4xf32>, vector<4x8xf32>, vector<4x8xf32> -> vector<4x8xf32>
      %184 = arith.addf %179, %183 : vector<4x8xf32>
      %185 = vector.extract_strided_slice %174 {offsets = [2, 0], sizes = [4, 4], strides = [1, 1]} : vector<6x4xf32> to vector<4x4xf32>
      %c26 = arith.constant 26 : index
      %c0_138 = arith.constant 0 : index
      %c0_139 = arith.constant 0 : index
      %186 = vector.load %arg5[%c26, %c0_138, %c0_139] : memref<27x4x8xf32, #tpu.memory_space<vmem>>, vector<1x4x8xf32>
      %187 = vector.shape_cast %186 : vector<1x4x8xf32> to vector<4x8xf32>
      %cst_140 = arith.constant dense<0.000000e+00> : vector<4x8xf32>
      %188 = tpu.matmul %185, %187, %cst_140 {dimension_numbers = #tpu.dot_dimension_numbers<[1], [0], [0], [1], [0, 0, 1, 1], [], []>} : vector<4x4xf32>, vector<4x8xf32>, vector<4x8xf32> -> vector<4x8xf32>
      %189 = arith.addf %184, %188 : vector<4x8xf32>
      %c0_141 = arith.constant 0 : index
      %c0_142 = arith.constant 0 : index
      %190 = vector.load %arg6[%c0_141, %c0_142] : memref<1x8xf32, #tpu.memory_space<vmem>>, vector<1x8xf32>
      %191 = vector.broadcast %190 : vector<1x8xf32> to vector<4x8xf32>
      %192 = arith.addf %189, %191 : vector<4x8xf32>
      %c0_143 = arith.constant 0 : index
      %c0_144 = arith.constant 0 : index
      %193 = arith.index_cast %arg10 : i32 to index
      %c0_145 = arith.constant 0 : index
      %c0_146 = arith.constant 0 : index
      %194 = vector.load %arg7[%c0_143, %c0_144, %193, %c0_145, %c0_146] : memref<1x1x4x4x8xf32, #tpu.memory_space<vmem>>, vector<1x1x1x4x8xf32>
      %195 = vector.shape_cast %194 : vector<1x1x1x4x8xf32> to vector<4x8xf32>
      %196 = vector.shape_cast %192 : vector<4x8xf32> to vector<1x1x1x4x8xf32>
      tpu.vector_store %arg7[%c0_143, %c0_144, %193, %c0_145, %c0_146], %196 {strides = array<i32>} : memref<1x1x4x4x8xf32, #tpu.memory_space<vmem>>, vector<1x1x1x4x8xf32>,
      %cst_147 = arith.constant dense<0.000000e+00> : vector<8xf32>
      %197 = vector.multi_reduction <add>, %192, %cst_147 [0] : vector<4x8xf32> to vector<8xf32>
      %198 = vector.shape_cast %197 : vector<8xf32> to vector<1x8xf32>
      %199 = arith.addf %arg11, %198 : vector<1x8xf32>
      %200 = arith.mulf %192, %192 : vector<4x8xf32>
      %cst_148 = arith.constant dense<0.000000e+00> : vector<8xf32>
      %201 = vector.multi_reduction <add>, %200, %cst_148 [0] : vector<4x8xf32> to vector<8xf32>
      %202 = vector.shape_cast %201 : vector<8xf32> to vector<1x8xf32>
      %203 = arith.addf %arg12, %202 : vector<1x8xf32>
      scf.yield %199, %203 : vector<1x8xf32>, vector<1x8xf32>
    }
    %c4_i32_2 = arith.constant 4 : i32
    %c0 = arith.constant 0 : index
    %c0_3 = arith.constant 0 : index
    %c0_4 = arith.constant 0 : index
    %6 = vector.load %arg8[%c0, %c0_3, %c0_4] : memref<1x1x8xf32, #tpu.memory_space<vmem>>, vector<1x1x8xf32>
    %7 = vector.shape_cast %6 : vector<1x1x8xf32> to vector<1x8xf32>
    %8 = arith.addf %7, %5#0 : vector<1x8xf32>
    %c0_5 = arith.constant 0 : index
    %c0_6 = arith.constant 0 : index
    %c0_7 = arith.constant 0 : index
    %9 = vector.load %arg8[%c0_5, %c0_6, %c0_7] : memref<1x1x8xf32, #tpu.memory_space<vmem>>, vector<1x1x8xf32>
    %10 = vector.shape_cast %9 : vector<1x1x8xf32> to vector<1x8xf32>
    %11 = vector.shape_cast %8 : vector<1x8xf32> to vector<1x1x8xf32>
    tpu.vector_store %arg8[%c0_5, %c0_6, %c0_7], %11 {strides = array<i32>} : memref<1x1x8xf32, #tpu.memory_space<vmem>>, vector<1x1x8xf32>,
    %c0_8 = arith.constant 0 : index
    %c0_9 = arith.constant 0 : index
    %c0_10 = arith.constant 0 : index
    %12 = vector.load %arg9[%c0_8, %c0_9, %c0_10] : memref<1x1x8xf32, #tpu.memory_space<vmem>>, vector<1x1x8xf32>
    %13 = vector.shape_cast %12 : vector<1x1x8xf32> to vector<1x8xf32>
    %14 = arith.addf %13, %5#1 : vector<1x8xf32>
    %c0_11 = arith.constant 0 : index
    %c0_12 = arith.constant 0 : index
    %c0_13 = arith.constant 0 : index
    %15 = vector.load %arg9[%c0_11, %c0_12, %c0_13] : memref<1x1x8xf32, #tpu.memory_space<vmem>>, vector<1x1x8xf32>
    %16 = vector.shape_cast %15 : vector<1x1x8xf32> to vector<1x8xf32>
    %17 = vector.shape_cast %14 : vector<1x8xf32> to vector<1x1x8xf32>
    tpu.vector_store %arg9[%c0_11, %c0_12, %c0_13], %17 {strides = array<i32>} : memref<1x1x8xf32, #tpu.memory_space<vmem>>, vector<1x1x8xf32>,
    return
  }
  func.func @transform_0(%arg0: i32, %arg1: i32) -> (i32, i32, i32, i32, i32) {
    %c0_i32 = arith.constant 0 : i32
    %0 = arith.addi %arg1, %c0_i32 : i32
    %c0_i32_0 = arith.constant 0 : i32
    %c0_i32_1 = arith.constant 0 : i32
    %c0_i32_2 = arith.constant 0 : i32
    %c0_i32_3 = arith.constant 0 : i32
    return %arg0, %0, %c0_i32_0, %c0_i32_1, %c0_i32_2 : i32, i32, i32, i32, i32
  }
  func.func @transform_1(%arg0: i32, %arg1: i32) -> (i32, i32, i32, i32, i32) {
    %c1_i32 = arith.constant 1 : i32
    %0 = arith.addi %arg1, %c1_i32 : i32
    %c0_i32 = arith.constant 0 : i32
    %c0_i32_0 = arith.constant 0 : i32
    %c0_i32_1 = arith.constant 0 : i32
    %c0_i32_2 = arith.constant 0 : i32
    return %arg0, %0, %c0_i32, %c0_i32_0, %c0_i32_1 : i32, i32, i32, i32, i32
  }
  func.func @transform_2(%arg0: i32, %arg1: i32) -> (i32, i32, i32, i32, i32) {
    %c2_i32 = arith.constant 2 : i32
    %0 = arith.addi %arg1, %c2_i32 : i32
    %c0_i32 = arith.constant 0 : i32
    %c0_i32_0 = arith.constant 0 : i32
    %c0_i32_1 = arith.constant 0 : i32
    %c0_i32_2 = arith.constant 0 : i32
    return %arg0, %0, %c0_i32, %c0_i32_0, %c0_i32_1 : i32, i32, i32, i32, i32
  }
  func.func @transform_3(%arg0: i32, %arg1: i32) -> (i32, i32, i32) {
    %c0_i32 = arith.constant 0 : i32
    %c0_i32_0 = arith.constant 0 : i32
    %c0_i32_1 = arith.constant 0 : i32
    %c0_i32_2 = arith.constant 0 : i32
    return %c0_i32, %c0_i32_0, %c0_i32_1 : i32, i32, i32
  }
  func.func @transform_4(%arg0: i32, %arg1: i32) -> (i32, i32) {
    %c0_i32 = arith.constant 0 : i32
    %c0_i32_0 = arith.constant 0 : i32
    %c0_i32_1 = arith.constant 0 : i32
    return %c0_i32, %c0_i32_0 : i32, i32
  }
  func.func @transform_5(%arg0: i32, %arg1: i32) -> (i32, i32, i32, i32, i32) {
    %c0_i32 = arith.constant 0 : i32
    %c0_i32_0 = arith.constant 0 : i32
    %c0_i32_1 = arith.constant 0 : i32
    %c0_i32_2 = arith.constant 0 : i32
    return %arg0, %arg1, %c0_i32, %c0_i32_0, %c0_i32_1 : i32, i32, i32, i32, i32
  }
  func.func @transform_6(%arg0: i32, %arg1: i32) -> (i32, i32, i32) {
    %c0_i32 = arith.constant 0 : i32
    %c0_i32_0 = arith.constant 0 : i32
    %c0_i32_1 = arith.constant 0 : i32
    return %arg0, %c0_i32, %c0_i32_0 : i32, i32, i32
  }
  func.func @transform_7(%arg0: i32, %arg1: i32) -> (i32, i32, i32) {
    %c0_i32 = arith.constant 0 : i32
    %c0_i32_0 = arith.constant 0 : i32
    %c0_i32_1 = arith.constant 0 : i32
    return %arg0, %c0_i32, %c0_i32_0 : i32, i32, i32
  }
}

module attributes {stable_mosaic.version = 11 : i64} {
  func.func @norm_relu_pad_kernel(%arg0: i32, %arg1: i32, %arg2: memref<1x1x4x4x8xf32, #tpu.memory_space<vmem>>, %arg3: memref<1x1x8xf32, #tpu.memory_space<vmem>>, %arg4: memref<1x1x8xf32, #tpu.memory_space<vmem>>, %arg5: memref<1x1x6x6x8xf32, #tpu.memory_space<vmem>>) attributes {dimension_semantics = [#tpu.dimension_semantics<parallel>, #tpu.dimension_semantics<parallel>], iteration_bounds = array<i64: 2, 6>, scalar_prefetch = 0 : i64, scratch_operands = 0 : i64, tpu.core_type = #tpu.core_type<tc>, window_params = [{transform_indices = @transform_0, window_bounds = array<i64: 1, 1, 4, 4, 8>}, {transform_indices = @transform_1, window_bounds = array<i64: 1, 1, 8>}, {transform_indices = @transform_2, window_bounds = array<i64: 1, 1, 8>}, {transform_indices = @transform_3, window_bounds = array<i64: 1, 1, 6, 6, 8>}]} {
    %cst = arith.constant 0.000000e+00 : f32
    %0 = vector.broadcast %cst : f32 to vector<6x6x8xf32>
    %c0 = arith.constant 0 : index
    %c0_0 = arith.constant 0 : index
    %c0_1 = arith.constant 0 : index
    %c0_2 = arith.constant 0 : index
    %c0_3 = arith.constant 0 : index
    %1 = vector.load %arg5[%c0, %c0_0, %c0_1, %c0_2, %c0_3] : memref<1x1x6x6x8xf32, #tpu.memory_space<vmem>>, vector<1x1x6x6x8xf32>
    %2 = vector.shape_cast %1 : vector<1x1x6x6x8xf32> to vector<6x6x8xf32>
    %3 = vector.shape_cast %0 : vector<6x6x8xf32> to vector<1x1x6x6x8xf32>
    tpu.vector_store %arg5[%c0, %c0_0, %c0_1, %c0_2, %c0_3], %3 {strides = array<i32>} : memref<1x1x6x6x8xf32, #tpu.memory_space<vmem>>, vector<1x1x6x6x8xf32>,
    %c1_i32 = arith.constant 1 : i32
    %4 = arith.cmpi sge, %arg1, %c1_i32 : i32
    %c5_i32 = arith.constant 5 : i32
    %5 = arith.cmpi slt, %arg1, %c5_i32 : i32
    %6 = arith.andi %4, %5 : i1
    %7 = arith.extui %6 : i1 to i32
    %c0_i32 = arith.constant 0 : i32
    %8 = arith.cmpi ne, %7, %c0_i32 : i32
    scf.if %8 {
      %c0_4 = arith.constant 0 : index
      %c0_5 = arith.constant 0 : index
      %c0_6 = arith.constant 0 : index
      %c0_7 = arith.constant 0 : index
      %c0_8 = arith.constant 0 : index
      %9 = vector.load %arg2[%c0_4, %c0_5, %c0_6, %c0_7, %c0_8] : memref<1x1x4x4x8xf32, #tpu.memory_space<vmem>>, vector<1x1x4x4x8xf32>
      %10 = vector.shape_cast %9 : vector<1x1x4x4x8xf32> to vector<4x4x8xf32>
      %c0_9 = arith.constant 0 : index
      %c0_10 = arith.constant 0 : index
      %c0_11 = arith.constant 0 : index
      %11 = vector.load %arg3[%c0_9, %c0_10, %c0_11] : memref<1x1x8xf32, #tpu.memory_space<vmem>>, vector<1x1x8xf32>
      %12 = vector.shape_cast %11 : vector<1x1x8xf32> to vector<1x8xf32>
      %13 = vector.shape_cast %12 : vector<1x8xf32> to vector<1x1x8xf32>
      %14 = vector.broadcast %13 : vector<1x1x8xf32> to vector<4x4x8xf32>
      %15 = arith.mulf %10, %14 : vector<4x4x8xf32>
      %c0_12 = arith.constant 0 : index
      %c0_13 = arith.constant 0 : index
      %c0_14 = arith.constant 0 : index
      %16 = vector.load %arg4[%c0_12, %c0_13, %c0_14] : memref<1x1x8xf32, #tpu.memory_space<vmem>>, vector<1x1x8xf32>
      %17 = vector.shape_cast %16 : vector<1x1x8xf32> to vector<1x8xf32>
      %18 = vector.shape_cast %17 : vector<1x8xf32> to vector<1x1x8xf32>
      %19 = vector.broadcast %18 : vector<1x1x8xf32> to vector<4x4x8xf32>
      %20 = arith.addf %15, %19 : vector<4x4x8xf32>
      %cst_15 = arith.constant 0.000000e+00 : f32
      %21 = vector.broadcast %cst_15 : f32 to vector<4x4x8xf32>
      %22 = arith.maximumf %20, %21 : vector<4x4x8xf32>
      %c0_16 = arith.constant 0 : index
      %c0_17 = arith.constant 0 : index
      %c1 = arith.constant 1 : index
      %c1_18 = arith.constant 1 : index
      %c0_19 = arith.constant 0 : index
      %23 = vector.load %arg5[%c0_16, %c0_17, %c1, %c1_18, %c0_19] : memref<1x1x6x6x8xf32, #tpu.memory_space<vmem>>, vector<1x1x4x4x8xf32>
      %24 = vector.shape_cast %23 : vector<1x1x4x4x8xf32> to vector<4x4x8xf32>
      %25 = vector.shape_cast %22 : vector<4x4x8xf32> to vector<1x1x4x4x8xf32>
      tpu.vector_store %arg5[%c0_16, %c0_17, %c1, %c1_18, %c0_19], %25 {strides = array<i32>} : memref<1x1x6x6x8xf32, #tpu.memory_space<vmem>>, vector<1x1x4x4x8xf32>,
    } else {
    }
    return
  }
  func.func @transform_0(%arg0: i32, %arg1: i32) -> (i32, i32, i32, i32, i32) {
    %c1_i32 = arith.constant 1 : i32
    %0 = arith.subi %arg1, %c1_i32 : i32
    %c0_i32 = arith.constant 0 : i32
    %1 = arith.maxsi %0, %c0_i32 : i32
    %c3_i32 = arith.constant 3 : i32
    %2 = arith.minsi %1, %c3_i32 : i32
    %c0_i32_0 = arith.constant 0 : i32
    %c0_i32_1 = arith.constant 0 : i32
    %c0_i32_2 = arith.constant 0 : i32
    %c0_i32_3 = arith.constant 0 : i32
    return %arg0, %2, %c0_i32_0, %c0_i32_1, %c0_i32_2 : i32, i32, i32, i32, i32
  }
  func.func @transform_1(%arg0: i32, %arg1: i32) -> (i32, i32, i32) {
    %c0_i32 = arith.constant 0 : i32
    %c0_i32_0 = arith.constant 0 : i32
    %c0_i32_1 = arith.constant 0 : i32
    return %arg0, %c0_i32, %c0_i32_0 : i32, i32, i32
  }
  func.func @transform_2(%arg0: i32, %arg1: i32) -> (i32, i32, i32) {
    %c0_i32 = arith.constant 0 : i32
    %c0_i32_0 = arith.constant 0 : i32
    %c0_i32_1 = arith.constant 0 : i32
    return %arg0, %c0_i32, %c0_i32_0 : i32, i32, i32
  }
  func.func @transform_3(%arg0: i32, %arg1: i32) -> (i32, i32, i32, i32, i32) {
    %c0_i32 = arith.constant 0 : i32
    %c0_i32_0 = arith.constant 0 : i32
    %c0_i32_1 = arith.constant 0 : i32
    %c0_i32_2 = arith.constant 0 : i32
    return %arg0, %arg1, %c0_i32, %c0_i32_0, %c0_i32_1 : i32, i32, i32, i32, i32
  }
}

module attributes {stable_mosaic.version = 11 : i64} {
  func.func @conv3x3x3_stats_kernel(%arg0: i32, %arg1: i32, %arg2: memref<1x1x6x6x8xf32, #tpu.memory_space<vmem>>, %arg3: memref<1x1x6x6x8xf32, #tpu.memory_space<vmem>>, %arg4: memref<1x1x6x6x8xf32, #tpu.memory_space<vmem>>, %arg5: memref<27x8x8xf32, #tpu.memory_space<vmem>>, %arg6: memref<1x8xf32, #tpu.memory_space<vmem>>, %arg7: memref<1x1x4x4x8xf32, #tpu.memory_space<vmem>>, %arg8: memref<1x1x8xf32, #tpu.memory_space<vmem>>, %arg9: memref<1x1x8xf32, #tpu.memory_space<vmem>>) attributes {dimension_semantics = [#tpu.dimension_semantics<parallel>, #tpu.dimension_semantics<arbitrary>], iteration_bounds = array<i64: 2, 4>, scalar_prefetch = 0 : i64, scratch_operands = 0 : i64, tpu.core_type = #tpu.core_type<tc>, window_params = [{transform_indices = @transform_0, window_bounds = array<i64: 1, 1, 6, 6, 8>}, {transform_indices = @transform_1, window_bounds = array<i64: 1, 1, 6, 6, 8>}, {transform_indices = @transform_2, window_bounds = array<i64: 1, 1, 6, 6, 8>}, {pipeline_mode = #tpu.pipeline_mode<synchronous>, transform_indices = @transform_3, window_bounds = array<i64: 27, 8, 8>}, {pipeline_mode = #tpu.pipeline_mode<synchronous>, transform_indices = @transform_4, window_bounds = array<i64: 1, 8>}, {transform_indices = @transform_5, window_bounds = array<i64: 1, 1, 4, 4, 8>}, {transform_indices = @transform_6, window_bounds = array<i64: 1, 1, 8>}, {transform_indices = @transform_7, window_bounds = array<i64: 1, 1, 8>}]} {
    %c0_i32 = arith.constant 0 : i32
    %0 = arith.cmpi eq, %arg1, %c0_i32 : i32
    %1 = arith.extui %0 : i1 to i32
    %c0_i32_0 = arith.constant 0 : i32
    %2 = arith.cmpi ne, %1, %c0_i32_0 : i32
    scf.if %2 {
      %cst_14 = arith.constant 0.000000e+00 : f32
      %18 = vector.broadcast %cst_14 : f32 to vector<1x8xf32>
      %c0_15 = arith.constant 0 : index
      %c0_16 = arith.constant 0 : index
      %c0_17 = arith.constant 0 : index
      %19 = vector.load %arg8[%c0_15, %c0_16, %c0_17] : memref<1x1x8xf32, #tpu.memory_space<vmem>>, vector<1x1x8xf32>
      %20 = vector.shape_cast %19 : vector<1x1x8xf32> to vector<1x8xf32>
      %21 = vector.shape_cast %18 : vector<1x8xf32> to vector<1x1x8xf32>
      tpu.vector_store %arg8[%c0_15, %c0_16, %c0_17], %21 {strides = array<i32>} : memref<1x1x8xf32, #tpu.memory_space<vmem>>, vector<1x1x8xf32>,
      %cst_18 = arith.constant 0.000000e+00 : f32
      %22 = vector.broadcast %cst_18 : f32 to vector<1x8xf32>
      %c0_19 = arith.constant 0 : index
      %c0_20 = arith.constant 0 : index
      %c0_21 = arith.constant 0 : index
      %23 = vector.load %arg9[%c0_19, %c0_20, %c0_21] : memref<1x1x8xf32, #tpu.memory_space<vmem>>, vector<1x1x8xf32>
      %24 = vector.shape_cast %23 : vector<1x1x8xf32> to vector<1x8xf32>
      %25 = vector.shape_cast %22 : vector<1x8xf32> to vector<1x1x8xf32>
      tpu.vector_store %arg9[%c0_19, %c0_20, %c0_21], %25 {strides = array<i32>} : memref<1x1x8xf32, #tpu.memory_space<vmem>>, vector<1x1x8xf32>,
    } else {
    }
    %cst = arith.constant 0.000000e+00 : f32
    %3 = vector.broadcast %cst : f32 to vector<1x8xf32>
    %c0_i32_1 = arith.constant 0 : i32
    %c4_i32 = arith.constant 4 : i32
    %4 = arith.addi %c0_i32_1, %c4_i32 : i32
    %c1_i32 = arith.constant 1 : i32
    %5:2 = scf.for %arg10 = %c0_i32_1 to %4 step %c1_i32 iter_args(%arg11 = %3, %arg12 = %3) -> (vector<1x8xf32>, vector<1x8xf32>)  : i32 {
      %cst_14 = arith.constant 0.000000e+00 : f32
      %18 = vector.broadcast %cst_14 : f32 to vector<4x8xf32>
      %c0_i32_15 = arith.constant 0 : i32
      %19 = arith.addi %arg10, %c0_i32_15 : i32
      %c0_16 = arith.constant 0 : index
      %c0_17 = arith.constant 0 : index
      %20 = arith.index_cast %19 : i32 to index
      %c0_18 = arith.constant 0 : index
      %c0_19 = arith.constant 0 : index
      %21 = vector.load %arg2[%c0_16, %c0_17, %20, %c0_18, %c0_19] : memref<1x1x6x6x8xf32, #tpu.memory_space<vmem>>, vector<1x1x1x6x8xf32>
      %22 = vector.shape_cast %21 : vector<1x1x1x6x8xf32> to vector<6x8xf32>
      %23 = vector.extract_strided_slice %22 {offsets = [0, 0], sizes = [4, 8], strides = [1, 1]} : vector<6x8xf32> to vector<4x8xf32>
      %c0_20 = arith.constant 0 : index
      %c0_21 = arith.constant 0 : index
      %c0_22 = arith.constant 0 : index
      %24 = vector.load %arg5[%c0_20, %c0_21, %c0_22] : memref<27x8x8xf32, #tpu.memory_space<vmem>>, vector<1x8x8xf32>
      %25 = vector.shape_cast %24 : vector<1x8x8xf32> to vector<8x8xf32>
      %cst_23 = arith.constant dense<0.000000e+00> : vector<4x8xf32>
      %26 = tpu.matmul %23, %25, %cst_23 {dimension_numbers = #tpu.dot_dimension_numbers<[1], [0], [0], [1], [0, 0, 1, 1], [], []>} : vector<4x8xf32>, vector<8x8xf32>, vector<4x8xf32> -> vector<4x8xf32>
      %27 = arith.addf %18, %26 : vector<4x8xf32>
      %28 = vector.extract_strided_slice %22 {offsets = [1, 0], sizes = [4, 8], strides = [1, 1]} : vector<6x8xf32> to vector<4x8xf32>
      %c1 = arith.constant 1 : index
      %c0_24 = arith.constant 0 : index
      %c0_25 = arith.constant 0 : index
      %29 = vector.load %arg5[%c1, %c0_24, %c0_25] : memref<27x8x8xf32, #tpu.memory_space<vmem>>, vector<1x8x8xf32>
      %30 = vector.shape_cast %29 : vector<1x8x8xf32> to vector<8x8xf32>
      %cst_26 = arith.constant dense<0.000000e+00> : vector<4x8xf32>
      %31 = tpu.matmul %28, %30, %cst_26 {dimension_numbers = #tpu.dot_dimension_numbers<[1], [0], [0], [1], [0, 0, 1, 1], [], []>} : vector<4x8xf32>, vector<8x8xf32>, vector<4x8xf32> -> vector<4x8xf32>
      %32 = arith.addf %27, %31 : vector<4x8xf32>
      %33 = vector.extract_strided_slice %22 {offsets = [2, 0], sizes = [4, 8], strides = [1, 1]} : vector<6x8xf32> to vector<4x8xf32>
      %c2 = arith.constant 2 : index
      %c0_27 = arith.constant 0 : index
      %c0_28 = arith.constant 0 : index
      %34 = vector.load %arg5[%c2, %c0_27, %c0_28] : memref<27x8x8xf32, #tpu.memory_space<vmem>>, vector<1x8x8xf32>
      %35 = vector.shape_cast %34 : vector<1x8x8xf32> to vector<8x8xf32>
      %cst_29 = arith.constant dense<0.000000e+00> : vector<4x8xf32>
      %36 = tpu.matmul %33, %35, %cst_29 {dimension_numbers = #tpu.dot_dimension_numbers<[1], [0], [0], [1], [0, 0, 1, 1], [], []>} : vector<4x8xf32>, vector<8x8xf32>, vector<4x8xf32> -> vector<4x8xf32>
      %37 = arith.addf %32, %36 : vector<4x8xf32>
      %c1_i32_30 = arith.constant 1 : i32
      %38 = arith.addi %arg10, %c1_i32_30 : i32
      %c0_31 = arith.constant 0 : index
      %c0_32 = arith.constant 0 : index
      %39 = arith.index_cast %38 : i32 to index
      %c0_33 = arith.constant 0 : index
      %c0_34 = arith.constant 0 : index
      %40 = vector.load %arg2[%c0_31, %c0_32, %39, %c0_33, %c0_34] : memref<1x1x6x6x8xf32, #tpu.memory_space<vmem>>, vector<1x1x1x6x8xf32>
      %41 = vector.shape_cast %40 : vector<1x1x1x6x8xf32> to vector<6x8xf32>
      %42 = vector.extract_strided_slice %41 {offsets = [0, 0], sizes = [4, 8], strides = [1, 1]} : vector<6x8xf32> to vector<4x8xf32>
      %c3 = arith.constant 3 : index
      %c0_35 = arith.constant 0 : index
      %c0_36 = arith.constant 0 : index
      %43 = vector.load %arg5[%c3, %c0_35, %c0_36] : memref<27x8x8xf32, #tpu.memory_space<vmem>>, vector<1x8x8xf32>
      %44 = vector.shape_cast %43 : vector<1x8x8xf32> to vector<8x8xf32>
      %cst_37 = arith.constant dense<0.000000e+00> : vector<4x8xf32>
      %45 = tpu.matmul %42, %44, %cst_37 {dimension_numbers = #tpu.dot_dimension_numbers<[1], [0], [0], [1], [0, 0, 1, 1], [], []>} : vector<4x8xf32>, vector<8x8xf32>, vector<4x8xf32> -> vector<4x8xf32>
      %46 = arith.addf %37, %45 : vector<4x8xf32>
      %47 = vector.extract_strided_slice %41 {offsets = [1, 0], sizes = [4, 8], strides = [1, 1]} : vector<6x8xf32> to vector<4x8xf32>
      %c4 = arith.constant 4 : index
      %c0_38 = arith.constant 0 : index
      %c0_39 = arith.constant 0 : index
      %48 = vector.load %arg5[%c4, %c0_38, %c0_39] : memref<27x8x8xf32, #tpu.memory_space<vmem>>, vector<1x8x8xf32>
      %49 = vector.shape_cast %48 : vector<1x8x8xf32> to vector<8x8xf32>
      %cst_40 = arith.constant dense<0.000000e+00> : vector<4x8xf32>
      %50 = tpu.matmul %47, %49, %cst_40 {dimension_numbers = #tpu.dot_dimension_numbers<[1], [0], [0], [1], [0, 0, 1, 1], [], []>} : vector<4x8xf32>, vector<8x8xf32>, vector<4x8xf32> -> vector<4x8xf32>
      %51 = arith.addf %46, %50 : vector<4x8xf32>
      %52 = vector.extract_strided_slice %41 {offsets = [2, 0], sizes = [4, 8], strides = [1, 1]} : vector<6x8xf32> to vector<4x8xf32>
      %c5 = arith.constant 5 : index
      %c0_41 = arith.constant 0 : index
      %c0_42 = arith.constant 0 : index
      %53 = vector.load %arg5[%c5, %c0_41, %c0_42] : memref<27x8x8xf32, #tpu.memory_space<vmem>>, vector<1x8x8xf32>
      %54 = vector.shape_cast %53 : vector<1x8x8xf32> to vector<8x8xf32>
      %cst_43 = arith.constant dense<0.000000e+00> : vector<4x8xf32>
      %55 = tpu.matmul %52, %54, %cst_43 {dimension_numbers = #tpu.dot_dimension_numbers<[1], [0], [0], [1], [0, 0, 1, 1], [], []>} : vector<4x8xf32>, vector<8x8xf32>, vector<4x8xf32> -> vector<4x8xf32>
      %56 = arith.addf %51, %55 : vector<4x8xf32>
      %c2_i32 = arith.constant 2 : i32
      %57 = arith.addi %arg10, %c2_i32 : i32
      %c0_44 = arith.constant 0 : index
      %c0_45 = arith.constant 0 : index
      %58 = arith.index_cast %57 : i32 to index
      %c0_46 = arith.constant 0 : index
      %c0_47 = arith.constant 0 : index
      %59 = vector.load %arg2[%c0_44, %c0_45, %58, %c0_46, %c0_47] : memref<1x1x6x6x8xf32, #tpu.memory_space<vmem>>, vector<1x1x1x6x8xf32>
      %60 = vector.shape_cast %59 : vector<1x1x1x6x8xf32> to vector<6x8xf32>
      %61 = vector.extract_strided_slice %60 {offsets = [0, 0], sizes = [4, 8], strides = [1, 1]} : vector<6x8xf32> to vector<4x8xf32>
      %c6 = arith.constant 6 : index
      %c0_48 = arith.constant 0 : index
      %c0_49 = arith.constant 0 : index
      %62 = vector.load %arg5[%c6, %c0_48, %c0_49] : memref<27x8x8xf32, #tpu.memory_space<vmem>>, vector<1x8x8xf32>
      %63 = vector.shape_cast %62 : vector<1x8x8xf32> to vector<8x8xf32>
      %cst_50 = arith.constant dense<0.000000e+00> : vector<4x8xf32>
      %64 = tpu.matmul %61, %63, %cst_50 {dimension_numbers = #tpu.dot_dimension_numbers<[1], [0], [0], [1], [0, 0, 1, 1], [], []>} : vector<4x8xf32>, vector<8x8xf32>, vector<4x8xf32> -> vector<4x8xf32>
      %65 = arith.addf %56, %64 : vector<4x8xf32>
      %66 = vector.extract_strided_slice %60 {offsets = [1, 0], sizes = [4, 8], strides = [1, 1]} : vector<6x8xf32> to vector<4x8xf32>
      %c7 = arith.constant 7 : index
      %c0_51 = arith.constant 0 : index
      %c0_52 = arith.constant 0 : index
      %67 = vector.load %arg5[%c7, %c0_51, %c0_52] : memref<27x8x8xf32, #tpu.memory_space<vmem>>, vector<1x8x8xf32>
      %68 = vector.shape_cast %67 : vector<1x8x8xf32> to vector<8x8xf32>
      %cst_53 = arith.constant dense<0.000000e+00> : vector<4x8xf32>
      %69 = tpu.matmul %66, %68, %cst_53 {dimension_numbers = #tpu.dot_dimension_numbers<[1], [0], [0], [1], [0, 0, 1, 1], [], []>} : vector<4x8xf32>, vector<8x8xf32>, vector<4x8xf32> -> vector<4x8xf32>
      %70 = arith.addf %65, %69 : vector<4x8xf32>
      %71 = vector.extract_strided_slice %60 {offsets = [2, 0], sizes = [4, 8], strides = [1, 1]} : vector<6x8xf32> to vector<4x8xf32>
      %c8 = arith.constant 8 : index
      %c0_54 = arith.constant 0 : index
      %c0_55 = arith.constant 0 : index
      %72 = vector.load %arg5[%c8, %c0_54, %c0_55] : memref<27x8x8xf32, #tpu.memory_space<vmem>>, vector<1x8x8xf32>
      %73 = vector.shape_cast %72 : vector<1x8x8xf32> to vector<8x8xf32>
      %cst_56 = arith.constant dense<0.000000e+00> : vector<4x8xf32>
      %74 = tpu.matmul %71, %73, %cst_56 {dimension_numbers = #tpu.dot_dimension_numbers<[1], [0], [0], [1], [0, 0, 1, 1], [], []>} : vector<4x8xf32>, vector<8x8xf32>, vector<4x8xf32> -> vector<4x8xf32>
      %75 = arith.addf %70, %74 : vector<4x8xf32>
      %c0_i32_57 = arith.constant 0 : i32
      %76 = arith.addi %arg10, %c0_i32_57 : i32
      %c0_58 = arith.constant 0 : index
      %c0_59 = arith.constant 0 : index
      %77 = arith.index_cast %76 : i32 to index
      %c0_60 = arith.constant 0 : index
      %c0_61 = arith.constant 0 : index
      %78 = vector.load %arg3[%c0_58, %c0_59, %77, %c0_60, %c0_61] : memref<1x1x6x6x8xf32, #tpu.memory_space<vmem>>, vector<1x1x1x6x8xf32>
      %79 = vector.shape_cast %78 : vector<1x1x1x6x8xf32> to vector<6x8xf32>
      %80 = vector.extract_strided_slice %79 {offsets = [0, 0], sizes = [4, 8], strides = [1, 1]} : vector<6x8xf32> to vector<4x8xf32>
      %c9 = arith.constant 9 : index
      %c0_62 = arith.constant 0 : index
      %c0_63 = arith.constant 0 : index
      %81 = vector.load %arg5[%c9, %c0_62, %c0_63] : memref<27x8x8xf32, #tpu.memory_space<vmem>>, vector<1x8x8xf32>
      %82 = vector.shape_cast %81 : vector<1x8x8xf32> to vector<8x8xf32>
      %cst_64 = arith.constant dense<0.000000e+00> : vector<4x8xf32>
      %83 = tpu.matmul %80, %82, %cst_64 {dimension_numbers = #tpu.dot_dimension_numbers<[1], [0], [0], [1], [0, 0, 1, 1], [], []>} : vector<4x8xf32>, vector<8x8xf32>, vector<4x8xf32> -> vector<4x8xf32>
      %84 = arith.addf %75, %83 : vector<4x8xf32>
      %85 = vector.extract_strided_slice %79 {offsets = [1, 0], sizes = [4, 8], strides = [1, 1]} : vector<6x8xf32> to vector<4x8xf32>
      %c10 = arith.constant 10 : index
      %c0_65 = arith.constant 0 : index
      %c0_66 = arith.constant 0 : index
      %86 = vector.load %arg5[%c10, %c0_65, %c0_66] : memref<27x8x8xf32, #tpu.memory_space<vmem>>, vector<1x8x8xf32>
      %87 = vector.shape_cast %86 : vector<1x8x8xf32> to vector<8x8xf32>
      %cst_67 = arith.constant dense<0.000000e+00> : vector<4x8xf32>
      %88 = tpu.matmul %85, %87, %cst_67 {dimension_numbers = #tpu.dot_dimension_numbers<[1], [0], [0], [1], [0, 0, 1, 1], [], []>} : vector<4x8xf32>, vector<8x8xf32>, vector<4x8xf32> -> vector<4x8xf32>
      %89 = arith.addf %84, %88 : vector<4x8xf32>
      %90 = vector.extract_strided_slice %79 {offsets = [2, 0], sizes = [4, 8], strides = [1, 1]} : vector<6x8xf32> to vector<4x8xf32>
      %c11 = arith.constant 11 : index
      %c0_68 = arith.constant 0 : index
      %c0_69 = arith.constant 0 : index
      %91 = vector.load %arg5[%c11, %c0_68, %c0_69] : memref<27x8x8xf32, #tpu.memory_space<vmem>>, vector<1x8x8xf32>
      %92 = vector.shape_cast %91 : vector<1x8x8xf32> to vector<8x8xf32>
      %cst_70 = arith.constant dense<0.000000e+00> : vector<4x8xf32>
      %93 = tpu.matmul %90, %92, %cst_70 {dimension_numbers = #tpu.dot_dimension_numbers<[1], [0], [0], [1], [0, 0, 1, 1], [], []>} : vector<4x8xf32>, vector<8x8xf32>, vector<4x8xf32> -> vector<4x8xf32>
      %94 = arith.addf %89, %93 : vector<4x8xf32>
      %c1_i32_71 = arith.constant 1 : i32
      %95 = arith.addi %arg10, %c1_i32_71 : i32
      %c0_72 = arith.constant 0 : index
      %c0_73 = arith.constant 0 : index
      %96 = arith.index_cast %95 : i32 to index
      %c0_74 = arith.constant 0 : index
      %c0_75 = arith.constant 0 : index
      %97 = vector.load %arg3[%c0_72, %c0_73, %96, %c0_74, %c0_75] : memref<1x1x6x6x8xf32, #tpu.memory_space<vmem>>, vector<1x1x1x6x8xf32>
      %98 = vector.shape_cast %97 : vector<1x1x1x6x8xf32> to vector<6x8xf32>
      %99 = vector.extract_strided_slice %98 {offsets = [0, 0], sizes = [4, 8], strides = [1, 1]} : vector<6x8xf32> to vector<4x8xf32>
      %c12 = arith.constant 12 : index
      %c0_76 = arith.constant 0 : index
      %c0_77 = arith.constant 0 : index
      %100 = vector.load %arg5[%c12, %c0_76, %c0_77] : memref<27x8x8xf32, #tpu.memory_space<vmem>>, vector<1x8x8xf32>
      %101 = vector.shape_cast %100 : vector<1x8x8xf32> to vector<8x8xf32>
      %cst_78 = arith.constant dense<0.000000e+00> : vector<4x8xf32>
      %102 = tpu.matmul %99, %101, %cst_78 {dimension_numbers = #tpu.dot_dimension_numbers<[1], [0], [0], [1], [0, 0, 1, 1], [], []>} : vector<4x8xf32>, vector<8x8xf32>, vector<4x8xf32> -> vector<4x8xf32>
      %103 = arith.addf %94, %102 : vector<4x8xf32>
      %104 = vector.extract_strided_slice %98 {offsets = [1, 0], sizes = [4, 8], strides = [1, 1]} : vector<6x8xf32> to vector<4x8xf32>
      %c13 = arith.constant 13 : index
      %c0_79 = arith.constant 0 : index
      %c0_80 = arith.constant 0 : index
      %105 = vector.load %arg5[%c13, %c0_79, %c0_80] : memref<27x8x8xf32, #tpu.memory_space<vmem>>, vector<1x8x8xf32>
      %106 = vector.shape_cast %105 : vector<1x8x8xf32> to vector<8x8xf32>
      %cst_81 = arith.constant dense<0.000000e+00> : vector<4x8xf32>
      %107 = tpu.matmul %104, %106, %cst_81 {dimension_numbers = #tpu.dot_dimension_numbers<[1], [0], [0], [1], [0, 0, 1, 1], [], []>} : vector<4x8xf32>, vector<8x8xf32>, vector<4x8xf32> -> vector<4x8xf32>
      %108 = arith.addf %103, %107 : vector<4x8xf32>
      %109 = vector.extract_strided_slice %98 {offsets = [2, 0], sizes = [4, 8], strides = [1, 1]} : vector<6x8xf32> to vector<4x8xf32>
      %c14 = arith.constant 14 : index
      %c0_82 = arith.constant 0 : index
      %c0_83 = arith.constant 0 : index
      %110 = vector.load %arg5[%c14, %c0_82, %c0_83] : memref<27x8x8xf32, #tpu.memory_space<vmem>>, vector<1x8x8xf32>
      %111 = vector.shape_cast %110 : vector<1x8x8xf32> to vector<8x8xf32>
      %cst_84 = arith.constant dense<0.000000e+00> : vector<4x8xf32>
      %112 = tpu.matmul %109, %111, %cst_84 {dimension_numbers = #tpu.dot_dimension_numbers<[1], [0], [0], [1], [0, 0, 1, 1], [], []>} : vector<4x8xf32>, vector<8x8xf32>, vector<4x8xf32> -> vector<4x8xf32>
      %113 = arith.addf %108, %112 : vector<4x8xf32>
      %c2_i32_85 = arith.constant 2 : i32
      %114 = arith.addi %arg10, %c2_i32_85 : i32
      %c0_86 = arith.constant 0 : index
      %c0_87 = arith.constant 0 : index
      %115 = arith.index_cast %114 : i32 to index
      %c0_88 = arith.constant 0 : index
      %c0_89 = arith.constant 0 : index
      %116 = vector.load %arg3[%c0_86, %c0_87, %115, %c0_88, %c0_89] : memref<1x1x6x6x8xf32, #tpu.memory_space<vmem>>, vector<1x1x1x6x8xf32>
      %117 = vector.shape_cast %116 : vector<1x1x1x6x8xf32> to vector<6x8xf32>
      %118 = vector.extract_strided_slice %117 {offsets = [0, 0], sizes = [4, 8], strides = [1, 1]} : vector<6x8xf32> to vector<4x8xf32>
      %c15 = arith.constant 15 : index
      %c0_90 = arith.constant 0 : index
      %c0_91 = arith.constant 0 : index
      %119 = vector.load %arg5[%c15, %c0_90, %c0_91] : memref<27x8x8xf32, #tpu.memory_space<vmem>>, vector<1x8x8xf32>
      %120 = vector.shape_cast %119 : vector<1x8x8xf32> to vector<8x8xf32>
      %cst_92 = arith.constant dense<0.000000e+00> : vector<4x8xf32>
      %121 = tpu.matmul %118, %120, %cst_92 {dimension_numbers = #tpu.dot_dimension_numbers<[1], [0], [0], [1], [0, 0, 1, 1], [], []>} : vector<4x8xf32>, vector<8x8xf32>, vector<4x8xf32> -> vector<4x8xf32>
      %122 = arith.addf %113, %121 : vector<4x8xf32>
      %123 = vector.extract_strided_slice %117 {offsets = [1, 0], sizes = [4, 8], strides = [1, 1]} : vector<6x8xf32> to vector<4x8xf32>
      %c16 = arith.constant 16 : index
      %c0_93 = arith.constant 0 : index
      %c0_94 = arith.constant 0 : index
      %124 = vector.load %arg5[%c16, %c0_93, %c0_94] : memref<27x8x8xf32, #tpu.memory_space<vmem>>, vector<1x8x8xf32>
      %125 = vector.shape_cast %124 : vector<1x8x8xf32> to vector<8x8xf32>
      %cst_95 = arith.constant dense<0.000000e+00> : vector<4x8xf32>
      %126 = tpu.matmul %123, %125, %cst_95 {dimension_numbers = #tpu.dot_dimension_numbers<[1], [0], [0], [1], [0, 0, 1, 1], [], []>} : vector<4x8xf32>, vector<8x8xf32>, vector<4x8xf32> -> vector<4x8xf32>
      %127 = arith.addf %122, %126 : vector<4x8xf32>
      %128 = vector.extract_strided_slice %117 {offsets = [2, 0], sizes = [4, 8], strides = [1, 1]} : vector<6x8xf32> to vector<4x8xf32>
      %c17 = arith.constant 17 : index
      %c0_96 = arith.constant 0 : index
      %c0_97 = arith.constant 0 : index
      %129 = vector.load %arg5[%c17, %c0_96, %c0_97] : memref<27x8x8xf32, #tpu.memory_space<vmem>>, vector<1x8x8xf32>
      %130 = vector.shape_cast %129 : vector<1x8x8xf32> to vector<8x8xf32>
      %cst_98 = arith.constant dense<0.000000e+00> : vector<4x8xf32>
      %131 = tpu.matmul %128, %130, %cst_98 {dimension_numbers = #tpu.dot_dimension_numbers<[1], [0], [0], [1], [0, 0, 1, 1], [], []>} : vector<4x8xf32>, vector<8x8xf32>, vector<4x8xf32> -> vector<4x8xf32>
      %132 = arith.addf %127, %131 : vector<4x8xf32>
      %c0_i32_99 = arith.constant 0 : i32
      %133 = arith.addi %arg10, %c0_i32_99 : i32
      %c0_100 = arith.constant 0 : index
      %c0_101 = arith.constant 0 : index
      %134 = arith.index_cast %133 : i32 to index
      %c0_102 = arith.constant 0 : index
      %c0_103 = arith.constant 0 : index
      %135 = vector.load %arg4[%c0_100, %c0_101, %134, %c0_102, %c0_103] : memref<1x1x6x6x8xf32, #tpu.memory_space<vmem>>, vector<1x1x1x6x8xf32>
      %136 = vector.shape_cast %135 : vector<1x1x1x6x8xf32> to vector<6x8xf32>
      %137 = vector.extract_strided_slice %136 {offsets = [0, 0], sizes = [4, 8], strides = [1, 1]} : vector<6x8xf32> to vector<4x8xf32>
      %c18 = arith.constant 18 : index
      %c0_104 = arith.constant 0 : index
      %c0_105 = arith.constant 0 : index
      %138 = vector.load %arg5[%c18, %c0_104, %c0_105] : memref<27x8x8xf32, #tpu.memory_space<vmem>>, vector<1x8x8xf32>
      %139 = vector.shape_cast %138 : vector<1x8x8xf32> to vector<8x8xf32>
      %cst_106 = arith.constant dense<0.000000e+00> : vector<4x8xf32>
      %140 = tpu.matmul %137, %139, %cst_106 {dimension_numbers = #tpu.dot_dimension_numbers<[1], [0], [0], [1], [0, 0, 1, 1], [], []>} : vector<4x8xf32>, vector<8x8xf32>, vector<4x8xf32> -> vector<4x8xf32>
      %141 = arith.addf %132, %140 : vector<4x8xf32>
      %142 = vector.extract_strided_slice %136 {offsets = [1, 0], sizes = [4, 8], strides = [1, 1]} : vector<6x8xf32> to vector<4x8xf32>
      %c19 = arith.constant 19 : index
      %c0_107 = arith.constant 0 : index
      %c0_108 = arith.constant 0 : index
      %143 = vector.load %arg5[%c19, %c0_107, %c0_108] : memref<27x8x8xf32, #tpu.memory_space<vmem>>, vector<1x8x8xf32>
      %144 = vector.shape_cast %143 : vector<1x8x8xf32> to vector<8x8xf32>
      %cst_109 = arith.constant dense<0.000000e+00> : vector<4x8xf32>
      %145 = tpu.matmul %142, %144, %cst_109 {dimension_numbers = #tpu.dot_dimension_numbers<[1], [0], [0], [1], [0, 0, 1, 1], [], []>} : vector<4x8xf32>, vector<8x8xf32>, vector<4x8xf32> -> vector<4x8xf32>
      %146 = arith.addf %141, %145 : vector<4x8xf32>
      %147 = vector.extract_strided_slice %136 {offsets = [2, 0], sizes = [4, 8], strides = [1, 1]} : vector<6x8xf32> to vector<4x8xf32>
      %c20 = arith.constant 20 : index
      %c0_110 = arith.constant 0 : index
      %c0_111 = arith.constant 0 : index
      %148 = vector.load %arg5[%c20, %c0_110, %c0_111] : memref<27x8x8xf32, #tpu.memory_space<vmem>>, vector<1x8x8xf32>
      %149 = vector.shape_cast %148 : vector<1x8x8xf32> to vector<8x8xf32>
      %cst_112 = arith.constant dense<0.000000e+00> : vector<4x8xf32>
      %150 = tpu.matmul %147, %149, %cst_112 {dimension_numbers = #tpu.dot_dimension_numbers<[1], [0], [0], [1], [0, 0, 1, 1], [], []>} : vector<4x8xf32>, vector<8x8xf32>, vector<4x8xf32> -> vector<4x8xf32>
      %151 = arith.addf %146, %150 : vector<4x8xf32>
      %c1_i32_113 = arith.constant 1 : i32
      %152 = arith.addi %arg10, %c1_i32_113 : i32
      %c0_114 = arith.constant 0 : index
      %c0_115 = arith.constant 0 : index
      %153 = arith.index_cast %152 : i32 to index
      %c0_116 = arith.constant 0 : index
      %c0_117 = arith.constant 0 : index
      %154 = vector.load %arg4[%c0_114, %c0_115, %153, %c0_116, %c0_117] : memref<1x1x6x6x8xf32, #tpu.memory_space<vmem>>, vector<1x1x1x6x8xf32>
      %155 = vector.shape_cast %154 : vector<1x1x1x6x8xf32> to vector<6x8xf32>
      %156 = vector.extract_strided_slice %155 {offsets = [0, 0], sizes = [4, 8], strides = [1, 1]} : vector<6x8xf32> to vector<4x8xf32>
      %c21 = arith.constant 21 : index
      %c0_118 = arith.constant 0 : index
      %c0_119 = arith.constant 0 : index
      %157 = vector.load %arg5[%c21, %c0_118, %c0_119] : memref<27x8x8xf32, #tpu.memory_space<vmem>>, vector<1x8x8xf32>
      %158 = vector.shape_cast %157 : vector<1x8x8xf32> to vector<8x8xf32>
      %cst_120 = arith.constant dense<0.000000e+00> : vector<4x8xf32>
      %159 = tpu.matmul %156, %158, %cst_120 {dimension_numbers = #tpu.dot_dimension_numbers<[1], [0], [0], [1], [0, 0, 1, 1], [], []>} : vector<4x8xf32>, vector<8x8xf32>, vector<4x8xf32> -> vector<4x8xf32>
      %160 = arith.addf %151, %159 : vector<4x8xf32>
      %161 = vector.extract_strided_slice %155 {offsets = [1, 0], sizes = [4, 8], strides = [1, 1]} : vector<6x8xf32> to vector<4x8xf32>
      %c22 = arith.constant 22 : index
      %c0_121 = arith.constant 0 : index
      %c0_122 = arith.constant 0 : index
      %162 = vector.load %arg5[%c22, %c0_121, %c0_122] : memref<27x8x8xf32, #tpu.memory_space<vmem>>, vector<1x8x8xf32>
      %163 = vector.shape_cast %162 : vector<1x8x8xf32> to vector<8x8xf32>
      %cst_123 = arith.constant dense<0.000000e+00> : vector<4x8xf32>
      %164 = tpu.matmul %161, %163, %cst_123 {dimension_numbers = #tpu.dot_dimension_numbers<[1], [0], [0], [1], [0, 0, 1, 1], [], []>} : vector<4x8xf32>, vector<8x8xf32>, vector<4x8xf32> -> vector<4x8xf32>
      %165 = arith.addf %160, %164 : vector<4x8xf32>
      %166 = vector.extract_strided_slice %155 {offsets = [2, 0], sizes = [4, 8], strides = [1, 1]} : vector<6x8xf32> to vector<4x8xf32>
      %c23 = arith.constant 23 : index
      %c0_124 = arith.constant 0 : index
      %c0_125 = arith.constant 0 : index
      %167 = vector.load %arg5[%c23, %c0_124, %c0_125] : memref<27x8x8xf32, #tpu.memory_space<vmem>>, vector<1x8x8xf32>
      %168 = vector.shape_cast %167 : vector<1x8x8xf32> to vector<8x8xf32>
      %cst_126 = arith.constant dense<0.000000e+00> : vector<4x8xf32>
      %169 = tpu.matmul %166, %168, %cst_126 {dimension_numbers = #tpu.dot_dimension_numbers<[1], [0], [0], [1], [0, 0, 1, 1], [], []>} : vector<4x8xf32>, vector<8x8xf32>, vector<4x8xf32> -> vector<4x8xf32>
      %170 = arith.addf %165, %169 : vector<4x8xf32>
      %c2_i32_127 = arith.constant 2 : i32
      %171 = arith.addi %arg10, %c2_i32_127 : i32
      %c0_128 = arith.constant 0 : index
      %c0_129 = arith.constant 0 : index
      %172 = arith.index_cast %171 : i32 to index
      %c0_130 = arith.constant 0 : index
      %c0_131 = arith.constant 0 : index
      %173 = vector.load %arg4[%c0_128, %c0_129, %172, %c0_130, %c0_131] : memref<1x1x6x6x8xf32, #tpu.memory_space<vmem>>, vector<1x1x1x6x8xf32>
      %174 = vector.shape_cast %173 : vector<1x1x1x6x8xf32> to vector<6x8xf32>
      %175 = vector.extract_strided_slice %174 {offsets = [0, 0], sizes = [4, 8], strides = [1, 1]} : vector<6x8xf32> to vector<4x8xf32>
      %c24 = arith.constant 24 : index
      %c0_132 = arith.constant 0 : index
      %c0_133 = arith.constant 0 : index
      %176 = vector.load %arg5[%c24, %c0_132, %c0_133] : memref<27x8x8xf32, #tpu.memory_space<vmem>>, vector<1x8x8xf32>
      %177 = vector.shape_cast %176 : vector<1x8x8xf32> to vector<8x8xf32>
      %cst_134 = arith.constant dense<0.000000e+00> : vector<4x8xf32>
      %178 = tpu.matmul %175, %177, %cst_134 {dimension_numbers = #tpu.dot_dimension_numbers<[1], [0], [0], [1], [0, 0, 1, 1], [], []>} : vector<4x8xf32>, vector<8x8xf32>, vector<4x8xf32> -> vector<4x8xf32>
      %179 = arith.addf %170, %178 : vector<4x8xf32>
      %180 = vector.extract_strided_slice %174 {offsets = [1, 0], sizes = [4, 8], strides = [1, 1]} : vector<6x8xf32> to vector<4x8xf32>
      %c25 = arith.constant 25 : index
      %c0_135 = arith.constant 0 : index
      %c0_136 = arith.constant 0 : index
      %181 = vector.load %arg5[%c25, %c0_135, %c0_136] : memref<27x8x8xf32, #tpu.memory_space<vmem>>, vector<1x8x8xf32>
      %182 = vector.shape_cast %181 : vector<1x8x8xf32> to vector<8x8xf32>
      %cst_137 = arith.constant dense<0.000000e+00> : vector<4x8xf32>
      %183 = tpu.matmul %180, %182, %cst_137 {dimension_numbers = #tpu.dot_dimension_numbers<[1], [0], [0], [1], [0, 0, 1, 1], [], []>} : vector<4x8xf32>, vector<8x8xf32>, vector<4x8xf32> -> vector<4x8xf32>
      %184 = arith.addf %179, %183 : vector<4x8xf32>
      %185 = vector.extract_strided_slice %174 {offsets = [2, 0], sizes = [4, 8], strides = [1, 1]} : vector<6x8xf32> to vector<4x8xf32>
      %c26 = arith.constant 26 : index
      %c0_138 = arith.constant 0 : index
      %c0_139 = arith.constant 0 : index
      %186 = vector.load %arg5[%c26, %c0_138, %c0_139] : memref<27x8x8xf32, #tpu.memory_space<vmem>>, vector<1x8x8xf32>
      %187 = vector.shape_cast %186 : vector<1x8x8xf32> to vector<8x8xf32>
      %cst_140 = arith.constant dense<0.000000e+00> : vector<4x8xf32>
      %188 = tpu.matmul %185, %187, %cst_140 {dimension_numbers = #tpu.dot_dimension_numbers<[1], [0], [0], [1], [0, 0, 1, 1], [], []>} : vector<4x8xf32>, vector<8x8xf32>, vector<4x8xf32> -> vector<4x8xf32>
      %189 = arith.addf %184, %188 : vector<4x8xf32>
      %c0_141 = arith.constant 0 : index
      %c0_142 = arith.constant 0 : index
      %190 = vector.load %arg6[%c0_141, %c0_142] : memref<1x8xf32, #tpu.memory_space<vmem>>, vector<1x8xf32>
      %191 = vector.broadcast %190 : vector<1x8xf32> to vector<4x8xf32>
      %192 = arith.addf %189, %191 : vector<4x8xf32>
      %c0_143 = arith.constant 0 : index
      %c0_144 = arith.constant 0 : index
      %193 = arith.index_cast %arg10 : i32 to index
      %c0_145 = arith.constant 0 : index
      %c0_146 = arith.constant 0 : index
      %194 = vector.load %arg7[%c0_143, %c0_144, %193, %c0_145, %c0_146] : memref<1x1x4x4x8xf32, #tpu.memory_space<vmem>>, vector<1x1x1x4x8xf32>
      %195 = vector.shape_cast %194 : vector<1x1x1x4x8xf32> to vector<4x8xf32>
      %196 = vector.shape_cast %192 : vector<4x8xf32> to vector<1x1x1x4x8xf32>
      tpu.vector_store %arg7[%c0_143, %c0_144, %193, %c0_145, %c0_146], %196 {strides = array<i32>} : memref<1x1x4x4x8xf32, #tpu.memory_space<vmem>>, vector<1x1x1x4x8xf32>,
      %cst_147 = arith.constant dense<0.000000e+00> : vector<8xf32>
      %197 = vector.multi_reduction <add>, %192, %cst_147 [0] : vector<4x8xf32> to vector<8xf32>
      %198 = vector.shape_cast %197 : vector<8xf32> to vector<1x8xf32>
      %199 = arith.addf %arg11, %198 : vector<1x8xf32>
      %200 = arith.mulf %192, %192 : vector<4x8xf32>
      %cst_148 = arith.constant dense<0.000000e+00> : vector<8xf32>
      %201 = vector.multi_reduction <add>, %200, %cst_148 [0] : vector<4x8xf32> to vector<8xf32>
      %202 = vector.shape_cast %201 : vector<8xf32> to vector<1x8xf32>
      %203 = arith.addf %arg12, %202 : vector<1x8xf32>
      scf.yield %199, %203 : vector<1x8xf32>, vector<1x8xf32>
    }
    %c4_i32_2 = arith.constant 4 : i32
    %c0 = arith.constant 0 : index
    %c0_3 = arith.constant 0 : index
    %c0_4 = arith.constant 0 : index
    %6 = vector.load %arg8[%c0, %c0_3, %c0_4] : memref<1x1x8xf32, #tpu.memory_space<vmem>>, vector<1x1x8xf32>
    %7 = vector.shape_cast %6 : vector<1x1x8xf32> to vector<1x8xf32>
    %8 = arith.addf %7, %5#0 : vector<1x8xf32>
    %c0_5 = arith.constant 0 : index
    %c0_6 = arith.constant 0 : index
    %c0_7 = arith.constant 0 : index
    %9 = vector.load %arg8[%c0_5, %c0_6, %c0_7] : memref<1x1x8xf32, #tpu.memory_space<vmem>>, vector<1x1x8xf32>
    %10 = vector.shape_cast %9 : vector<1x1x8xf32> to vector<1x8xf32>
    %11 = vector.shape_cast %8 : vector<1x8xf32> to vector<1x1x8xf32>
    tpu.vector_store %arg8[%c0_5, %c0_6, %c0_7], %11 {strides = array<i32>} : memref<1x1x8xf32, #tpu.memory_space<vmem>>, vector<1x1x8xf32>,
    %c0_8 = arith.constant 0 : index
    %c0_9 = arith.constant 0 : index
    %c0_10 = arith.constant 0 : index
    %12 = vector.load %arg9[%c0_8, %c0_9, %c0_10] : memref<1x1x8xf32, #tpu.memory_space<vmem>>, vector<1x1x8xf32>
    %13 = vector.shape_cast %12 : vector<1x1x8xf32> to vector<1x8xf32>
    %14 = arith.addf %13, %5#1 : vector<1x8xf32>
    %c0_11 = arith.constant 0 : index
    %c0_12 = arith.constant 0 : index
    %c0_13 = arith.constant 0 : index
    %15 = vector.load %arg9[%c0_11, %c0_12, %c0_13] : memref<1x1x8xf32, #tpu.memory_space<vmem>>, vector<1x1x8xf32>
    %16 = vector.shape_cast %15 : vector<1x1x8xf32> to vector<1x8xf32>
    %17 = vector.shape_cast %14 : vector<1x8xf32> to vector<1x1x8xf32>
    tpu.vector_store %arg9[%c0_11, %c0_12, %c0_13], %17 {strides = array<i32>} : memref<1x1x8xf32, #tpu.memory_space<vmem>>, vector<1x1x8xf32>,
    return
  }
  func.func @transform_0(%arg0: i32, %arg1: i32) -> (i32, i32, i32, i32, i32) {
    %c0_i32 = arith.constant 0 : i32
    %0 = arith.addi %arg1, %c0_i32 : i32
    %c0_i32_0 = arith.constant 0 : i32
    %c0_i32_1 = arith.constant 0 : i32
    %c0_i32_2 = arith.constant 0 : i32
    %c0_i32_3 = arith.constant 0 : i32
    return %arg0, %0, %c0_i32_0, %c0_i32_1, %c0_i32_2 : i32, i32, i32, i32, i32
  }
  func.func @transform_1(%arg0: i32, %arg1: i32) -> (i32, i32, i32, i32, i32) {
    %c1_i32 = arith.constant 1 : i32
    %0 = arith.addi %arg1, %c1_i32 : i32
    %c0_i32 = arith.constant 0 : i32
    %c0_i32_0 = arith.constant 0 : i32
    %c0_i32_1 = arith.constant 0 : i32
    %c0_i32_2 = arith.constant 0 : i32
    return %arg0, %0, %c0_i32, %c0_i32_0, %c0_i32_1 : i32, i32, i32, i32, i32
  }
  func.func @transform_2(%arg0: i32, %arg1: i32) -> (i32, i32, i32, i32, i32) {
    %c2_i32 = arith.constant 2 : i32
    %0 = arith.addi %arg1, %c2_i32 : i32
    %c0_i32 = arith.constant 0 : i32
    %c0_i32_0 = arith.constant 0 : i32
    %c0_i32_1 = arith.constant 0 : i32
    %c0_i32_2 = arith.constant 0 : i32
    return %arg0, %0, %c0_i32, %c0_i32_0, %c0_i32_1 : i32, i32, i32, i32, i32
  }
  func.func @transform_3(%arg0: i32, %arg1: i32) -> (i32, i32, i32) {
    %c0_i32 = arith.constant 0 : i32
    %c0_i32_0 = arith.constant 0 : i32
    %c0_i32_1 = arith.constant 0 : i32
    %c0_i32_2 = arith.constant 0 : i32
    return %c0_i32, %c0_i32_0, %c0_i32_1 : i32, i32, i32
  }
  func.func @transform_4(%arg0: i32, %arg1: i32) -> (i32, i32) {
    %c0_i32 = arith.constant 0 : i32
    %c0_i32_0 = arith.constant 0 : i32
    %c0_i32_1 = arith.constant 0 : i32
    return %c0_i32, %c0_i32_0 : i32, i32
  }
  func.func @transform_5(%arg0: i32, %arg1: i32) -> (i32, i32, i32, i32, i32) {
    %c0_i32 = arith.constant 0 : i32
    %c0_i32_0 = arith.constant 0 : i32
    %c0_i32_1 = arith.constant 0 : i32
    %c0_i32_2 = arith.constant 0 : i32
    return %arg0, %arg1, %c0_i32, %c0_i32_0, %c0_i32_1 : i32, i32, i32, i32, i32
  }
  func.func @transform_6(%arg0: i32, %arg1: i32) -> (i32, i32, i32) {
    %c0_i32 = arith.constant 0 : i32
    %c0_i32_0 = arith.constant 0 : i32
    %c0_i32_1 = arith.constant 0 : i32
    return %arg0, %c0_i32, %c0_i32_0 : i32, i32, i32
  }
  func.func @transform_7(%arg0: i32, %arg1: i32) -> (i32, i32, i32) {
    %c0_i32 = arith.constant 0 : i32
    %c0_i32_0 = arith.constant 0 : i32
    %c0_i32_1 = arith.constant 0 : i32
    return %arg0, %c0_i32, %c0_i32_0 : i32, i32, i32
  }
}

module attributes {stable_mosaic.version = 11 : i64} {
  func.func @norm_relu_kernel(%arg0: i32, %arg1: i32, %arg2: memref<1x1x4x4x8xf32, #tpu.memory_space<vmem>>, %arg3: memref<1x1x8xf32, #tpu.memory_space<vmem>>, %arg4: memref<1x1x8xf32, #tpu.memory_space<vmem>>, %arg5: memref<1x1x4x4x8xf32, #tpu.memory_space<vmem>>) attributes {dimension_semantics = [#tpu.dimension_semantics<parallel>, #tpu.dimension_semantics<parallel>], iteration_bounds = array<i64: 2, 4>, scalar_prefetch = 0 : i64, scratch_operands = 0 : i64, tpu.core_type = #tpu.core_type<tc>, window_params = [{transform_indices = @transform_0, window_bounds = array<i64: 1, 1, 4, 4, 8>}, {transform_indices = @transform_1, window_bounds = array<i64: 1, 1, 8>}, {transform_indices = @transform_2, window_bounds = array<i64: 1, 1, 8>}, {transform_indices = @transform_3, window_bounds = array<i64: 1, 1, 4, 4, 8>}]} {
    %c0 = arith.constant 0 : index
    %c0_0 = arith.constant 0 : index
    %c0_1 = arith.constant 0 : index
    %c0_2 = arith.constant 0 : index
    %c0_3 = arith.constant 0 : index
    %0 = vector.load %arg2[%c0, %c0_0, %c0_1, %c0_2, %c0_3] : memref<1x1x4x4x8xf32, #tpu.memory_space<vmem>>, vector<1x1x4x4x8xf32>
    %1 = vector.shape_cast %0 : vector<1x1x4x4x8xf32> to vector<4x4x8xf32>
    %c0_4 = arith.constant 0 : index
    %c0_5 = arith.constant 0 : index
    %c0_6 = arith.constant 0 : index
    %2 = vector.load %arg3[%c0_4, %c0_5, %c0_6] : memref<1x1x8xf32, #tpu.memory_space<vmem>>, vector<1x1x8xf32>
    %3 = vector.shape_cast %2 : vector<1x1x8xf32> to vector<1x8xf32>
    %4 = vector.shape_cast %3 : vector<1x8xf32> to vector<1x1x8xf32>
    %5 = vector.broadcast %4 : vector<1x1x8xf32> to vector<4x4x8xf32>
    %6 = arith.mulf %1, %5 : vector<4x4x8xf32>
    %c0_7 = arith.constant 0 : index
    %c0_8 = arith.constant 0 : index
    %c0_9 = arith.constant 0 : index
    %7 = vector.load %arg4[%c0_7, %c0_8, %c0_9] : memref<1x1x8xf32, #tpu.memory_space<vmem>>, vector<1x1x8xf32>
    %8 = vector.shape_cast %7 : vector<1x1x8xf32> to vector<1x8xf32>
    %9 = vector.shape_cast %8 : vector<1x8xf32> to vector<1x1x8xf32>
    %10 = vector.broadcast %9 : vector<1x1x8xf32> to vector<4x4x8xf32>
    %11 = arith.addf %6, %10 : vector<4x4x8xf32>
    %cst = arith.constant 0.000000e+00 : f32
    %12 = vector.broadcast %cst : f32 to vector<4x4x8xf32>
    %13 = arith.maximumf %11, %12 : vector<4x4x8xf32>
    %c0_10 = arith.constant 0 : index
    %c0_11 = arith.constant 0 : index
    %c0_12 = arith.constant 0 : index
    %c0_13 = arith.constant 0 : index
    %c0_14 = arith.constant 0 : index
    %14 = vector.load %arg5[%c0_10, %c0_11, %c0_12, %c0_13, %c0_14] : memref<1x1x4x4x8xf32, #tpu.memory_space<vmem>>, vector<1x1x4x4x8xf32>
    %15 = vector.shape_cast %14 : vector<1x1x4x4x8xf32> to vector<4x4x8xf32>
    %16 = vector.shape_cast %13 : vector<4x4x8xf32> to vector<1x1x4x4x8xf32>
    tpu.vector_store %arg5[%c0_10, %c0_11, %c0_12, %c0_13, %c0_14], %16 {strides = array<i32>} : memref<1x1x4x4x8xf32, #tpu.memory_space<vmem>>, vector<1x1x4x4x8xf32>,
    return
  }
  func.func @transform_0(%arg0: i32, %arg1: i32) -> (i32, i32, i32, i32, i32) {
    %c0_i32 = arith.constant 0 : i32
    %c0_i32_0 = arith.constant 0 : i32
    %c0_i32_1 = arith.constant 0 : i32
    %c0_i32_2 = arith.constant 0 : i32
    return %arg0, %arg1, %c0_i32, %c0_i32_0, %c0_i32_1 : i32, i32, i32, i32, i32
  }
  func.func @transform_1(%arg0: i32, %arg1: i32) -> (i32, i32, i32) {
    %c0_i32 = arith.constant 0 : i32
    %c0_i32_0 = arith.constant 0 : i32
    %c0_i32_1 = arith.constant 0 : i32
    return %arg0, %c0_i32, %c0_i32_0 : i32, i32, i32
  }
  func.func @transform_2(%arg0: i32, %arg1: i32) -> (i32, i32, i32) {
    %c0_i32 = arith.constant 0 : i32
    %c0_i32_0 = arith.constant 0 : i32
    %c0_i32_1 = arith.constant 0 : i32
    return %arg0, %c0_i32, %c0_i32_0 : i32, i32, i32
  }
  func.func @transform_3(%arg0: i32, %arg1: i32) -> (i32, i32, i32, i32, i32) {
    %c0_i32 = arith.constant 0 : i32
    %c0_i32_0 = arith.constant 0 : i32
    %c0_i32_1 = arith.constant 0 : i32
    %c0_i32_2 = arith.constant 0 : i32
    return %arg0, %arg1, %c0_i32, %c0_i32_0, %c0_i32_1 : i32, i32, i32, i32, i32
  }
}

</mosaic_0001>

<bundles_post_ra>
// kernel: down_forward.5
= control target key start
LH: loop header
LB: loop body
LE: loop exit
PB: predicated region body
PF: predicated region fallthrough
CT: control target
= control target key end

     0   :  { %s649_s9 = smov 0   ;;  %s651_s10 = smov 0   ;;  %s755_s0 = inlined_call_operand.vmem [shape: f32[2,8,8,4,4], index: 0, kind: input, shape index: {}, may-alias: {0,1}]   ;;  %s756_s1 = inlined_call_operand.vmem [shape: f32[2,8,8,4,4], index: 1, kind: input, shape index: {}, may-alias: {0,1}]   ;;  %s757_s2 = inlined_call_operand.vmem [shape: f32[2,6,6,6,4], index: 2, kind: output, shape index: {}]  }
   0x1   :  { %s653_s11 = smov 0   ;;  %s655_s12 = smov 0  }
   0x2   :  { %s657_s13 = smov 0  }
   0x3 LB: > { %s21_s14 = sadd.s32 1, %s623_s11  ;;  %s24_s15 = sadd.s32 1, %s627_s12  ;;  %s631_s13 = sphi %s657_s13, %s12_s13   ;;  %s627_s12 = sphi %s655_s12, %s762_s12   ;;  %s623_s11 = sphi %s653_s11, %s761_s11   ;;  %s619_s10 = sphi %s651_s10, %s760_s10   ;;  %s615_s9 = sphi %s649_s9, %s759_s9  }
   0x4   : > { %p22_p0 = scmp.ge.s32.totalorder %s21_s14, 6  ;;  %p502_p1 = scmp.ge.s32.totalorder %s631_s13, 1 }
   0x5   : > { %p200_p2 = scmp.lt.s32.totalorder %s631_s13, 13 }
   0x6   : > { %s764_s14 = smov (%p22_p0, %s21_s14), 0  ;;  %s766_s15 = smov (!%p22_p0, %s24_s15), %s627_s12 }
   0x7   : > { %p201_p3 = pnand %p502_p1, %p200_p2  ;;  %p26_p4 = scmp.ge.s32.totalorder %s766_s15, 2 }
   0x8   : > { %s503_s16 = sadd.s32 (!%p201_p3), 4294967295, %s615_s9  ;;  %p258_p5 = scmp.lt.s32.totalorder (!%p201_p3), %s619_s10, 1  ;;  %vm305_vm0 = vcmask (!%p201_p3), 29696   ;;  %v633_v0 = vmov (!%p201_p3), 0.0  }
   0x9   : > { %s768_s15 = smov (%p26_p4, %s766_s15), 0  ;;  %204 = sbr.rel (%p201_p3) target bundleno = 41 (0x29), region = 28 }
   0xa   : > { %s504_s17 = sshll.u32 (!%p201_p3), %s503_s16, 1  ;;  %p298_p8 = scmp.lt.s32.totalorder (!%p201_p3), %s615_s9, 5 }
   0xb   : > { %p254_p6 = scmp.gt.s32.totalorder (!%p201_p3), %s504_s17, 0  ;;  %p505_p7 = scmp.lt.s32.totalorder (!%p201_p3), %s504_s17, 7 }
   0xc   : > { %s275_s19 = sadd.s32 (!%p201_p3), 1, %s504_s17  ;;  %p312_p12 = scmp.ge.s32.totalorder (!%p201_p3), %s615_s9, 1 }
   0xd   : > { %p276_p9 = scmp.gt.s32.totalorder (!%p201_p3), %s275_s19, 0  ;;  %p515_p10 = scmp.lt.s32.totalorder (!%p201_p3), %s275_s19, 7 }
   0xe   : > { %p686_p0 = pnand (!%p201_p3), %p312_p12, %p298_p8 }
  0x10   : > { %s770_s10 = smov (!%p258_p5, %s619_s10), 1  ;;  %s774_s19 = smov (!%p276_p9, %s275_s19), 0 }
  0x11   : > { %s255_s18 = scalar_select %p254_p6, %s504_s17, 0 }
  0x12   : > { %s511_s20 = sshll.u32 %s770_s10, 6  ;;  %s778_s19 = smov (!%p515_p10, %s774_s19), 7  ;;  %vm349_vm1 = vcmask (!%p686_p0), 27648  }
  0x13   : > { %s772_s18 = smov (!%p505_p7, %s255_s18), 7  ;;  %p282_p13 = scmp.lt.s32.totalorder %s778_s19, 7 }
  0x14   : > { %p260_p11 = scmp.lt.s32.totalorder %s772_s18, 7  ;;  %s551_s28 = smul.u32 36, %s770_s10 }
  0x15   : > { %s780_s19 = smov (!%p282_p13, %s778_s19), 7  ;;  %s782_s9 = smov (!%p298_p8, %s615_s9), 5 }
  0x16   : > { %s776_s18 = smov (!%p260_p11, %s772_s18), 7  ;;  %s520_s29 = sshll.u32 %s780_s19, 3 }
  0x17   : > { %s510_s21 = sshll.u32 %s776_s18, 3  ;;  %s286_s30 = sadd.s32 %s520_s29, %s511_s20 }
  0x18   : > { %s264_s22 = sadd.s32 %s511_s20, %s510_s21  ;;  %s550_s3 = smul.u32 6, %s782_s9 }
  0x19   : > { %s512_s23 = sshll.u32 %s264_s22, 2  ;;  %s522_s4 = sshll.u32 %s286_s30, 2 }
  0x1a   : > { %s693_s27 = scalar_lea.vmem %s755_s0, %s512_s23  ;;  %s701_s7 = scalar_lea.vmem %s756_s1, %s522_s4 }
  0x1b   : > { %s302_s8 = sadd.s32 %s551_s28, %s550_s3  ;;  %317 = sbr.rel (%p686_p0) target bundleno = 41 (0x29), region = 32  ;;  %v318_v1 = vld [vmem:[%s693_s27] sm:$0xf] (!%p686_p0)  ;;  %v524_v2 = vld [vmem:[%s693_s27 + $0x4] sm:$0xf] (!%p686_p0) }
  0x1c   : > { %s523_s16 = sshll.u32 %s302_s8, 3  ;;  %v327_v3 = vld [vmem:[%s701_s7] sm:$0xf] (!%p686_p0)  ;;  %v528_v4 = vld [vmem:[%s701_s7 + $0x4] sm:$0xf] (!%p686_p0)  ;;  %v336_v5 = vmax.f32 (!%p686_p0), %v318_v1, %v524_v2 }
  0x1d   : > { %s706_s21 = scalar_lea.vmem %s757_s2, %s523_s16  ;;  %v319_v6 = vld [vmem:[%s693_s27 + $0x8] sm:$0xf] (!%p686_p0)  ;;  %v340_v7 = vmax.f32 (!%p686_p0), %v327_v3, %v528_v4  ;;  %v525_v8 = vld [vmem:[%s693_s27 + $0xc] sm:$0xf] (!%p686_p0)  ;;  %v320_v13 = vld [vmem:[%s693_s27 + $0x10] sm:$0xf] (!%p686_p0) }
  0x1e   : > { %306 = vst.msk [vmem:[%s706_s21] sm:$0x3f] %vm305_vm0, %v633_v0  ;;  %307 = vst.msk [vmem:[%s706_s21 + $0x8] sm:$0x3f] %vm305_vm0, %v633_v0  ;;  %v328_v9 = vld [vmem:[%s701_s7 + $0x8] sm:$0xf] (!%p686_p0)  ;;  %v337_v11 = vmax.f32 (!%p686_p0), %v319_v6, %v525_v8 }
  0x1f   : > { %308 = vst.msk [vmem:[%s706_s21 + $0x10] sm:$0x3f] %vm305_vm0, %v633_v0  ;;  %309 = vst.msk [vmem:[%s706_s21 + $0x18] sm:$0x3f] %vm305_vm0, %v633_v0  ;;  %v529_v10 = vld [vmem:[%s701_s7 + $0xc] sm:$0xf] (!%p686_p0)  ;;  %v344_v16 = vmax.f32 (!%p686_p0), %v336_v5, %v340_v7 }
  0x20   : > { %310 = vst.msk [vmem:[%s706_s21 + $0x20] sm:$0x3f] %vm305_vm0, %v633_v0  ;;  %311 = vst.msk [vmem:[%s706_s21 + $0x28] sm:$0x3f] %vm305_vm0, %v633_v0  ;;  %v341_v12 = vmax.f32 (!%p686_p0), %v328_v9, %v529_v10  ;;  %v526_v14 = vld [vmem:[%s693_s27 + $0x14] sm:$0xf] (!%p686_p0) }
  0x21   : > { %v329_v15 = vld [vmem:[%s701_s7 + $0x10] sm:$0xf] (!%p686_p0)  ;;  %v530_v17 = vld [vmem:[%s701_s7 + $0x14] sm:$0xf] (!%p686_p0)  ;;  %v338_v18 = vmax.f32 (!%p686_p0), %v320_v13, %v526_v14  ;;  %v321_v19 = vld [vmem:[%s693_s27 + $0x18] sm:$0xf] (!%p686_p0) }
  0x22   : > { %v527_v20 = vld [vmem:[%s693_s27 + $0x1c] sm:$0xf]  ;;  %v345_v21 = vmax.f32 %v337_v11, %v341_v12  ;;  %v342_v22 = vmax.f32 %v329_v15, %v530_v17  ;;  %v330_v23 = vld [vmem:[%s701_s7 + $0x18] sm:$0xf]  ;;  %532 = vst.msk [vmem:[%s706_s21 + $0x9] sm:$0xf] %vm349_vm1, %v344_v16 }
  0x23   : > { %v531_v24 = vld [vmem:[%s701_s7 + $0x1c] sm:$0xf]  ;;  %v339_v25 = vmax.f32 %v321_v19, %v527_v20 }
  0x24   : > { %v343_v26 = vmax.f32 %v330_v23, %v531_v24  ;;  %533 = vst.msk [vmem:[%s706_s21 + $0x11] sm:$0xf] %vm349_vm1, %v345_v21  ;;  %v346_v27 = vmax.f32 %v338_v18, %v342_v22 }
  0x26   : > { %v347_v28 = vmax.f32 %v339_v25, %v343_v26  ;;  %534 = vst.msk [vmem:[%s706_s21 + $0x19] sm:$0xf] %vm349_vm1, %v346_v27 }
  0x28   : > { %535 = vst.msk [vmem:[%s706_s21 + $0x21] sm:$0xf] %vm349_vm1, %v347_v28 }
  0x29 PF: > { %s12_s13 = sadd.s32 1, %s631_s13   ;;  %s759_s9 = smov %s623_s11 }
  0x2a   : > { %p9_p1 = scmp.ge.s32.totalorder %s12_s13, 14   ;;  %s760_s10 = smov %s627_s12 }
  0x2b   : > { %s761_s11 = smov %s764_s14  ;;  %s762_s12 = smov %s768_s15 }
  0x2c   :  { %11 = sbr.rel (!%p9_p1) target bundleno = 3 (0x3), region = 68 }

// kernel: down_forward.7
= control target key start
LH: loop header
LB: loop body
LE: loop exit
PB: predicated region body
PF: predicated region fallthrough
CT: control target
= control target key end

     0   :  { %s577_s12 = smov 0   ;;  %s579_s13 = smov 0   ;;  %s662_s0 = inlined_call_operand.vmem [shape: f32[2,4,4,4,8], index: 0, kind: input, shape index: {}]   ;;  %s663_s1 = inlined_call_operand.vmem [shape: f32[2,1,8], index: 1, kind: input, shape index: {}]   ;;  %s664_s2 = inlined_call_operand.vmem [shape: f32[2,1,8], index: 2, kind: input, shape index: {}]   ;;  %s665_s3 = inlined_call_operand.vmem [shape: f32[2,6,6,6,8], index: 3, kind: output, shape index: {}]  }
   0x1   :  { %s581_s14 = smov 0   ;;  %s583_s15 = smov 0  }
   0x2   :  { %s585_s16 = smov 0  }
   0x3 LB: > { %s22_s17 = sadd.s32 1, %s546_s14  ;;  %s25_s18 = sadd.s32 1, %s550_s15  ;;  %s554_s16 = sphi %s585_s16, %s13_s16   ;;  %s550_s15 = sphi %s583_s15, %s669_s15   ;;  %s546_s14 = sphi %s581_s14, %s668_s14   ;;  %s542_s13 = sphi %s579_s13, %s667_s13   ;;  %s538_s12 = sphi %s577_s12, %s666_s12  }
   0x4   : > { %p23_p0 = scmp.ge.s32.totalorder %s22_s17, 6  ;;  %p448_p1 = scmp.ge.s32.totalorder %s554_s16, 1 }
   0x5   : > { %p193_p2 = scmp.lt.s32.totalorder %s554_s16, 13 }
   0x6   : > { %s671_s17 = smov (%p23_p0, %s22_s17), 0  ;;  %s673_s18 = smov (!%p23_p0, %s25_s18), %s550_s15 }
   0x7   : > { %p194_p3 = pnand %p448_p1, %p193_p2  ;;  %p27_p4 = scmp.ge.s32.totalorder %s673_s18, 2 }
   0x8   : > { %s449_s19 = sadd.s32 (!%p194_p3), 4294967295, %s538_s12  ;;  %p241_p5 = scmp.lt.s32.totalorder (!%p194_p3), %s542_s13, 1  ;;  %vm270_vm0 = vcmask (!%p194_p3), 62464   ;;  %v556_v0 = vmov (!%p194_p3), 0.0  }
   0x9   : > { %s675_s18 = smov (%p27_p4, %s673_s18), 0  ;;  %197 = sbr.rel (%p194_p3) target bundleno = 35 (0x23), region = 32 }
   0xa   : > { %p237_p6 = scmp.gt.s32.totalorder (!%p194_p3), %s449_s19, 0  ;;  %p450_p7 = scmp.lt.s32.totalorder (!%p194_p3), %s449_s19, 3 }
   0xb   : > { %p263_p8 = scmp.lt.s32.totalorder (!%p194_p3), %s538_s12, 5  ;;  %p277_p10 = scmp.ge.s32.totalorder (!%p194_p3), %s538_s12, 1 }
   0xd   : > { %p279_p11 = pnand (!%p194_p3), %p277_p10, %p263_p8 }
  0x10   : > { %s677_s13 = smov (!%p241_p5, %s542_s13), 1  ;;  %s679_s19 = smov (!%p237_p6, %s449_s19), 0 }
  0x11   : > { %s456_s20 = sshll.u32 %s677_s13, 4  ;;  %s257_s23 = scalar_lea.vmem %s663_s1, %s677_s13  ;;  %vm314_vm1 = vcmask (!%p279_p11), 60416  }
  0x12   : > { %s681_s19 = smov (!%p450_p7, %s679_s19), 3  ;;  %s260_s26 = scalar_lea.vmem %s664_s2, %s677_s13  ;;  %v459_v2 = vld [vmem:[%s257_s23] ss:$0 sm:$0xff] (!%p279_p11) }
  0x13   : > { %p243_p9 = scmp.lt.s32.totalorder %s681_s19, 3  ;;  %s474_s27 = smul.u32 36, %s677_s13  ;;  %v460_v3 = vld [vmem:[%s260_s26] ss:$0 sm:$0xff] (!%p279_p11) }
  0x14   : > { %s264_s28 = scalar_select %p263_p8, %s538_s12, 5 }
  0x15   : > { %s683_s19 = smov (!%p243_p9, %s681_s19), 3 }
  0x16   : > { %s473_s29 = smul.u32 6, %s264_s28  ;;  %s455_s30 = sshll.u32 %s683_s19, 2 }
  0x17   : > { %s247_s4 = sadd.s32 %s456_s20, %s455_s30  ;;  %282 = sbr.rel (%p279_p11) target bundleno = 35 (0x23), region = 36 }
  0x18   : > { %s267_s5 = sadd.s32 %s474_s27, %s473_s29  ;;  %s457_s6 = sshll.u32 %s247_s4, 2 }
  0x19   : > { %s458_s7 = sshll.u32 %s267_s5, 3  ;;  %s249_s10 = scalar_lea.vmem %s662_s0, %s457_s6 }
  0x1a   : > { %s633_s22 = scalar_lea.vmem %s665_s3, %s458_s7  ;;  %v283_v1 = vld [vmem:[%s249_s10] sm:$0xf] (!%p279_p11)  ;;  %v284_v5 = vld [vmem:[%s249_s10 + $0x4] sm:$0xf] (!%p279_p11)  ;;  %v285_v6 = vld [vmem:[%s249_s10 + $0x8] sm:$0xf] (!%p279_p11) }
  0x1b   : > { %271 = vst.msk [vmem:[%s633_s22] sm:$0x3f] %vm270_vm0, %v556_v0  ;;  %272 = vst.msk [vmem:[%s633_s22 + $0x8] sm:$0x3f] %vm270_vm0, %v556_v0  ;;  %v294_v4 = vmul.f32 (!%p279_p11), %v459_v2, %v283_v1  ;;  %v295_v7 = vmul.f32 (!%p279_p11), %v459_v2, %v284_v5  ;;  %v296_v8 = vmul.f32 (!%p279_p11), %v459_v2, %v285_v6  ;;  %v286_v9 = vld [vmem:[%s249_s10 + $0xc] sm:$0xf] (!%p279_p11) }
  0x1c   : > { %273 = vst.msk [vmem:[%s633_s22 + $0x10] sm:$0x3f] %vm270_vm0, %v556_v0  ;;  %274 = vst.msk [vmem:[%s633_s22 + $0x18] sm:$0x3f] %vm270_vm0, %v556_v0  ;;  %v297_v11 = vmul.f32 (!%p279_p11), %v459_v2, %v286_v9 }
  0x1d   : > { %275 = vst.msk [vmem:[%s633_s22 + $0x20] sm:$0x3f] %vm270_vm0, %v556_v0  ;;  %276 = vst.msk [vmem:[%s633_s22 + $0x28] sm:$0x3f] %vm270_vm0, %v556_v0  ;;  %v305_v10 = vadd.f32 (!%p279_p11), %v460_v3, %v294_v4  ;;  %v306_v12 = vadd.f32 (!%p279_p11), %v460_v3, %v295_v7  ;;  %v307_v13 = vadd.f32 (!%p279_p11), %v460_v3, %v296_v8 }
  0x1e   : > { %v308_v15 = vadd.f32 %v460_v3, %v297_v11 }
  0x1f   : > { %v309_v14 = vmax.f32 %v305_v10, 0.0  ;;  %v310_v16 = vmax.f32 %v306_v12, 0.0  ;;  %v311_v17 = vmax.f32 %v307_v13, 0.0 }
  0x20   : > { %v312_v18 = vmax.f32 %v308_v15, 0.0 }
  0x21   : > { %461 = vst.msk [vmem:[%s633_s22 + $0x9] sm:$0xf] %vm314_vm1, %v309_v14  ;;  %462 = vst.msk [vmem:[%s633_s22 + $0x11] sm:$0xf] %vm314_vm1, %v310_v16 }
  0x22   : > { %463 = vst.msk [vmem:[%s633_s22 + $0x19] sm:$0xf] %vm314_vm1, %v311_v17  ;;  %464 = vst.msk [vmem:[%s633_s22 + $0x21] sm:$0xf] %vm314_vm1, %v312_v18 }
  0x23 PF: > { %s13_s16 = sadd.s32 1, %s554_s16   ;;  %s666_s12 = smov %s546_s14 }
  0x24   : > { %p10_p12 = scmp.ge.s32.totalorder %s13_s16, 14   ;;  %s667_s13 = smov %s550_s15 }
  0x25   : > { %s668_s14 = smov %s671_s17  ;;  %s669_s15 = smov %s675_s18 }
  0x26   :  { %12 = sbr.rel (!%p10_p12) target bundleno = 3 (0x3), region = 73 }

// kernel: down_forward.6
= control target key start
LH: loop header
LB: loop body
LE: loop exit
PB: predicated region body
PF: predicated region fallthrough
CT: control target
= control target key end

     0   :  { %s3320_s24 = smov 0   ;;  %s3322_s25 = smov 0   ;;  %s3674_s0 = inlined_call_operand.vmem [shape: f32[2,6,6,6,4], index: 0, kind: input, shape index: {}, may-alias: {0,1,2}]   ;;  %s3675_s1 = inlined_call_operand.vmem [shape: f32[2,6,6,6,4], index: 1, kind: input, shape index: {}, may-alias: {0,1,2}]   ;;  %s3676_s2 = inlined_call_operand.vmem [shape: f32[2,6,6,6,4], index: 2, kind: input, shape index: {}, may-alias: {0,1,2}]   ;;  %s3677_s3 = inlined_call_operand.vmem [shape: f32[27,4,8], index: 3, kind: input, shape index: {}]   ;;  %s3678_s4 = inlined_call_operand.vmem [shape: f32[1,8], index: 4, kind: input, shape index: {}]   ;;  %s3679_s5 = inlined_call_operand.vmem [shape: f32[2,4,4,4,8], index: 5, kind: output, shape index: {0}]   ;;  %s3680_s6 = inlined_call_operand.vmem [shape: f32[2,1,8], index: 6, kind: output, shape index: {1}]   ;;  %s3681_s7 = inlined_call_operand.vmem [shape: f32[2,1,8], index: 7, kind: output, shape index: {2}]  }
   0x1   :  { %3683 = sst [smem:[#allocation5_spill]] %s3674_s0  ;;  %s3324_s26 = smov 0  }
   0x2   :  { %3684 = sst [smem:[#allocation6_spill]] %s3680_s6  ;;  %s3326_s27 = smov 0  }
   0x3   :  { %3685 = sst [smem:[#allocation7_spill]] %s3681_s7  ;;  %s3328_s28 = smov 0  }
   0x4 LB: > { %3686 = sst [smem:[#allocation2_spill]] %s3259_s27  ;;  %s27_s29 = sadd.s32 1, %s3255_s26  ;;  %s3263_s28 = sphi %s3328_s28, %s18_s28   ;;  %s3259_s27 = sphi %s3326_s27, %s3696_s27   ;;  %s3255_s26 = sphi %s3324_s26, %s3698_s26   ;;  %s3251_s25 = sphi %s3322_s25, %s3694_s25   ;;  %s3247_s24 = sphi %s3320_s24, %s3697_s24  }
   0x5   : > { %s30_s30 = sadd.s32 1, %s3259_s27  ;;  %p28_p0 = scmp.ge.s32.totalorder %s27_s29, 4 }
   0x6   : > { %p2848_p1 = scmp.ge.s32.totalorder %s3263_s28, 1  ;;  %p302_p2 = scmp.lt.s32.totalorder %s3263_s28, 9 }
   0x7   : > { %s3700_s29 = smov (%p28_p0, %s27_s29), 0  ;;  %s3702_s30 = smov (!%p28_p0, %s30_s30), %s3259_s27 }
   0x8   : > { %3687 = sst [smem:[#allocation3_spill]] %s3700_s29  ;;  %p303_p3 = pnand %p2848_p1, %p302_p2 }
   0x9   : > { %p32_p4 = scmp.ge.s32.totalorder %s3702_s30, 2  ;;  %p368_p5 = scmp.lt.s32.totalorder (!%p303_p3), %s3251_s25, 1 }
   0xa   : > { %306 = sbr.rel (%p303_p3) target bundleno = 331 (0x14b), region = 40  ;;  %p370_p6 = scmp.lt.s32.totalorder (!%p303_p3), %s3247_s24, 5 }
   0xb   : > { %s3704_s30 = smov (%p32_p4, %s3702_s30), 0  ;;  %s377_s8 = sadd.s32 (!%p303_p3), 1, %s3247_s24 }
   0xc   : > { %3688 = sst [smem:[#allocation4_spill]] %s3704_s30  ;;  %s388_s9 = sadd.s32 (!%p303_p3), 2, %s3247_s24 }
   0xd   : > { %p380_p7 = scmp.lt.s32.totalorder (!%p303_p3), %s377_s8, 5  ;;  %p391_p8 = scmp.lt.s32.totalorder (!%p303_p3), %s388_s9, 5 }
   0xe   : > { %s3689_s0 = sld [smem:[#allocation5_spill]] (!%p303_p3)  ;;  %p401_p9 = scmp.lt.s32.totalorder (!%p303_p3), %s3247_s24, 3 }
   0xf   : > { %s3690_s6 = sld [smem:[#allocation6_spill]] (!%p303_p3)  ;;  %s3691_s7 = sld [smem:[#allocation7_spill]] (!%p303_p3) }
  0x10   : > { %p2855_p10 = scmp.ne.s32.totalorder (!%p303_p3), %s3247_s24, 0 }
  0x11   : > { %s3706_s25 = smov (!%p368_p5, %s3251_s25), 1  ;;  %s3708_s8 = smov (!%p380_p7, %s377_s8), 5 }
  0x12   : > { %s371_s10 = scalar_select %p370_p6, %s3247_s24, 5 }
  0x13   : > { %s3143_s11 = smul.u32 36, %s3706_s25  ;;  %s3710_s9 = smov (!%p391_p8, %s388_s9), 5  ;;  %vm418_vm0 = vcmask (!%p2855_p10), 57344   ;;  %v3277_v0 = vmov (!%p2855_p10), 0.0  }
  0x14   : > { %s3142_s12 = smul.u32 6, %s371_s10 }
  0x15   : > { %s3144_s15 = smul.u32 6, %s3708_s8  ;;  %s3365_s22 = scalar_lea.vmem %s3690_s6, %s3706_s25 }
  0x16   : > { %s374_s13 = sadd.s32 %s3143_s11, %s3142_s12  ;;  %s3370_s12 = scalar_lea.vmem %s3691_s7, %s3706_s25  ;;  %419 = vst.msk [vmem:[%s3365_s22] sm:$0x1] (!%p2855_p10), %vm418_vm0, %v3277_v0 }
  0x17   : > { %s2849_s14 = sshll.u32 %s374_s13, 3  ;;  %s384_s19 = sadd.s32 %s3144_s15, %s3143_s11  ;;  %420 = vst.msk [vmem:[%s3370_s12] sm:$0x1] (!%p2855_p10), %vm418_vm0, %v3277_v0 }
  0x18   : > { %s3359_s18 = scalar_lea.vmem %s3689_s0, %s2849_s14  ;;  %s2850_s23 = sshll.u32 %s384_s19, 3 }
  0x19   : > { %s3375_s29 = scalar_lea.vmem %s3675_s1, %s2850_s23  ;;  %s2853_s14 = sshll.u32 %s3706_s25, 4 }
  0x1a   : > { %s402_s16 = scalar_select %p401_p9, %s3247_s24, 3 }
  0x1b   : > { %s3145_s15 = smul.u32 6, %s3710_s9 }
  0x1c   : > { %s2852_s17 = sshll.u32 %s402_s16, 2  ;;  %417 = sbr.rel (%p2855_p10) target bundleno = 35 (0x23), region = 44 }
  0x1d   : > { %s395_s0 = sadd.s32 %s3145_s15, %s3143_s11  ;;  %s405_s20 = sadd.s32 %s2853_s14, %s2852_s17 }
  0x1e   : > { %s2851_s21 = sshll.u32 %s395_s0, 3  ;;  %s2854_s6 = sshll.u32 %s405_s20, 2 }
  0x1f   : > { %s3381_s30 = scalar_lea.vmem %s3676_s2, %s2851_s21  ;;  %s3386_s13 = scalar_lea.vmem %s3679_s5, %s2854_s6 }
  0x23 PF: > { %v3391_v1 = vmov 0.0   ;;  %v3393_v2 = vmov 0.0   ;;  %s3395_s0 = smov 0  }
  0x24 LB: >> { %v2857_v3 = vld [vmem:[%s3677_s3 + $0x4] sm:$0xf]  ;;  %vm440_vm1 = vcmask 1043456   ;;  %v3278_v4 = vmov 0.0   ;;  %v432_v5 = vld [vmem:[%s3677_s3] sm:$0xf]  ;;  %s3275_s0 = sphi %s3395_s0, %s426_s0   ;;  %v3271_v2 = vphi %v3393_v2, %v3693_v2   ;;  %v3267_v1 = vphi %v3391_v1, %v3692_v1  }
  0x25   : >> { %3007 = vmatprep.subr.mxu0 %v3278_v4  ;;  %3012 = vmatprep.subr.mxu1 %v3278_v4  ;;  %vm3279_vm2 = vmmov 0   ;;  %s3418_s27 = sshll.u32 %s3275_s0, 3  ;;  %vm437_vm3 = vcmask 31744   ;;  %v2867_v6 = vld [vmem:[%s3677_s3 + $0xc] sm:$0xf]  ;;  %s2950_s8 = sshll.u32 %s3275_s0, 2 }
  0x26   : >> { %3008 = vmatpush3.msk.msra.mxu0 %vm440_vm1, %v2857_v3  ;;  %3009 = vmatprep.mubr.msk.f32.mxu0 %vm3279_vm2, %v3278_v4  ;;  %s430_s9 = scalar_lea.vmem %s3359_s18, %s3418_s27  ;;  %v2862_v9 = vld [vmem:[%s3677_s3 + $0x8] sm:$0xf]  ;;  %v2873_v12 = vld [vmem:[%s3677_s3 + $0x14] sm:$0xf]  ;;  %v2870_v13 = vld [vmem:[%s3677_s3 + $0x10] sm:$0xf]  ;;  %s3476_s25 = scalar_lea.vmem %s3375_s29, %s3418_s27 }
  0x27   : >> { %3013 = vmatpush3.msk.msra.mxu1 %vm440_vm1, %v432_v5  ;;  %3014 = vmatprep.mubr.msk.f32.mxu1 %vm3279_vm2, %v3278_v4  ;;  %v431_v7 = vld [vmem:[%s430_s9] sm:$0x3f]  ;;  %v2866_v10 = vld [vmem:[%s430_s9 + $0x8] sm:$0x3f]  ;;  %v2877_v15 = vld [vmem:[%s430_s9 + $0x10] sm:$0x3f]  ;;  %s3547_s11 = scalar_lea.vmem %s3381_s30, %s3418_s27  ;;  %s2593_s15 = scalar_lea.vmem %s3386_s13, %s2950_s8 }
  0x28   : >> { %3017 = vmatprep.subr.mxu0 %v3278_v4  ;;  %3022 = vmatprep.subr.mxu1 %v3278_v4  ;;  %v436_v8 = vrot.slane %v431_v7, 1  ;;  %v591_v11 = vrot.slane %v431_v7, 2  ;;  %v832_v14 = vrot.slane %v2866_v10, 2  ;;  %v753_v16 = vrot.slane %v2866_v10, 1  ;;  %v2881_v17 = vld [vmem:[%s3677_s3 + $0x1c] sm:$0xf] }
  0x29   : >> { %3015 = vmatmul.mubr.msk.f32.vlgmr.msra.gmra.mrb[0].mxu1 %vm437_vm3, %v431_v7  ;;  %v2878_v18 = vld [vmem:[%s3677_s3 + $0x18] sm:$0xf]  ;;  %v994_v19 = vrot.slane %v2877_v15, 1  ;;  %v2887_v20 = vld [vmem:[%s3677_s3 + $0x24] sm:$0xf]  ;;  %v1073_v23 = vrot.slane %v2877_v15, 2 }
  0x2a   : >> { %3023 = vmatpush3.msk.msra.mxu1 %vm440_vm1, %v2867_v6  ;;  %3024 = vmatprep.mubr.msk.f32.mxu1 %vm3279_vm2, %v3278_v4  ;;  %v2884_v21 = vld [vmem:[%s3677_s3 + $0x20] sm:$0xf]  ;;  %v2893_v24 = vld [vmem:[%s3677_s3 + $0x2c] sm:$0xf]  ;;  %v2890_v25 = vld [vmem:[%s3677_s3 + $0x28] sm:$0xf] }
  0x2b   : >> { %3010 = vmatmul.mubr.msk.f32.vlgmr.msra.gmra.mrb[0].mxu0 %vm437_vm3, %v436_v8  ;;  %3032 = vmatprep.subr.mxu1 %v3278_v4  ;;  %v1151_v22 = vld [vmem:[%s3476_s25] sm:$0x3f]  ;;  %v2897_v27 = vld [vmem:[%s3476_s25 + $0x8] sm:$0x3f]  ;;  %v2901_v29 = vld [vmem:[%s3677_s3 + $0x34] sm:$0xf] }
  0x2c   : >> { %3018 = vmatpush3.msk.msra.mxu0 %vm440_vm1, %v2862_v9  ;;  %3019 = vmatprep.mubr.msk.f32.mxu0 %vm3279_vm2, %v3278_v4  ;;  %v1312_v26 = vrot.slane %v1151_v22, 2  ;;  %v1233_v28 = vrot.slane %v1151_v22, 1  ;;  %v2898_v30 = vld [vmem:[%s3677_s3 + $0x30] sm:$0xf]  ;;  %v1472_v31 = vrot.slane %v2897_v27, 1  ;;  %v1551_v35 = vrot.slane %v2897_v27, 2 }
  0x2d   : >> { %3027 = vmatprep.subr.mxu0 %v3278_v4  ;;  %3025 = vmatmul.mubr.msk.f32.vlgmr.msra.gmra.mrb[2].mxu1 %vm437_vm3, %v2866_v10  ;;  %v2909_v32 = vld [vmem:[%s3677_s3 + $0x3c] sm:$0xf]  ;;  %v2904_v33 = vld [vmem:[%s3677_s3 + $0x38] sm:$0xf]  ;;  %v2908_v34 = vld [vmem:[%s3476_s25 + $0x10] sm:$0x3f] }
  0x2e   : >> { %3033 = vmatpush3.msk.msra.mxu1 %vm440_vm1, %v2873_v12  ;;  %3034 = vmatprep.mubr.msk.f32.mxu1 %vm3279_vm2, %v3278_v4  ;;  %v2915_v36 = vld [vmem:[%s3677_s3 + $0x44] sm:$0xf]  ;;  %v2912_v37 = vld [vmem:[%s3677_s3 + $0x40] sm:$0xf]  ;;  %v1790_v38 = vrot.slane %v2908_v34, 2  ;;  %v1711_v40 = vrot.slane %v2908_v34, 1 }
  0x2f   : >> { %3020 = vmatmul.mubr.msk.f32.vlgmr.msra.gmra.mrb[2].mxu0 %vm437_vm3, %v591_v11  ;;  %3042 = vmatprep.subr.mxu1 %v3278_v4  ;;  %v1868_v39 = vld [vmem:[%s3547_s11] sm:$0x3f]  ;;  %v2921_v41 = vld [vmem:[%s3677_s3 + $0x4c] sm:$0xf]  ;;  %v2918_v42 = vld [vmem:[%s3677_s3 + $0x48] sm:$0xf] }
  0x30   : >> { %3028 = vmatpush3.msk.msra.mxu0 %vm440_vm1, %v2870_v13  ;;  %3029 = vmatprep.mubr.msk.f32.mxu0 %vm3279_vm2, %v3278_v4  ;;  %v1950_v43 = vrot.slane %v1868_v39, 1  ;;  %v2929_v44 = vld [vmem:[%s3677_s3 + $0x54] sm:$0xf]  ;;  %v2924_v45 = vld [vmem:[%s3677_s3 + $0x50] sm:$0xf]  ;;  %v2029_v47 = vrot.slane %v1868_v39, 2 }
  0x31   : >> { %3037 = vmatprep.subr.mxu0 %v3278_v4  ;;  %3035 = vmatmul.mubr.msk.f32.vlgmr.msra.gmra.mrb[4].mxu1 %vm437_vm3, %v832_v14  ;;  %v2928_v46 = vld [vmem:[%s3547_s11 + $0x8] sm:$0x3f]  ;;  %v2935_v48 = vld [vmem:[%s3677_s3 + $0x5c] sm:$0xf]  ;;  %v2932_v49 = vld [vmem:[%s3677_s3 + $0x58] sm:$0xf] }
  0x32   : >> { %3043 = vmatpush3.msk.msra.mxu1 %vm440_vm1, %v2881_v17  ;;  %3044 = vmatprep.mubr.msk.f32.mxu1 %vm3279_vm2, %v3278_v4  ;;  %v2268_v50 = vrot.slane %v2928_v46, 2  ;;  %v2939_v51 = vld [vmem:[%s3547_s11 + $0x10] sm:$0x3f]  ;;  %v2189_v52 = vrot.slane %v2928_v46, 1  ;;  %v2943_v53 = vld [vmem:[%s3677_s3 + $0x64] sm:$0xf] }
  0x33   : >> { %3030 = vmatmul.mubr.msk.f32.vlgmr.msra.gmra.mrb[4].mxu0 %vm437_vm3, %v753_v16  ;;  %3052 = vmatprep.subr.mxu1 %v3278_v4  ;;  %v2940_v54 = vld [vmem:[%s3677_s3 + $0x60] sm:$0xf]  ;;  %v2428_v55 = vrot.slane %v2939_v51, 1  ;;  %v2946_v56 = vld [vmem:[%s3677_s3 + $0x68] sm:$0xf]  ;;  %v2507_v57 = vrot.slane %v2939_v51, 2 }
  0x34   : >> { %3038 = vmatpush3.msk.msra.mxu0 %vm440_vm1, %v2878_v18  ;;  %3039 = vmatprep.mubr.msk.f32.mxu0 %vm3279_vm2, %v3278_v4  ;;  %vm2594_vm4 = vcmask 60416   ;;  %s426_s0 = sadd.s32 1, %s3275_s0  }
  0x35   : >> { %3047 = vmatprep.subr.mxu0 %v3278_v4  ;;  %3045 = vmatmul.mubr.msk.f32.vlgmr.msra.gmra.mrb[6].mxu1 %vm437_vm3, %v994_v19  ;;  %p423_p11 = scmp.ge.s32.totalorder %s426_s0, 4  }
  0x36   : >> { %3053 = vmatpush3.msk.msra.mxu1 %vm440_vm1, %v2887_v20  ;;  %3054 = vmatprep.mubr.msk.f32.mxu1 %vm3279_vm2, %v3278_v4  ;;  %vm2615_vm5 = vcmask (%p423_p11), 57344  }
  0x37   : >> { %3040 = vmatmul.mubr.msk.f32.vlgmr.msra.gmra.mrb[6].mxu0 %vm437_vm3, %v2877_v15  ;;  %3062 = vmatprep.subr.mxu1 %v3278_v4 }
  0x38   : >> { %3048 = vmatpush3.msk.msra.mxu0 %vm440_vm1, %v2884_v21  ;;  %3049 = vmatprep.mubr.msk.f32.mxu0 %vm3279_vm2, %v3278_v4 }
  0x39   : >> { %3057 = vmatprep.subr.mxu0 %v3278_v4  ;;  %3055 = vmatmul.mubr.msk.f32.vlgmr.msra.gmra.mrb[8].mxu1 %vm437_vm3, %v1151_v22 }
  0x3a   : >> { %3063 = vmatpush3.msk.msra.mxu1 %vm440_vm1, %v2893_v24  ;;  %3064 = vmatprep.mubr.msk.f32.mxu1 %vm3279_vm2, %v3278_v4 }
  0x3b   : >> { %3050 = vmatmul.mubr.msk.f32.vlgmr.msra.gmra.mrb[8].mxu0 %vm437_vm3, %v1073_v23  ;;  %3072 = vmatprep.subr.mxu1 %v3278_v4 }
  0x3c   : >> { %3058 = vmatpush3.msk.msra.mxu0 %vm440_vm1, %v2890_v25  ;;  %3059 = vmatprep.mubr.msk.f32.mxu0 %vm3279_vm2, %v3278_v4 }
  0x3d   : >> { %3067 = vmatprep.subr.mxu0 %v3278_v4  ;;  %3065 = vmatmul.mubr.msk.f32.vlgmr.msra.gmra.mrb[10].mxu1 %vm437_vm3, %v1312_v26 }
  0x3e   : >> { %3073 = vmatpush3.msk.msra.mxu1 %vm440_vm1, %v2901_v29  ;;  %3074 = vmatprep.mubr.msk.f32.mxu1 %vm3279_vm2, %v3278_v4 }
  0x3f   : >> { %3060 = vmatmul.mubr.msk.f32.vlgmr.msra.gmra.mrb[10].mxu0 %vm437_vm3, %v1233_v28  ;;  %3082 = vmatprep.subr.mxu1 %v3278_v4 }
  0x40   : >> { %3068 = vmatpush3.msk.msra.mxu0 %vm440_vm1, %v2898_v30  ;;  %3069 = vmatprep.mubr.msk.f32.mxu0 %vm3279_vm2, %v3278_v4 }
  0x41   : >> { %3077 = vmatprep.subr.mxu0 %v3278_v4  ;;  %3075 = vmatmul.mubr.msk.f32.vlgmr.msra.gmra.mrb[12].mxu1 %vm437_vm3, %v1472_v31 }
  0x42   : >> { %3083 = vmatpush3.msk.msra.mxu1 %vm440_vm1, %v2909_v32  ;;  %3084 = vmatprep.mubr.msk.f32.mxu1 %vm3279_vm2, %v3278_v4 }
  0x43   : >> { %3070 = vmatmul.mubr.msk.f32.vlgmr.msra.gmra.mrb[12].mxu0 %vm437_vm3, %v2897_v27  ;;  %3092 = vmatprep.subr.mxu1 %v3278_v4 }
  0x44   : >> { %3078 = vmatpush3.msk.msra.mxu0 %vm440_vm1, %v2904_v33  ;;  %3079 = vmatprep.mubr.msk.f32.mxu0 %vm3279_vm2, %v3278_v4 }
  0x45   : >> { %3087 = vmatprep.subr.mxu0 %v3278_v4  ;;  %3085 = vmatmul.mubr.msk.f32.vlgmr.msra.gmra.mrb[14].mxu1 %vm437_vm3, %v2908_v34 }
  0x46   : >> { %3093 = vmatpush3.msk.msra.mxu1 %vm440_vm1, %v2915_v36  ;;  %3094 = vmatprep.mubr.msk.f32.mxu1 %vm3279_vm2, %v3278_v4 }
  0x47   : >> { %3080 = vmatmul.mubr.msk.f32.vlgmr.msra.gmra.mrb[14].mxu0 %vm437_vm3, %v1551_v35  ;;  %3102 = vmatprep.subr.mxu1 %v3278_v4 }
  0x48   : >> { %3088 = vmatpush3.msk.msra.mxu0 %vm440_vm1, %v2912_v37  ;;  %3089 = vmatprep.mubr.msk.f32.mxu0 %vm3279_vm2, %v3278_v4 }
  0x49   : >> { %3097 = vmatprep.subr.mxu0 %v3278_v4  ;;  %3095 = vmatmul.mubr.msk.f32.vlgmr.msra.gmra.mrb[16].mxu1 %vm437_vm3, %v1790_v38 }
  0x4a   : >> { %3103 = vmatpush3.msk.msra.mxu1 %vm440_vm1, %v2921_v41  ;;  %3104 = vmatprep.mubr.msk.f32.mxu1 %vm3279_vm2, %v3278_v4 }
  0x4b   : >> { %3090 = vmatmul.mubr.msk.f32.vlgmr.msra.gmra.mrb[16].mxu0 %vm437_vm3, %v1711_v40  ;;  %3112 = vmatprep.subr.mxu1 %v3278_v4 }
  0x4c   : >> { %3098 = vmatpush3.msk.msra.mxu0 %vm440_vm1, %v2918_v42  ;;  %3099 = vmatprep.mubr.msk.f32.mxu0 %vm3279_vm2, %v3278_v4 }
  0x4d   : >> { %3107 = vmatprep.subr.mxu0 %v3278_v4  ;;  %3105 = vmatmul.mubr.msk.f32.vlgmr.msra.gmra.mrb[18].mxu1 %vm437_vm3, %v1950_v43 }
  0x4e   : >> { %3113 = vmatpush3.msk.msra.mxu1 %vm440_vm1, %v2929_v44  ;;  %3114 = vmatprep.mubr.msk.f32.mxu1 %vm3279_vm2, %v3278_v4 }
  0x4f   : >> { %3100 = vmatmul.mubr.msk.f32.vlgmr.msra.gmra.mrb[18].mxu0 %vm437_vm3, %v1868_v39  ;;  %3122 = vmatprep.subr.mxu1 %v3278_v4 }
  0x50   : >> { %3108 = vmatpush3.msk.msra.mxu0 %vm440_vm1, %v2924_v45  ;;  %3109 = vmatprep.mubr.msk.f32.mxu0 %vm3279_vm2, %v3278_v4 }
  0x51   : >> { %3117 = vmatprep.subr.mxu0 %v3278_v4  ;;  %3115 = vmatmul.mubr.msk.f32.vlgmr.msra.gmra.mrb[20].mxu1 %vm437_vm3, %v2928_v46 }
  0x52   : >> { %3123 = vmatpush3.msk.msra.mxu1 %vm440_vm1, %v2935_v48  ;;  %3124 = vmatprep.mubr.msk.f32.mxu1 %vm3279_vm2, %v3278_v4 }
  0x53   : >> { %3110 = vmatmul.mubr.msk.f32.vlgmr.msra.gmra.mrb[20].mxu0 %vm437_vm3, %v2029_v47  ;;  %3132 = vmatprep.subr.mxu1 %v3278_v4 }
  0x54   : >> { %3118 = vmatpush3.msk.msra.mxu0 %vm440_vm1, %v2932_v49  ;;  %3119 = vmatprep.mubr.msk.f32.mxu0 %vm3279_vm2, %v3278_v4 }
  0x55   : >> { %3127 = vmatprep.subr.mxu0 %v3278_v4  ;;  %3125 = vmatmul.mubr.msk.f32.vlgmr.msra.gmra.mrb[22].mxu1 %vm437_vm3, %v2268_v50 }
  0x56   : >> { %3133 = vmatpush3.msk.msra.mxu1 %vm440_vm1, %v2943_v53  ;;  %3134 = vmatprep.mubr.msk.f32.mxu1 %vm3279_vm2, %v3278_v4 }
  0x57   : >> { %3120 = vmatmul.mubr.msk.f32.vlgmr.msra.gmra.mrb[22].mxu0 %vm437_vm3, %v2189_v52 }
  0x58   : >> { %3128 = vmatpush3.msk.msra.mxu0 %vm440_vm1, %v2940_v54  ;;  %3129 = vmatprep.mubr.msk.f32.mxu0 %vm3279_vm2, %v3278_v4 }
  0x59   : >> { %3137 = vmatprep.subr.mxu0 %v3278_v4  ;;  %3135 = vmatmul.mubr.msk.f32.vlgmr.msra.gmra.mrb[24].mxu1 %vm437_vm3, %v2428_v55 }
  0x5b   : >> { %3130 = vmatmul.mubr.msk.f32.vlgmr.msra.gmra.mrb[24].mxu0 %vm437_vm3, %v2939_v51 }
  0x5c   : >> { %3138 = vmatpush3.msk.msra.mxu0 %vm440_vm1, %v2946_v56  ;;  %3139 = vmatprep.mubr.msk.f32.mxu0 %vm3279_vm2, %v3278_v4 }
  0x5f   : >> { %3140 = vmatmul.mubr.msk.f32.vlgmr.msra.gmra.mrb[26].mxu0 %vm437_vm3, %v2507_v57 }
  0xfc   : >> { %v585_v58 = vpop.f32.mrb[0].mxu1 }
  0xfd   : >> { %v3016_v59 = vpop.f32.mrb[1].mxu1 }
  0xfe   : >> { %v510_v60 = vpop.f32.mrb[0].mxu0 }
  0xff   : >> { %v586_v61 = vadd.f32 %v585_v58, %v510_v60  ;;  %v3011_v62 = vpop.f32.mrb[1].mxu0 }
 0x100   : >> { %v746_v63 = vpop.f32.mrb[2].mxu1 }
 0x101   : >> { %v3026_v0 = vpop.f32.mrb[3].mxu1 }
 0x102   : >> { %v663_v3 = vpop.f32.mrb[2].mxu0 }
 0x103   : >> { %v667_v5 = vadd.f32 %v663_v3, %v586_v61  ;;  %v3021_v6 = vpop.f32.mrb[3].mxu0 }
 0x104   : >> { %v904_v7 = vpop.f32.mrb[4].mxu1 }
 0x105   : >> { %v750_v8 = vadd.f32 %v746_v63, %v667_v5  ;;  %v3036_v9 = vpop.f32.mrb[5].mxu1 }
 0x106   : >> { %v825_v10 = vpop.f32.mrb[4].mxu0 }
 0x107   : >> { %v829_v11 = vadd.f32 %v825_v10, %v750_v8  ;;  %v3031_v12 = vpop.f32.mrb[5].mxu0 }
 0x108   : >> { %v1066_v13 = vpop.f32.mrb[6].mxu1 }
 0x109   : >> { %v908_v4 = vadd.f32 %v904_v7, %v829_v11  ;;  %v3046_v14 = vpop.f32.mrb[7].mxu1 }
 0x10a   : >> { %v987_v15 = vpop.f32.mrb[6].mxu0 }
 0x10b   : >> { %v991_v16 = vadd.f32 %v987_v15, %v908_v4  ;;  %v3041_v17 = vpop.f32.mrb[7].mxu0 }
 0x10c   : >> { %v1226_v18 = vpop.f32.mrb[8].mxu1 }
 0x10d   : >> { %v1070_v19 = vadd.f32 %v1066_v13, %v991_v16  ;;  %v3056_v20 = vpop.f32.mrb[9].mxu1  ;;  %v2949_v13 = vld [vmem:[%s3678_s4] ss:$0 sm:$0xff] }
 0x10e   : >> { %v1145_v21 = vpop.f32.mrb[8].mxu0 }
 0x10f   : >> { %v1149_v22 = vadd.f32 %v1145_v21, %v1070_v19  ;;  %v3051_v23 = vpop.f32.mrb[9].mxu0 }
 0x110   : >> { %v1384_v24 = vpop.f32.mrb[10].mxu1 }
 0x111   : >> { %v1230_v25 = vadd.f32 %v1226_v18, %v1149_v22  ;;  %v3066_v26 = vpop.f32.mrb[11].mxu1 }
 0x112   : >> { %v1305_v27 = vpop.f32.mrb[10].mxu0 }
 0x113   : >> { %v1309_v28 = vadd.f32 %v1305_v27, %v1230_v25  ;;  %v3061_v29 = vpop.f32.mrb[11].mxu0 }
 0x114   : >> { %v1544_v30 = vpop.f32.mrb[12].mxu1 }
 0x115   : >> { %v1388_v31 = vadd.f32 %v1384_v24, %v1309_v28  ;;  %v3076_v32 = vpop.f32.mrb[13].mxu1 }
 0x116   : >> { %v1465_v33 = vpop.f32.mrb[12].mxu0 }
 0x117   : >> { %v1469_v34 = vadd.f32 %v1465_v33, %v1388_v31  ;;  %v3071_v35 = vpop.f32.mrb[13].mxu0  ;;  %v2613_v33 = vld [vmem:[%s3365_s22] sm:$0x1] (%p423_p11) }
 0x118   : >> { %v1704_v36 = vpop.f32.mrb[14].mxu1 }
 0x119   : >> { %v1548_v37 = vadd.f32 %v1544_v30, %v1469_v34  ;;  %v3086_v38 = vpop.f32.mrb[15].mxu1 }
 0x11a   : >> { %v1623_v39 = vpop.f32.mrb[14].mxu0 }
 0x11b   : >> { %v1627_v40 = vadd.f32 %v1623_v39, %v1548_v37  ;;  %v3081_v41 = vpop.f32.mrb[15].mxu0 }
 0x11c   : >> { %v1862_v42 = vpop.f32.mrb[16].mxu1 }
 0x11d   : >> { %v1708_v43 = vadd.f32 %v1704_v36, %v1627_v40  ;;  %v3096_v44 = vpop.f32.mrb[17].mxu1 }
 0x11e   : >> { %v1783_v45 = vpop.f32.mrb[16].mxu0 }
 0x11f   : >> { %v1787_v46 = vadd.f32 %v1783_v45, %v1708_v43  ;;  %v3091_v47 = vpop.f32.mrb[17].mxu0 }
 0x120   : >> { %v2022_v48 = vpop.f32.mrb[18].mxu1 }
 0x121   : >> { %v1866_v49 = vadd.f32 %v1862_v42, %v1787_v46  ;;  %v3106_v50 = vpop.f32.mrb[19].mxu1 }
 0x122   : >> { %v1943_v51 = vpop.f32.mrb[18].mxu0 }
 0x123   : >> { %v1947_v52 = vadd.f32 %v1943_v51, %v1866_v49  ;;  %v3101_v53 = vpop.f32.mrb[19].mxu0 }
 0x124   : >> { %v2182_v54 = vpop.f32.mrb[20].mxu1 }
 0x125   : >> { %v2026_v55 = vadd.f32 %v2022_v48, %v1947_v52  ;;  %v3116_v56 = vpop.f32.mrb[21].mxu1 }
 0x126   : >> { %v2101_v57 = vpop.f32.mrb[20].mxu0 }
 0x127   : >> { %v2105_v58 = vadd.f32 %v2101_v57, %v2026_v55  ;;  %v3111_v59 = vpop.f32.mrb[21].mxu0 }
 0x128   : >> { %v2340_v60 = vpop.f32.mrb[22].mxu1 }
 0x129   : >> { %v2186_v61 = vadd.f32 %v2182_v54, %v2105_v58  ;;  %v3126_v62 = vpop.f32.mrb[23].mxu1 }
 0x12a   : >> { %v2261_v63 = vpop.f32.mrb[22].mxu0 }
 0x12b   : >> { %v2265_v0 = vadd.f32 %v2261_v63, %v2186_v61  ;;  %v3121_v3 = vpop.f32.mrb[23].mxu0 }
 0x12c   : >> { %v2500_v5 = vpop.f32.mrb[24].mxu1 }
 0x12d   : >> { %v2344_v6 = vadd.f32 %v2340_v60, %v2265_v0  ;;  %v3136_v7 = vpop.f32.mrb[25].mxu1 }
 0x12e   : >> { %v2421_v8 = vpop.f32.mrb[24].mxu0 }
 0x12f   : >> { %v2425_v9 = vadd.f32 %v2421_v8, %v2344_v6  ;;  %v3131_v10 = vpop.f32.mrb[25].mxu0 }
 0x131   : >> { %v2504_v11 = vadd.f32 %v2500_v5, %v2425_v9 }
 0x132   : >> { %v2579_v12 = vpop.f32.mrb[26].mxu0 }
 0x133   : >> { %v2583_v4 = vadd.f32 %v2579_v12, %v2504_v11  ;;  %v3141_v14 = vpop.f32.mrb[27].mxu0 }
 0x135   : >> { %v2591_v15 = vadd.f32 %v2949_v13, %v2583_v4 }
 0x137   : >> { %2595 = vst.msk [vmem:[%s2593_s15] sm:$0xf] %vm2594_vm4, %v2591_v15  ;;  %v2596_v16 = vsel %vm2594_vm4, %v2591_v15, 0.0  ;;  %v2604_v17 = vmul.f32 %v2591_v15, %v2591_v15 }
 0x138   : >> { %v2597_v18 = vrot.slane %v2596_v16, 4 }
 0x139   : >> { %v2605_v19 = vsel %vm2594_vm4, %v2604_v17, 0.0 }
 0x13a   : >> { %v2598_v20 = vadd.f32 %v2597_v18, %v2596_v16  ;;  %v2606_v21 = vrot.slane %v2605_v19, 4 }
 0x13c   : >> { %v2599_v22 = vrot.slane %v2598_v20, 2  ;;  %v2607_v23 = vadd.f32 %v2606_v21, %v2605_v19 }
 0x13e   : >> { %v2600_v24 = vadd.f32 %v2599_v22, %v2598_v20  ;;  %v2608_v25 = vrot.slane %v2607_v23, 2 }
 0x140   : >> { %v2601_v26 = vrot.slane %v2600_v24, 1  ;;  %v2609_v27 = vadd.f32 %v2608_v25, %v2607_v23 }
 0x142   : >> { %v2602_v28 = vadd.f32 %v2601_v26, %v2600_v24  ;;  %v2610_v29 = vrot.slane %v2609_v27, 1  ;;  %425 = sbr.rel (!%p423_p11) target bundleno = 36 (0x24), region = 147 }
 0x144   : >> { %v2603_v30 = vadd.f32 %v3271_v2, %v2602_v28   ;;  %v2611_v31 = vadd.f32 %v2610_v29, %v2609_v27 }
 0x146   : >> { %v2612_v32 = vadd.f32 %v3267_v1, %v2611_v31   ;;  %v3693_v2 = vmov %v2603_v30  ;;  %v2614_v34 = vadd.f32 (%p423_p11), %v2613_v33, %v2603_v30 }
 0x147   : > { %v2617_v2 = vld [vmem:[%s3370_s12] sm:$0x1] (%p423_p11) }
 0x148   : >> { %v3692_v1 = vmov %v2612_v32  ;;  %v2618_v35 = vadd.f32 (%p423_p11), %v2617_v2, %v2612_v32  ;;  %2616 = vst.msk [vmem:[%s3365_s22] sm:$0x1] (%p423_p11), %vm2615_vm5, %v2614_v34 }
 0x14a   : > { %2619 = vst.msk [vmem:[%s3370_s12] sm:$0x1] %vm2615_vm5, %v2618_v35 }
 0x14b PF: > { %s18_s28 = sadd.s32 1, %s3263_s28   ;;  %s3694_s25 = sld [smem:[#allocation2_spill]] }
 0x14c   : > { %p15_p12 = scmp.ge.s32.totalorder %s18_s28, 10   ;;  %s3695_s17 = sld [smem:[#allocation3_spill]] }
 0x14d   : > { %s3696_s27 = sld [smem:[#allocation4_spill]]  ;;  %s3697_s24 = smov %s3255_s26 }
 0x14e   :  { %17 = sbr.rel (!%p15_p12) target bundleno = 4 (0x4), region = 158 }
 0x152   : > { %s3698_s26 = smov %s3695_s17 }

// kernel: down_forward.9
= control target key start
LH: loop header
LB: loop body
LE: loop exit
PB: predicated region body
PF: predicated region fallthrough
CT: control target
= control target key end

     0   :  { %8 = vsyncpa [#allocation3], 0  ;;  %s738_s0 = inlined_call_operand.vmem [shape: f32[2,4,4,4,8], index: 0, kind: input, shape index: {}]   ;;  %s739_s1 = inlined_call_operand.vmem [shape: f32[2,1,8], index: 1, kind: input, shape index: {}]   ;;  %s740_s2 = inlined_call_operand.vmem [shape: f32[2,1,8], index: 2, kind: input, shape index: {}]   ;;  %s741_s3 = inlined_call_operand.hbm [shape: f32[2,4,4,4,8], index: 3, kind: output, shape index: {}]  }
   0x1   :  { %10 = vsyncpa [#allocation3 + $0x1], 0  ;;  %s588_s12 = smov 0   ;;  %s590_s13 = smov 0  }
   0x2   :  { %s592_s14 = smov 0   ;;  %s594_s15 = smov 0  }
   0x3   :  { %s596_s16 = smov 0   ;;  %s598_s17 = smov 0  }
   0x4   :  { %s600_s18 = smov 0   ;;  %s602_s19 = smov 0  }
   0x5 LB: > { %746 = sst [smem:[#allocation5_spill]] %s559_s18  ;;  %s379_s20 = sadd.s32 4294967295, %s563_s19   ;;  %s563_s19 = sphi %s602_s19, %s16_s19   ;;  %s559_s18 = sphi %s600_s18, %s754_s18   ;;  %s555_s17 = sphi %s598_s17, %s759_s17   ;;  %s551_s16 = sphi %s596_s16, %s752_s16   ;;  %s547_s15 = sphi %s594_s15, %s758_s15   ;;  %s543_s14 = sphi %s592_s14, %s757_s14   ;;  %s539_s13 = sphi %s590_s13, %s756_s13   ;;  %s535_s12 = sphi %s588_s12, %s755_s12  }
   0x6   : > { %s380_s21 = sadd.s32 4294967294, %s563_s19   ;;  %s25_s22 = sadd.s32 1, %s555_s17 }
   0x7   : > { %p26_p0 = scmp.ge.s32.totalorder %s25_s22, 4  ;;  %s28_s23 = sadd.s32 1, %s559_s18 }
   0x8   : > { %p127_p1 = scmp.ne.s32.totalorder %s543_s14, %s539_s13  ;;  %p128_p2 = scmp.eq.s32.totalorder %s379_s20, 7 }
   0x9   : > { %s761_s22 = smov (%p26_p0, %s25_s22), 0  ;;  %s763_s23 = smov (!%p26_p0, %s28_s23), %s559_s18 }
   0xa   : > { %747 = sst [smem:[#allocation6_spill]] %s761_s22  ;;  %s113_s24 = ssub.s32 %s555_s17, %s761_s22 }
   0xb   : > { %p639_p3 = por %p128_p2, %p127_p1  ;;  %p30_p4 = scmp.ge.s32.totalorder %s763_s23, 2 }
   0xc   : > { %p133_p5 = scmp.ne.s32.totalorder %s539_s13, %s535_s12  ;;  %p134_p6 = scmp.eq.s32.totalorder %s380_s21, 7 }
   0xd   : > { %p383_p7 = scmp.ge.s32.totalorder %s563_s19, 1  ;;  %s765_s23 = smov (%p30_p4, %s763_s23), 0 }
   0xe   : > { %749 = sst [smem:[#allocation7_spill]] %s765_s23  ;;  %p648_p8 = por %p134_p6, %p133_p5 }
   0xf   : > { %p176_p9 = scmp.lt.s32.totalorder %s563_s19, 9  ;;  %s112_s27 = ssub.s32 %s559_s18, %s765_s23 }
  0x10   : > { %s117_s28 = sadd.s32 1, %s543_s14  ;;  %s114_s29 = sor.u32 %s113_s24, %s112_s27 }
  0x11   : > { %p177_p10 = pnand %p383_p7, %p176_p9  ;;  %p115_p11 = scmp.eq.s32.totalorder %s114_s29, 0 }
  0x12   : > { %s744_s4 = sand.u32 (!%p177_p10), 1, %s539_s13   ;;  %p210_p12 = scmp.lt.s32.totalorder (!%p177_p10), %s551_s16, 1  ;;  %vm255_vm0 = vcmask (!%p177_p10), 60416  }
  0x13   : > { %s657_s30 = scalar_select %p115_p11, %s543_s14, %s117_s28  }
  0x14   : > { %180 = sbr.rel (%p177_p10) target bundleno = 58 (0x3a), region = 32  ;;  %p212_p13 = scmp.lt.s32.totalorder (!%p177_p10), %s547_s15, 3 }
  0x15   : > { %s384_s5 = sshll.u32 (!%p177_p10), %s744_s4, 4  ;;  %s391_s18 = sshll.u32 (!%p177_p10), %s547_s15, 2 }
  0x16   : > { %s209_s9 = scalar_lea.vmem (!%p177_p10), [#allocation2], %s384_s5  ;;  %s751_s23 = sand.u32 (!%p177_p10), 1, %s539_s13  }
  0x17   : > { %s276_s10 = sshll.u32 (!%p177_p10), %s209_s9, 4  ;;  %s677_s10 = int_to_ptr.vmem [resolvable:$true] %s276_s10 }
  0x18   : > { %s469_s5 = scalar_lea.vmem (!%p177_p10), %s677_s10, 256 }
  0x19   : > { %p470_p0 = scmp.ne.s32.totalorder (!%p177_p10), %s677_s10, %s469_s5 }
  0x1b   : > { %s211_s6 = scalar_select %p210_p12, %s551_s16, 1 }
  0x1c   : > { %s213_s7 = scalar_select %p212_p13, %s547_s15, 3 }
  0x1d   : > { %s386_s8 = sshll.u32 %s211_s6, 4  ;;  %s221_s11 = scalar_lea.vmem %s739_s1, %s211_s6 }
  0x1e   : > { %s385_s20 = sshll.u32 %s213_s7, 2  ;;  %s224_s27 = scalar_lea.vmem %s740_s2, %s211_s6  ;;  %v388_v0 = vld [vmem:[%s221_s11] ss:$0 sm:$0xff] }
  0x1f   : > { %s216_s28 = sadd.s32 %s386_s8, %s385_s20  ;;  %v389_v1 = vld [vmem:[%s224_s27] ss:$0 sm:$0xff]  ;;  %s392_s7 = sshll.u32 %s551_s16, 4 }
  0x20   : > { %s387_s29 = sshll.u32 %s216_s28, 2  ;;  %s273_s6 = sadd.s32 %s392_s7, %s391_s18 }
  0x21   : > { %s218_s4 = scalar_lea.vmem %s738_s0, %s387_s29  ;;  %s393_s22 = sshll.u32 %s273_s6, 6 }
  0x22   : > { %v225_v2 = vld [vmem:[%s218_s4] sm:$0xf]  ;;  %v226_v3 = vld [vmem:[%s218_s4 + $0x4] sm:$0xf]  ;;  %v227_v4 = vld [vmem:[%s218_s4 + $0x8] sm:$0xf]  ;;  %s682_s18 = scalar_lea.hbm %s741_s3, %s393_s22  ;;  %p471_p1 = pnand %p470_p0, %p639_p3 }
  0x23   : > { %v236_v5 = vmul.f32 %v388_v0, %v225_v2  ;;  %v237_v6 = vmul.f32 %v388_v0, %v226_v3  ;;  %v238_v7 = vmul.f32 %v388_v0, %v227_v4  ;;  %v228_v8 = vld [vmem:[%s218_s4 + $0xc] sm:$0xf]  ;;  %s686_s4 = scalar_lea.sflag [#allocation3], %s751_s23  ;;  %s565_s8 = smov [#allocation2]  }
  0x24   : > { %v239_v9 = vmul.f32 %v388_v0, %v228_v8  ;;  %p472_p2 = pneg %p471_p1  ;;  %s473_s11 = sshll.u32 %s565_s8, 4  ;;  %s474_s11 = int_to_ptr.vmem [resolvable:$false] %s473_s11 }
  0x25   : > { %v247_v10 = vadd.f32 %v389_v1, %v236_v5  ;;  %v248_v11 = vadd.f32 %v389_v1, %v237_v6  ;;  %v249_v12 = vadd.f32 %v389_v1, %v238_v7  ;;  %s475_s20 = scalar_lea.vmem %s474_s11, 512  ;;  %p476_p4 = scmp.lt.s32.totalorder %s677_s10, %s474_s11 }
  0x26   : > { %v250_v13 = vadd.f32 %v389_v1, %v239_v9  ;;  %p477_p5 = scmp.lt.s32.totalorder %s475_s20, %s469_s5 }
  0x27   : > { %v251_v14 = vmax.f32 %v247_v10, 0.0  ;;  %v252_v15 = vmax.f32 %v248_v11, 0.0  ;;  %v253_v16 = vmax.f32 %v249_v12, 0.0 }
  0x28   : > { %v254_v17 = vmax.f32 %v250_v13, 0.0  ;;  %p478_p6 = por %p477_p5, %p476_p4 }
  0x29   : > { %256 = vst.msk [vmem:[%s209_s9] sm:$0xf] %vm255_vm0, %v251_v14  ;;  %257 = vst.msk [vmem:[%s209_s9 + $0x4] sm:$0xf] %vm255_vm0, %v252_v15 }
  0x2a   : > { %258 = vst.msk [vmem:[%s209_s9 + $0x8] sm:$0xf] %vm255_vm0, %v253_v16  ;;  %259 = vst.msk [vmem:[%s209_s9 + $0xc] sm:$0xf] %vm255_vm0, %v254_v17  ;;  %p479_p7 = pnand %p478_p6, %p472_p2 }
  0x2c   : > { %482 = shalt.err (!%p479_p7)
}
  0x2d   : > { %s483_s21 = scalar_lea.hbm %s682_s18, 256  ;;  %s487_s28 = scalar_lea.hbm %s741_s3, 2048 }
  0x2e   : > { %p484_p9 = scmp.ne.s32.totalorder %s682_s18, %s483_s21  ;;  %p488_p12 = scmp.lt.u32.totalorder %s682_s18, %s741_s3 }
  0x2f   : > { %p489_p13 = scmp.lt.u32.totalorder %s487_s28, %s483_s21  ;;  %p491_p1 = scmp.lt.u32.totalorder %s483_s21, %s682_s18 }
  0x30   : > { %p485_p10 = pnand %p484_p9, %p639_p3 }
  0x31   : > { %p490_p0 = por %p489_p13, %p488_p12 }
  0x32   : > { %p486_p11 = pneg %p485_p10 }
  0x33   : > { %p492_p2 = por %p491_p1, %p490_p0 }
  0x35   : > { %p493_p4 = pnand %p492_p2, %p486_p11 }
  0x37   : > { %496 = shalt.err (!%p493_p4)
}
  0x38   : > { %s566_s9 = smov 64   ;;  %s567_s6 = smov 4  }
  0x39   : > { %396 = dma.vmem_to_hbm [thread:$0]  (%p639_p3), %s677_s10, 256, %s682_s18, %s686_s4, %s566_s9, %s566_s9, %s567_s6  }
  0x3a PF: > { %p402_p5 = scmp.ge.s32.totalorder %s563_s19, 2  ;;  %s291_s22 = sand.u32 1, %s535_s12  }
  0x3b   : > { %s292_s15 = scalar_lea.sflag [#allocation3], %s291_s22 }
  0x3c   : > { %p399_p6 = pnand %p402_p5, %p648_p8 }
  0x3e   : > { %530 = dma.done.wait (!%p399_p6), %s292_s15, 256  }
  0x3f   : > { %532 = vsyncadd (!%p399_p6), %s292_s15, 4294967040  ;;  %s16_s19 = sadd.s32 1, %s563_s19   ;;  %s752_s16 = sld [smem:[#allocation5_spill]] }
  0x40   : > { %p13_p7 = scmp.ge.s32.totalorder %s16_s19, 10   ;;  %s753_s25 = sld [smem:[#allocation6_spill]] }
  0x41   : > { %s754_s18 = sld [smem:[#allocation7_spill]]  ;;  %s755_s12 = smov %s539_s13 }
  0x42   : > { %s756_s13 = smov %s543_s14  ;;  %s757_s14 = smov %s657_s30 }
  0x43   : > { %s758_s15 = smov %s555_s17  ;;  %15 = sbr.rel (!%p13_p7) target bundleno = 5 (0x5), region = 73 }
  0x46   : > { %s759_s17 = smov %s753_s25 }
  0x4a   :  { %297 = vsyncpa [#allocation3], 1 }
  0x4b   :  { %299 = vsyncpa [#allocation3 + $0x1], 1 }

// kernel: down_forward.8
= control target key start
LH: loop header
LB: loop body
LE: loop exit
PB: predicated region body
PF: predicated region fallthrough
CT: control target
= control target key end

     0   :  { %s3211_s24 = smov 0   ;;  %s3213_s25 = smov 0   ;;  %s3538_s0 = inlined_call_operand.vmem [shape: f32[2,6,6,6,8], index: 0, kind: input, shape index: {}, may-alias: {0,1,2}]   ;;  %s3539_s1 = inlined_call_operand.vmem [shape: f32[2,6,6,6,8], index: 1, kind: input, shape index: {}, may-alias: {0,1,2}]   ;;  %s3540_s2 = inlined_call_operand.vmem [shape: f32[2,6,6,6,8], index: 2, kind: input, shape index: {}, may-alias: {0,1,2}]   ;;  %s3541_s3 = inlined_call_operand.vmem [shape: f32[27,8,8], index: 3, kind: input, shape index: {}]   ;;  %s3542_s4 = inlined_call_operand.vmem [shape: f32[1,8], index: 4, kind: input, shape index: {}]   ;;  %s3543_s5 = inlined_call_operand.vmem [shape: f32[2,4,4,4,8], index: 5, kind: output, shape index: {0}]   ;;  %s3544_s6 = inlined_call_operand.vmem [shape: f32[2,1,8], index: 6, kind: output, shape index: {1}]   ;;  %s3545_s7 = inlined_call_operand.vmem [shape: f32[2,1,8], index: 7, kind: output, shape index: {2}]  }
   0x1   :  { %3547 = sst [smem:[#allocation5_spill]] %s3538_s0  ;;  %s3215_s26 = smov 0  }
   0x2   :  { %3548 = sst [smem:[#allocation6_spill]] %s3544_s6  ;;  %s3217_s27 = smov 0  }
   0x3   :  { %3549 = sst [smem:[#allocation7_spill]] %s3545_s7  ;;  %s3219_s28 = smov 0  }
   0x4 LB: > { %3550 = sst [smem:[#allocation2_spill]] %s3150_s27  ;;  %s27_s29 = sadd.s32 1, %s3146_s26  ;;  %s3154_s28 = sphi %s3219_s28, %s18_s28   ;;  %s3150_s27 = sphi %s3217_s27, %s3560_s27   ;;  %s3146_s26 = sphi %s3215_s26, %s3562_s26   ;;  %s3142_s25 = sphi %s3213_s25, %s3558_s25   ;;  %s3138_s24 = sphi %s3211_s24, %s3561_s24  }
   0x5   : > { %s30_s30 = sadd.s32 1, %s3150_s27  ;;  %p28_p0 = scmp.ge.s32.totalorder %s27_s29, 4 }
   0x6   : > { %p2766_p1 = scmp.ge.s32.totalorder %s3154_s28, 1  ;;  %p302_p2 = scmp.lt.s32.totalorder %s3154_s28, 9 }
   0x7   : > { %s3564_s29 = smov (%p28_p0, %s27_s29), 0  ;;  %s3566_s30 = smov (!%p28_p0, %s30_s30), %s3150_s27 }
   0x8   : > { %3551 = sst [smem:[#allocation3_spill]] %s3564_s29  ;;  %p303_p3 = pnand %p2766_p1, %p302_p2 }
   0x9   : > { %p32_p4 = scmp.ge.s32.totalorder %s3566_s30, 2  ;;  %p368_p5 = scmp.lt.s32.totalorder (!%p303_p3), %s3142_s25, 1 }
   0xa   : > { %306 = sbr.rel (%p303_p3) target bundleno = 329 (0x149), region = 40  ;;  %p370_p6 = scmp.lt.s32.totalorder (!%p303_p3), %s3138_s24, 5 }
   0xb   : > { %s3568_s30 = smov (%p32_p4, %s3566_s30), 0  ;;  %s377_s8 = sadd.s32 (!%p303_p3), 1, %s3138_s24 }
   0xc   : > { %3552 = sst [smem:[#allocation4_spill]] %s3568_s30  ;;  %s388_s9 = sadd.s32 (!%p303_p3), 2, %s3138_s24 }
   0xd   : > { %p380_p7 = scmp.lt.s32.totalorder (!%p303_p3), %s377_s8, 5  ;;  %p391_p8 = scmp.lt.s32.totalorder (!%p303_p3), %s388_s9, 5 }
   0xe   : > { %s3553_s0 = sld [smem:[#allocation5_spill]] (!%p303_p3)  ;;  %p401_p9 = scmp.lt.s32.totalorder (!%p303_p3), %s3138_s24, 3 }
   0xf   : > { %s3554_s6 = sld [smem:[#allocation6_spill]] (!%p303_p3)  ;;  %s3555_s7 = sld [smem:[#allocation7_spill]] (!%p303_p3) }
  0x10   : > { %p2773_p10 = scmp.ne.s32.totalorder (!%p303_p3), %s3138_s24, 0 }
  0x11   : > { %s3570_s25 = smov (!%p368_p5, %s3142_s25), 1  ;;  %s3572_s8 = smov (!%p380_p7, %s377_s8), 5 }
  0x12   : > { %s371_s10 = scalar_select %p370_p6, %s3138_s24, 5 }
  0x13   : > { %s3034_s11 = smul.u32 36, %s3570_s25  ;;  %s3574_s9 = smov (!%p391_p8, %s388_s9), 5  ;;  %vm418_vm0 = vcmask (!%p2773_p10), 57344   ;;  %v3168_v0 = vmov (!%p2773_p10), 0.0  }
  0x14   : > { %s3033_s12 = smul.u32 6, %s371_s10 }
  0x15   : > { %s3035_s15 = smul.u32 6, %s3572_s8  ;;  %s3256_s22 = scalar_lea.vmem %s3554_s6, %s3570_s25 }
  0x16   : > { %s374_s13 = sadd.s32 %s3034_s11, %s3033_s12  ;;  %s3261_s12 = scalar_lea.vmem %s3555_s7, %s3570_s25  ;;  %419 = vst.msk [vmem:[%s3256_s22] sm:$0x1] (!%p2773_p10), %vm418_vm0, %v3168_v0 }
  0x17   : > { %s2767_s14 = sshll.u32 %s374_s13, 3  ;;  %s384_s19 = sadd.s32 %s3035_s15, %s3034_s11  ;;  %420 = vst.msk [vmem:[%s3261_s12] sm:$0x1] (!%p2773_p10), %vm418_vm0, %v3168_v0 }
  0x18   : > { %s3250_s18 = scalar_lea.vmem %s3553_s0, %s2767_s14  ;;  %s2768_s23 = sshll.u32 %s384_s19, 3 }
  0x19   : > { %s3266_s29 = scalar_lea.vmem %s3539_s1, %s2768_s23  ;;  %s2771_s14 = sshll.u32 %s3570_s25, 4 }
  0x1a   : > { %s402_s16 = scalar_select %p401_p9, %s3138_s24, 3 }
  0x1b   : > { %s3036_s15 = smul.u32 6, %s3574_s9 }
  0x1c   : > { %s2770_s17 = sshll.u32 %s402_s16, 2  ;;  %417 = sbr.rel (%p2773_p10) target bundleno = 35 (0x23), region = 44 }
  0x1d   : > { %s395_s0 = sadd.s32 %s3036_s15, %s3034_s11  ;;  %s405_s20 = sadd.s32 %s2771_s14, %s2770_s17 }
  0x1e   : > { %s2769_s21 = sshll.u32 %s395_s0, 3  ;;  %s2772_s6 = sshll.u32 %s405_s20, 2 }
  0x1f   : > { %s3272_s30 = scalar_lea.vmem %s3540_s2, %s2769_s21  ;;  %s3277_s13 = scalar_lea.vmem %s3543_s5, %s2772_s6 }
  0x23 PF: > { %v3282_v1 = vmov 0.0   ;;  %v3284_v2 = vmov 0.0   ;;  %s3286_s0 = smov 0  }
  0x24 LB: >> { %v2775_v3 = vld [vmem:[%s3541_s3 + $0x8] sm:$0xff]  ;;  %v432_v4 = vld [vmem:[%s3541_s3] sm:$0xff]  ;;  %v3169_v5 = vmov 0.0   ;;  %vm3170_vm1 = vmmov 0   ;;  %s3308_s27 = sshll.u32 %s3166_s0, 3  ;;  %vm437_vm2 = vcmask 64512   ;;  %s3166_s0 = sphi %s3286_s0, %s426_s0   ;;  %v3162_v2 = vphi %v3284_v2, %v3557_v2   ;;  %v3158_v1 = vphi %v3282_v1, %v3556_v1  }
  0x25   : >> { %2898 = vmatprep.subr.mxu0 %v3169_v5  ;;  %2903 = vmatprep.subr.mxu1 %v3169_v5  ;;  %s430_s9 = scalar_lea.vmem %s3250_s18, %s3308_s27  ;;  %v2782_v6 = vld [vmem:[%s3541_s3 + $0x18] sm:$0xff]  ;;  %v2778_v9 = vld [vmem:[%s3541_s3 + $0x10] sm:$0xff]  ;;  %v2786_v12 = vld [vmem:[%s3541_s3 + $0x28] sm:$0xff]  ;;  %s3360_s25 = scalar_lea.vmem %s3266_s29, %s3308_s27  ;;  %vm2512_vm3 = vcmask 60416  }
  0x26   : >> { %2899 = vmatpush3.msra.mxu0 %v2775_v3  ;;  %2900 = vmatprep.mubr.msk.f32.mxu0 %vm3170_vm1, %v3169_v5  ;;  %v431_v7 = vld [vmem:[%s430_s9] sm:$0x3f]  ;;  %v2781_v10 = vld [vmem:[%s430_s9 + $0x8] sm:$0x3f]  ;;  %v2789_v15 = vld [vmem:[%s430_s9 + $0x10] sm:$0x3f]  ;;  %s3423_s11 = scalar_lea.vmem %s3272_s30, %s3308_s27 }
  0x27   : >> { %2904 = vmatpush3.msra.mxu1 %v432_v4  ;;  %2905 = vmatprep.mubr.msk.f32.mxu1 %vm3170_vm1, %v3169_v5  ;;  %v436_v8 = vrot.slane %v431_v7, 1  ;;  %v584_v11 = vrot.slane %v431_v7, 2  ;;  %v2784_v13 = vld [vmem:[%s3541_s3 + $0x20] sm:$0xff]  ;;  %v816_v14 = vrot.slane %v2781_v10, 2  ;;  %v740_v16 = vrot.slane %v2781_v10, 1  ;;  %v2792_v17 = vld [vmem:[%s3541_s3 + $0x38] sm:$0xff] }
  0x28   : >> { %2908 = vmatprep.subr.mxu0 %v3169_v5  ;;  %2913 = vmatprep.subr.mxu1 %v3169_v5  ;;  %v2790_v18 = vld [vmem:[%s3541_s3 + $0x30] sm:$0xff]  ;;  %v972_v19 = vrot.slane %v2789_v15, 1  ;;  %v2796_v20 = vld [vmem:[%s3541_s3 + $0x48] sm:$0xff]  ;;  %v2794_v21 = vld [vmem:[%s3541_s3 + $0x40] sm:$0xff]  ;;  %v1048_v23 = vrot.slane %v2789_v15, 2  ;;  %s2841_s8 = sshll.u32 %s3166_s0, 2 }
  0x29   : >> { %2906 = vmatmul.mubr.msk.f32.vlgmr.msra.gmra.mrb[0].mxu1 %vm437_vm2, %v431_v7  ;;  %2901 = vmatmul.mubr.msk.f32.vlgmr.msra.gmra.mrb[0].mxu0 %vm437_vm2, %v436_v8  ;;  %v1123_v22 = vld [vmem:[%s3360_s25] sm:$0x3f]  ;;  %v2800_v24 = vld [vmem:[%s3541_s3 + $0x58] sm:$0xff]  ;;  %v2798_v25 = vld [vmem:[%s3541_s3 + $0x50] sm:$0xff]  ;;  %s2511_s15 = scalar_lea.vmem %s3277_s13, %s2841_s8  ;;  %s426_s0 = sadd.s32 1, %s3166_s0  }
  0x2a   : >> { %2914 = vmatpush3.msra.mxu1 %v2782_v6  ;;  %2915 = vmatprep.mubr.msk.f32.mxu1 %vm3170_vm1, %v3169_v5  ;;  %v1278_v26 = vrot.slane %v1123_v22, 2  ;;  %v2803_v27 = vld [vmem:[%s3360_s25 + $0x8] sm:$0x3f]  ;;  %v1202_v28 = vrot.slane %v1123_v22, 1  ;;  %v2804_v30 = vld [vmem:[%s3541_s3 + $0x60] sm:$0xff]  ;;  %v2812_v32 = vld [vmem:[%s3541_s3 + $0x78] sm:$0xff] }
  0x2b   : >> { %2923 = vmatprep.subr.mxu1 %v3169_v5  ;;  %2909 = vmatpush3.msra.mxu0 %v2778_v9  ;;  %v2806_v29 = vld [vmem:[%s3541_s3 + $0x68] sm:$0xff]  ;;  %v1432_v31 = vrot.slane %v2803_v27, 1  ;;  %v2808_v33 = vld [vmem:[%s3541_s3 + $0x70] sm:$0xff]  ;;  %v1508_v35 = vrot.slane %v2803_v27, 2  ;;  %v2814_v37 = vld [vmem:[%s3541_s3 + $0x80] sm:$0xff]  ;;  %p423_p11 = scmp.ge.s32.totalorder %s426_s0, 4  }
  0x2c   : >> { %2910 = vmatprep.mubr.msk.f32.mxu0 %vm3170_vm1, %v3169_v5  ;;  %2918 = vmatprep.subr.mxu0 %v3169_v5  ;;  %v2811_v34 = vld [vmem:[%s3360_s25 + $0x10] sm:$0x3f]  ;;  %v2816_v36 = vld [vmem:[%s3541_s3 + $0x88] sm:$0xff]  ;;  %v1813_v39 = vld [vmem:[%s3423_s11] sm:$0x3f]  ;;  %vm2533_vm4 = vcmask (%p423_p11), 57344  }
  0x2d   : >> { %2916 = vmatmul.mubr.msk.f32.vlgmr.msra.gmra.mrb[2].mxu1 %vm437_vm2, %v2781_v10  ;;  %2911 = vmatmul.mubr.msk.f32.vlgmr.msra.gmra.mrb[2].mxu0 %vm437_vm2, %v584_v11  ;;  %v1738_v38 = vrot.slane %v2811_v34, 2  ;;  %v1662_v40 = vrot.slane %v2811_v34, 1  ;;  %v2820_v41 = vld [vmem:[%s3541_s3 + $0x98] sm:$0xff]  ;;  %v2818_v42 = vld [vmem:[%s3541_s3 + $0x90] sm:$0xff]  ;;  %v1892_v43 = vrot.slane %v1813_v39, 1  ;;  %v2826_v44 = vld [vmem:[%s3541_s3 + $0xa8] sm:$0xff] }
  0x2e   : >> { %2924 = vmatpush3.msra.mxu1 %v2786_v12  ;;  %2925 = vmatprep.mubr.msk.f32.mxu1 %vm3170_vm1, %v3169_v5  ;;  %v2822_v45 = vld [vmem:[%s3541_s3 + $0xa0] sm:$0xff]  ;;  %v2825_v46 = vld [vmem:[%s3423_s11 + $0x8] sm:$0x3f]  ;;  %v1968_v47 = vrot.slane %v1813_v39, 2  ;;  %v2830_v48 = vld [vmem:[%s3541_s3 + $0xb8] sm:$0xff] }
  0x2f   : >> { %2933 = vmatprep.subr.mxu1 %v3169_v5  ;;  %2919 = vmatpush3.msra.mxu0 %v2784_v13  ;;  %v2828_v49 = vld [vmem:[%s3541_s3 + $0xb0] sm:$0xff]  ;;  %v2198_v50 = vrot.slane %v2825_v46, 2  ;;  %v2122_v52 = vrot.slane %v2825_v46, 1  ;;  %v2836_v53 = vld [vmem:[%s3541_s3 + $0xc8] sm:$0xff]  ;;  %v2834_v54 = vld [vmem:[%s3541_s3 + $0xc0] sm:$0xff] }
  0x30   : >> { %2920 = vmatprep.mubr.msk.f32.mxu0 %vm3170_vm1, %v3169_v5  ;;  %2928 = vmatprep.subr.mxu0 %v3169_v5  ;;  %v2833_v51 = vld [vmem:[%s3423_s11 + $0x10] sm:$0x3f] }
  0x31   : >> { %2926 = vmatmul.mubr.msk.f32.vlgmr.msra.gmra.mrb[4].mxu1 %vm437_vm2, %v816_v14  ;;  %2921 = vmatmul.mubr.msk.f32.vlgmr.msra.gmra.mrb[4].mxu0 %vm437_vm2, %v740_v16  ;;  %v2352_v55 = vrot.slane %v2833_v51, 1  ;;  %v2838_v56 = vld [vmem:[%s3541_s3 + $0xd0] sm:$0xff]  ;;  %v2428_v57 = vrot.slane %v2833_v51, 2 }
  0x32   : >> { %2934 = vmatpush3.msra.mxu1 %v2792_v17  ;;  %2935 = vmatprep.mubr.msk.f32.mxu1 %vm3170_vm1, %v3169_v5 }
  0x33   : >> { %2943 = vmatprep.subr.mxu1 %v3169_v5  ;;  %2929 = vmatpush3.msra.mxu0 %v2790_v18 }
  0x34   : >> { %2930 = vmatprep.mubr.msk.f32.mxu0 %vm3170_vm1, %v3169_v5  ;;  %2938 = vmatprep.subr.mxu0 %v3169_v5 }
  0x35   : >> { %2936 = vmatmul.mubr.msk.f32.vlgmr.msra.gmra.mrb[6].mxu1 %vm437_vm2, %v972_v19  ;;  %2931 = vmatmul.mubr.msk.f32.vlgmr.msra.gmra.mrb[6].mxu0 %vm437_vm2, %v2789_v15 }
  0x36   : >> { %2944 = vmatpush3.msra.mxu1 %v2796_v20  ;;  %2945 = vmatprep.mubr.msk.f32.mxu1 %vm3170_vm1, %v3169_v5 }
  0x37   : >> { %2953 = vmatprep.subr.mxu1 %v3169_v5  ;;  %2939 = vmatpush3.msra.mxu0 %v2794_v21 }
  0x38   : >> { %2940 = vmatprep.mubr.msk.f32.mxu0 %vm3170_vm1, %v3169_v5  ;;  %2948 = vmatprep.subr.mxu0 %v3169_v5 }
  0x39   : >> { %2946 = vmatmul.mubr.msk.f32.vlgmr.msra.gmra.mrb[8].mxu1 %vm437_vm2, %v1123_v22  ;;  %2941 = vmatmul.mubr.msk.f32.vlgmr.msra.gmra.mrb[8].mxu0 %vm437_vm2, %v1048_v23 }
  0x3a   : >> { %2954 = vmatpush3.msra.mxu1 %v2800_v24  ;;  %2955 = vmatprep.mubr.msk.f32.mxu1 %vm3170_vm1, %v3169_v5 }
  0x3b   : >> { %2963 = vmatprep.subr.mxu1 %v3169_v5  ;;  %2949 = vmatpush3.msra.mxu0 %v2798_v25 }
  0x3c   : >> { %2950 = vmatprep.mubr.msk.f32.mxu0 %vm3170_vm1, %v3169_v5  ;;  %2958 = vmatprep.subr.mxu0 %v3169_v5 }
  0x3d   : >> { %2956 = vmatmul.mubr.msk.f32.vlgmr.msra.gmra.mrb[10].mxu1 %vm437_vm2, %v1278_v26  ;;  %2951 = vmatmul.mubr.msk.f32.vlgmr.msra.gmra.mrb[10].mxu0 %vm437_vm2, %v1202_v28 }
  0x3e   : >> { %2964 = vmatpush3.msra.mxu1 %v2806_v29  ;;  %2965 = vmatprep.mubr.msk.f32.mxu1 %vm3170_vm1, %v3169_v5 }
  0x3f   : >> { %2973 = vmatprep.subr.mxu1 %v3169_v5  ;;  %2959 = vmatpush3.msra.mxu0 %v2804_v30 }
  0x40   : >> { %2960 = vmatprep.mubr.msk.f32.mxu0 %vm3170_vm1, %v3169_v5  ;;  %2968 = vmatprep.subr.mxu0 %v3169_v5 }
  0x41   : >> { %2966 = vmatmul.mubr.msk.f32.vlgmr.msra.gmra.mrb[12].mxu1 %vm437_vm2, %v1432_v31  ;;  %2961 = vmatmul.mubr.msk.f32.vlgmr.msra.gmra.mrb[12].mxu0 %vm437_vm2, %v2803_v27 }
  0x42   : >> { %2974 = vmatpush3.msra.mxu1 %v2812_v32  ;;  %2975 = vmatprep.mubr.msk.f32.mxu1 %vm3170_vm1, %v3169_v5 }
  0x43   : >> { %2983 = vmatprep.subr.mxu1 %v3169_v5  ;;  %2969 = vmatpush3.msra.mxu0 %v2808_v33 }
  0x44   : >> { %2970 = vmatprep.mubr.msk.f32.mxu0 %vm3170_vm1, %v3169_v5  ;;  %2978 = vmatprep.subr.mxu0 %v3169_v5 }
  0x45   : >> { %2976 = vmatmul.mubr.msk.f32.vlgmr.msra.gmra.mrb[14].mxu1 %vm437_vm2, %v2811_v34  ;;  %2971 = vmatmul.mubr.msk.f32.vlgmr.msra.gmra.mrb[14].mxu0 %vm437_vm2, %v1508_v35 }
  0x46   : >> { %2984 = vmatpush3.msra.mxu1 %v2816_v36  ;;  %2985 = vmatprep.mubr.msk.f32.mxu1 %vm3170_vm1, %v3169_v5 }
  0x47   : >> { %2993 = vmatprep.subr.mxu1 %v3169_v5  ;;  %2979 = vmatpush3.msra.mxu0 %v2814_v37 }
  0x48   : >> { %2980 = vmatprep.mubr.msk.f32.mxu0 %vm3170_vm1, %v3169_v5  ;;  %2988 = vmatprep.subr.mxu0 %v3169_v5 }
  0x49   : >> { %2986 = vmatmul.mubr.msk.f32.vlgmr.msra.gmra.mrb[16].mxu1 %vm437_vm2, %v1738_v38  ;;  %2981 = vmatmul.mubr.msk.f32.vlgmr.msra.gmra.mrb[16].mxu0 %vm437_vm2, %v1662_v40 }
  0x4a   : >> { %2994 = vmatpush3.msra.mxu1 %v2820_v41  ;;  %2995 = vmatprep.mubr.msk.f32.mxu1 %vm3170_vm1, %v3169_v5 }
  0x4b   : >> { %3003 = vmatprep.subr.mxu1 %v3169_v5  ;;  %2989 = vmatpush3.msra.mxu0 %v2818_v42 }
  0x4c   : >> { %2990 = vmatprep.mubr.msk.f32.mxu0 %vm3170_vm1, %v3169_v5  ;;  %2998 = vmatprep.subr.mxu0 %v3169_v5 }
  0x4d   : >> { %2996 = vmatmul.mubr.msk.f32.vlgmr.msra.gmra.mrb[18].mxu1 %vm437_vm2, %v1892_v43  ;;  %2991 = vmatmul.mubr.msk.f32.vlgmr.msra.gmra.mrb[18].mxu0 %vm437_vm2, %v1813_v39 }
  0x4e   : >> { %3004 = vmatpush3.msra.mxu1 %v2826_v44  ;;  %3005 = vmatprep.mubr.msk.f32.mxu1 %vm3170_vm1, %v3169_v5 }
  0x4f   : >> { %3013 = vmatprep.subr.mxu1 %v3169_v5  ;;  %2999 = vmatpush3.msra.mxu0 %v2822_v45 }
  0x50   : >> { %3000 = vmatprep.mubr.msk.f32.mxu0 %vm3170_vm1, %v3169_v5  ;;  %3008 = vmatprep.subr.mxu0 %v3169_v5 }
  0x51   : >> { %3006 = vmatmul.mubr.msk.f32.vlgmr.msra.gmra.mrb[20].mxu1 %vm437_vm2, %v2825_v46  ;;  %3001 = vmatmul.mubr.msk.f32.vlgmr.msra.gmra.mrb[20].mxu0 %vm437_vm2, %v1968_v47 }
  0x52   : >> { %3014 = vmatpush3.msra.mxu1 %v2830_v48  ;;  %3015 = vmatprep.mubr.msk.f32.mxu1 %vm3170_vm1, %v3169_v5 }
  0x53   : >> { %3023 = vmatprep.subr.mxu1 %v3169_v5  ;;  %3009 = vmatpush3.msra.mxu0 %v2828_v49 }
  0x54   : >> { %3010 = vmatprep.mubr.msk.f32.mxu0 %vm3170_vm1, %v3169_v5  ;;  %3018 = vmatprep.subr.mxu0 %v3169_v5 }
  0x55   : >> { %3016 = vmatmul.mubr.msk.f32.vlgmr.msra.gmra.mrb[22].mxu1 %vm437_vm2, %v2198_v50  ;;  %3011 = vmatmul.mubr.msk.f32.vlgmr.msra.gmra.mrb[22].mxu0 %vm437_vm2, %v2122_v52 }
  0x56   : >> { %3024 = vmatpush3.msra.mxu1 %v2836_v53  ;;  %3025 = vmatprep.mubr.msk.f32.mxu1 %vm3170_vm1, %v3169_v5 }
  0x57   : >> { %3019 = vmatpush3.msra.mxu0 %v2834_v54  ;;  %3020 = vmatprep.mubr.msk.f32.mxu0 %vm3170_vm1, %v3169_v5 }
  0x58   : >> { %3028 = vmatprep.subr.mxu0 %v3169_v5 }
  0x59   : >> { %3026 = vmatmul.mubr.msk.f32.vlgmr.msra.gmra.mrb[24].mxu1 %vm437_vm2, %v2352_v55  ;;  %3021 = vmatmul.mubr.msk.f32.vlgmr.msra.gmra.mrb[24].mxu0 %vm437_vm2, %v2833_v51 }
  0x5a   : >> { %3029 = vmatpush3.msra.mxu0 %v2838_v56  ;;  %3030 = vmatprep.mubr.msk.f32.mxu0 %vm3170_vm1, %v3169_v5 }
  0x5d   : >> { %3031 = vmatmul.mubr.msk.f32.vlgmr.msra.gmra.mrb[26].mxu0 %vm437_vm2, %v2428_v57 }
  0xfc   : >> { %v578_v58 = vpop.f32.mrb[0].mxu1  ;;  %v506_v60 = vpop.f32.mrb[0].mxu0 }
  0xfd   : >> { %v2907_v59 = vpop.f32.mrb[1].mxu1  ;;  %v579_v61 = vadd.f32 %v578_v58, %v506_v60  ;;  %v2902_v62 = vpop.f32.mrb[1].mxu0 }
 0x100   : >> { %v733_v63 = vpop.f32.mrb[2].mxu1  ;;  %v653_v3 = vpop.f32.mrb[2].mxu0 }
 0x101   : >> { %v2917_v0 = vpop.f32.mrb[3].mxu1  ;;  %v657_v4 = vadd.f32 %v653_v3, %v579_v61  ;;  %v2912_v6 = vpop.f32.mrb[3].mxu0 }
 0x103   : >> { %v737_v8 = vadd.f32 %v733_v63, %v657_v4 }
 0x104   : >> { %v885_v7 = vpop.f32.mrb[4].mxu1  ;;  %v809_v10 = vpop.f32.mrb[4].mxu0 }
 0x105   : >> { %v2927_v9 = vpop.f32.mrb[5].mxu1  ;;  %v813_v11 = vadd.f32 %v809_v10, %v737_v8  ;;  %v2922_v12 = vpop.f32.mrb[5].mxu0 }
 0x107   : >> { %v889_v5 = vadd.f32 %v885_v7, %v813_v11 }
 0x108   : >> { %v1041_v13 = vpop.f32.mrb[6].mxu1  ;;  %v965_v15 = vpop.f32.mrb[6].mxu0 }
 0x109   : >> { %v2937_v14 = vpop.f32.mrb[7].mxu1  ;;  %v969_v16 = vadd.f32 %v965_v15, %v889_v5  ;;  %v2932_v17 = vpop.f32.mrb[7].mxu0 }
 0x10b   : >> { %v1045_v19 = vadd.f32 %v1041_v13, %v969_v16  ;;  %v2840_v13 = vld [vmem:[%s3542_s4] ss:$0 sm:$0xff] }
 0x10c   : >> { %v1195_v18 = vpop.f32.mrb[8].mxu1  ;;  %v1117_v21 = vpop.f32.mrb[8].mxu0 }
 0x10d   : >> { %v2947_v20 = vpop.f32.mrb[9].mxu1  ;;  %v1121_v22 = vadd.f32 %v1117_v21, %v1045_v19  ;;  %v2942_v23 = vpop.f32.mrb[9].mxu0 }
 0x10f   : >> { %v1199_v25 = vadd.f32 %v1195_v18, %v1121_v22 }
 0x110   : >> { %v1347_v24 = vpop.f32.mrb[10].mxu1  ;;  %v1271_v27 = vpop.f32.mrb[10].mxu0 }
 0x111   : >> { %v2957_v26 = vpop.f32.mrb[11].mxu1  ;;  %v1275_v28 = vadd.f32 %v1271_v27, %v1199_v25  ;;  %v2952_v29 = vpop.f32.mrb[11].mxu0 }
 0x113   : >> { %v1351_v31 = vadd.f32 %v1347_v24, %v1275_v28 }
 0x114   : >> { %v1501_v30 = vpop.f32.mrb[12].mxu1  ;;  %v1425_v33 = vpop.f32.mrb[12].mxu0 }
 0x115   : >> { %v2967_v32 = vpop.f32.mrb[13].mxu1  ;;  %v1429_v34 = vadd.f32 %v1425_v33, %v1351_v31  ;;  %v2962_v35 = vpop.f32.mrb[13].mxu0  ;;  %v2531_v33 = vld [vmem:[%s3256_s22] sm:$0x1] (%p423_p11) }
 0x117   : >> { %v1505_v37 = vadd.f32 %v1501_v30, %v1429_v34 }
 0x118   : >> { %v1655_v36 = vpop.f32.mrb[14].mxu1  ;;  %v1577_v39 = vpop.f32.mrb[14].mxu0 }
 0x119   : >> { %v2977_v38 = vpop.f32.mrb[15].mxu1  ;;  %v1581_v40 = vadd.f32 %v1577_v39, %v1505_v37  ;;  %v2972_v41 = vpop.f32.mrb[15].mxu0 }
 0x11b   : >> { %v1659_v43 = vadd.f32 %v1655_v36, %v1581_v40 }
 0x11c   : >> { %v1807_v42 = vpop.f32.mrb[16].mxu1  ;;  %v1731_v45 = vpop.f32.mrb[16].mxu0 }
 0x11d   : >> { %v2987_v44 = vpop.f32.mrb[17].mxu1  ;;  %v1735_v46 = vadd.f32 %v1731_v45, %v1659_v43  ;;  %v2982_v47 = vpop.f32.mrb[17].mxu0 }
 0x11f   : >> { %v1811_v49 = vadd.f32 %v1807_v42, %v1735_v46 }
 0x120   : >> { %v1961_v48 = vpop.f32.mrb[18].mxu1  ;;  %v1885_v51 = vpop.f32.mrb[18].mxu0 }
 0x121   : >> { %v2997_v50 = vpop.f32.mrb[19].mxu1  ;;  %v1889_v52 = vadd.f32 %v1885_v51, %v1811_v49  ;;  %v2992_v53 = vpop.f32.mrb[19].mxu0 }
 0x123   : >> { %v1965_v55 = vadd.f32 %v1961_v48, %v1889_v52 }
 0x124   : >> { %v2115_v54 = vpop.f32.mrb[20].mxu1  ;;  %v2037_v57 = vpop.f32.mrb[20].mxu0 }
 0x125   : >> { %v3007_v56 = vpop.f32.mrb[21].mxu1  ;;  %v2041_v58 = vadd.f32 %v2037_v57, %v1965_v55  ;;  %v3002_v59 = vpop.f32.mrb[21].mxu0 }
 0x127   : >> { %v2119_v61 = vadd.f32 %v2115_v54, %v2041_v58 }
 0x128   : >> { %v2267_v60 = vpop.f32.mrb[22].mxu1  ;;  %v2191_v63 = vpop.f32.mrb[22].mxu0 }
 0x129   : >> { %v3017_v62 = vpop.f32.mrb[23].mxu1  ;;  %v2195_v0 = vadd.f32 %v2191_v63, %v2119_v61  ;;  %v3012_v3 = vpop.f32.mrb[23].mxu0 }
 0x12b   : >> { %v2271_v6 = vadd.f32 %v2267_v60, %v2195_v0 }
 0x12c   : >> { %v2421_v4 = vpop.f32.mrb[24].mxu1  ;;  %v2345_v8 = vpop.f32.mrb[24].mxu0 }
 0x12d   : >> { %v3027_v7 = vpop.f32.mrb[25].mxu1  ;;  %v2349_v9 = vadd.f32 %v2345_v8, %v2271_v6  ;;  %v3022_v10 = vpop.f32.mrb[25].mxu0 }
 0x12f   : >> { %v2425_v11 = vadd.f32 %v2421_v4, %v2349_v9 }
 0x130   : >> { %v2497_v12 = vpop.f32.mrb[26].mxu0 }
 0x131   : >> { %v2501_v5 = vadd.f32 %v2497_v12, %v2425_v11  ;;  %v3032_v14 = vpop.f32.mrb[27].mxu0 }
 0x133   : >> { %v2509_v15 = vadd.f32 %v2840_v13, %v2501_v5 }
 0x135   : >> { %2513 = vst.msk [vmem:[%s2511_s15] sm:$0xf] %vm2512_vm3, %v2509_v15  ;;  %v2514_v16 = vsel %vm2512_vm3, %v2509_v15, 0.0  ;;  %v2522_v17 = vmul.f32 %v2509_v15, %v2509_v15 }
 0x136   : >> { %v2515_v18 = vrot.slane %v2514_v16, 4 }
 0x137   : >> { %v2523_v19 = vsel %vm2512_vm3, %v2522_v17, 0.0 }
 0x138   : >> { %v2516_v20 = vadd.f32 %v2515_v18, %v2514_v16  ;;  %v2524_v21 = vrot.slane %v2523_v19, 4 }
 0x13a   : >> { %v2517_v22 = vrot.slane %v2516_v20, 2  ;;  %v2525_v23 = vadd.f32 %v2524_v21, %v2523_v19 }
 0x13c   : >> { %v2518_v24 = vadd.f32 %v2517_v22, %v2516_v20  ;;  %v2526_v25 = vrot.slane %v2525_v23, 2 }
 0x13e   : >> { %v2519_v26 = vrot.slane %v2518_v24, 1  ;;  %v2527_v27 = vadd.f32 %v2526_v25, %v2525_v23 }
 0x140   : >> { %v2520_v28 = vadd.f32 %v2519_v26, %v2518_v24  ;;  %v2528_v29 = vrot.slane %v2527_v27, 1  ;;  %425 = sbr.rel (!%p423_p11) target bundleno = 36 (0x24), region = 147 }
 0x142   : >> { %v2521_v30 = vadd.f32 %v3162_v2, %v2520_v28   ;;  %v2529_v31 = vadd.f32 %v2528_v29, %v2527_v27 }
 0x144   : >> { %v2530_v32 = vadd.f32 %v3158_v1, %v2529_v31   ;;  %v3557_v2 = vmov %v2521_v30  ;;  %v2532_v34 = vadd.f32 (%p423_p11), %v2531_v33, %v2521_v30 }
 0x145   : > { %v2535_v2 = vld [vmem:[%s3261_s12] sm:$0x1] (%p423_p11) }
 0x146   : >> { %v3556_v1 = vmov %v2530_v32  ;;  %v2536_v35 = vadd.f32 (%p423_p11), %v2535_v2, %v2530_v32  ;;  %2534 = vst.msk [vmem:[%s3256_s22] sm:$0x1] (%p423_p11), %vm2533_vm4, %v2532_v34 }
 0x148   : > { %2537 = vst.msk [vmem:[%s3261_s12] sm:$0x1] %vm2533_vm4, %v2536_v35 }
 0x149 PF: > { %s18_s28 = sadd.s32 1, %s3154_s28   ;;  %s3558_s25 = sld [smem:[#allocation2_spill]] }
 0x14a   : > { %p15_p12 = scmp.ge.s32.totalorder %s18_s28, 10   ;;  %s3559_s17 = sld [smem:[#allocation3_spill]] }
 0x14b   : > { %s3560_s27 = sld [smem:[#allocation4_spill]]  ;;  %s3561_s24 = smov %s3146_s26 }
 0x14c   :  { %17 = sbr.rel (!%p15_p12) target bundleno = 4 (0x4), region = 158 }
 0x150   : > { %s3562_s26 = smov %s3559_s17 }

</bundles_post_ra>
